<compile_context>
chip_gen: v6e
topology: v6e:2x2x1
jax: 0.10.0
libtpu: 0.0.40
codegen_flags: <defaults>
</compile_context>

<pallas_src>
import jax
import jax.numpy as jnp
from jax.experimental import pallas as pl
from jax.experimental.pallas import tpu as pltpu

_LANE = 128

# Per-tile f32 element budget.  Double-buffered streams cost roughly
#   4 B * (2 delta bufs + 2*2 v_old bufs + 2 out bufs) = 32 B / element,
# so 256K elements ~= 8 MiB of VMEM -> fits the *default* scoped VMEM limit on
# v5e (16 MiB), v6e (32 MiB) and v7x (32 MiB of 64 MiB physical) with headroom,
# no vmem_limit_bytes tuning required, while staying in the measured ~85%-of-
# HBM-roofline tile-size regime.
_MAX_TILE_ELEMS = 256 * 1024

# Below this size a fused XLA elementwise op beats kernel-launch + ~0.35us/step.
_SMALL_THRESHOLD = 16 * 1024


def _perf_value_kernel(g_ref, delta_ref, v_ref, out_ref):
    # g_ref: (1,) int32 in SMEM (scalar prefetch).
    # delta_ref / out_ref: (TH, C) VMEM tiles; v_ref: (2, TH, C) VMEM tile.
    #
    # Both v_old slots are already resident in VMEM, so instead of a dynamic
    # first-axis gather we take the static difference and flip its sign:
    #   G=1 -> v1 - v0 -> sign +1 ;  G=0 -> v0 - v1 -> sign -1.
    sign = (2 * g_ref[0] - 1).astype(out_ref.dtype)
    out_ref[...] = delta_ref[...] * (v_ref[1] - v_ref[0]) * sign


def _perf_value_xla(delta, v_old, g_idx):
    # Fallback for tiny / lane-unfriendly sizes: let XLA fuse it.
    g = jnp.asarray(g_idx, jnp.int32)
    sign = (2 * g - 1).astype(delta.dtype)
    return delta * (v_old[1] - v_old[0]) * sign


def perf_value(delta, v_old, g_idx):
    """delta: (*S) f32, v_old: (2, *S) f32, g_idx: scalar int in {0, 1}."""
    orig_shape = tuple(delta.shape)
    assert tuple(v_old.shape) == (2,) + orig_shape
    total = delta.size

    if total % _LANE != 0 or total <= _SMALL_THRESHOLD:
        return _perf_value_xla(delta, v_old, g_idx)

    # Lane-dense layout: view everything as (rows, C), C a large multiple of
    # 128, so the output tile's last dim is lane-dense (unmasked full vst).
    C = next(c for c in (1024, 512, 256, 128) if total % c == 0)
    rows = total // C
    delta2 = delta.reshape(rows, C)
    v2 = v_old.reshape(2, rows, C)

    # Largest row tile within the VMEM budget; multiple of 8 (sublane rule)
    # unless the whole array already fits in a single tile.
    th_cap = max(8, (_MAX_TILE_ELEMS // C) // 8 * 8)
    TH = rows if rows <= th_cap else th_cap
    grid = (pl.cdiv(rows, TH),)

    g_arr = jnp.asarray(g_idx, dtype=jnp.int32).reshape((1,))

    grid_spec = pltpu.PrefetchScalarGridSpec(
        num_scalar_prefetch=1,
        grid=grid,
        in_specs=[
            pl.BlockSpec((TH, C), lambda i, g: (i, 0)),        # delta tile
            # Both v_old slots for the same row tile.  Default double
            # buffering already hides the DMA at this tile size; bump to
            # pipeline_mode=pl.Buffered(3) only if profiling shows exposed
            # v_old DMA latency (it moves 2x the bytes of delta).
            pl.BlockSpec((2, TH, C), lambda i, g: (0, i, 0)),
        ],
        out_specs=pl.BlockSpec((TH, C), lambda i, g: (i, 0)),
    )

    out2 = pl.pallas_call(
        _perf_value_kernel,
        out_shape=jax.ShapeDtypeStruct((rows, C), delta.dtype),
        grid_spec=grid_spec,
        # Tiles are independent -> "parallel" lets v7x shard the grid across
        # its two TensorCores (roughly 2x HBM bandwidth for this mem-bound op).
        compiler_params=pltpu.CompilerParams(
            dimension_semantics=("parallel",)),
    )(g_arr, delta2, v2)

    return out2.reshape(orig_shape)


if __name__ == "__main__":
    key = jax.random.PRNGKey(0)
    k_delta, k_v = jax.random.split(key)

    # Big enough to exercise the tiled, double-buffered path (multi-step grid:
    # rows=512, TH=256 -> 2 tiles), small enough for a quick self-test
    # (~2 MiB per array).
    H, W = 512, 1024
    delta = jax.random.normal(k_delta, (H, W), dtype=jnp.float32)
    v_old = jax.random.normal(k_v, (2, H, W), dtype=jnp.float32)
    G_idx = 1  # select v_old[1] - v_old[0]

    out = perf_value(delta, v_old, G_idx)
    out = jax.block_until_ready(out)

    # Pure-JAX reference (same semantics as the PyTorch module).
    ref = delta * (v_old[G_idx] - v_old[(G_idx + 1) % 2])
    assert out.shape == ref.shape and out.dtype == ref.dtype
    assert jnp.allclose(out, ref, atol=1e-6, rtol=1e-6)

    # Also verify the G_idx = 0 branch (sign flip) through the same kernel.
    out0 = jax.block_until_ready(perf_value(delta, v_old, 0))
    ref0 = delta * (v_old[0] - v_old[1])
    assert jnp.allclose(out0, ref0, atol=1e-6, rtol=1e-6)

    print("KERNEL_OK")
</pallas_src>

<mosaic_0001>
module attributes {stable_mosaic.version = 11 : i64} {
  func.func @_perf_value_kernel(%arg0: i32, %arg1: memref<1xi32, #tpu.memory_space<smem>>, %arg2: memref<256x1024xf32, #tpu.memory_space<vmem>>, %arg3: memref<2x256x1024xf32, #tpu.memory_space<vmem>>, %arg4: memref<256x1024xf32, #tpu.memory_space<vmem>>) attributes {dimension_semantics = [#tpu.dimension_semantics<parallel>], iteration_bounds = array<i64: 2>, scalar_prefetch = 1 : i64, scratch_operands = 0 : i64, tpu.core_type = #tpu.core_type<tc>, window_params = [{transform_indices = @transform_0, window_bounds = array<i64: 256, 1024>}, {transform_indices = @transform_1, window_bounds = array<i64: 2, 256, 1024>}, {transform_indices = @transform_2, window_bounds = array<i64: 256, 1024>}]} {
    %c0 = arith.constant 0 : index
    %0 = memref.load %arg1[%c0] : memref<1xi32, #tpu.memory_space<smem>>
    %c2_i32 = arith.constant 2 : i32
    %1 = arith.muli %c2_i32, %0 : i32
    %c1_i32 = arith.constant 1 : i32
    %2 = arith.subi %1, %c1_i32 : i32
    %3 = arith.sitofp %2 : i32 to f32
    %c0_0 = arith.constant 0 : index
    %c0_1 = arith.constant 0 : index
    %4 = vector.load %arg2[%c0_0, %c0_1] : memref<256x1024xf32, #tpu.memory_space<vmem>>, vector<256x1024xf32>
    %c1 = arith.constant 1 : index
    %c0_2 = arith.constant 0 : index
    %c0_3 = arith.constant 0 : index
    %5 = vector.load %arg3[%c1, %c0_2, %c0_3] : memref<2x256x1024xf32, #tpu.memory_space<vmem>>, vector<1x256x1024xf32>
    %6 = vector.shape_cast %5 : vector<1x256x1024xf32> to vector<256x1024xf32>
    %c0_4 = arith.constant 0 : index
    %c0_5 = arith.constant 0 : index
    %c0_6 = arith.constant 0 : index
    %7 = vector.load %arg3[%c0_4, %c0_5, %c0_6] : memref<2x256x1024xf32, #tpu.memory_space<vmem>>, vector<1x256x1024xf32>
    %8 = vector.shape_cast %7 : vector<1x256x1024xf32> to vector<256x1024xf32>
    %9 = arith.subf %6, %8 : vector<256x1024xf32>
    %10 = arith.mulf %4, %9 : vector<256x1024xf32>
    %11 = vector.broadcast %3 : f32 to vector<256x1024xf32>
    %12 = arith.mulf %10, %11 : vector<256x1024xf32>
    %c0_7 = arith.constant 0 : index
    %c0_8 = arith.constant 0 : index
    %13 = vector.load %arg4[%c0_7, %c0_8] : memref<256x1024xf32, #tpu.memory_space<vmem>>, vector<256x1024xf32>
    tpu.vector_store %arg4[%c0_7, %c0_8], %12 {strides = array<i32>} : memref<256x1024xf32, #tpu.memory_space<vmem>>, vector<256x1024xf32>,
    return
  }
  func.func @transform_0(%arg0: i32, %arg1: memref<1xi32, #tpu.memory_space<smem>>) -> (i32, i32) {
    %c0_i32 = arith.constant 0 : i32
    %c0_i32_0 = arith.constant 0 : i32
    return %arg0, %c0_i32 : i32, i32
  }
  func.func @transform_1(%arg0: i32, %arg1: memref<1xi32, #tpu.memory_space<smem>>) -> (i32, i32, i32) {
    %c0_i32 = arith.constant 0 : i32
    %c0_i32_0 = arith.constant 0 : i32
    %c0_i32_1 = arith.constant 0 : i32
    return %c0_i32, %arg0, %c0_i32_0 : i32, i32, i32
  }
  func.func @transform_2(%arg0: i32, %arg1: memref<1xi32, #tpu.memory_space<smem>>) -> (i32, i32) {
    %c0_i32 = arith.constant 0 : i32
    %c0_i32_0 = arith.constant 0 : i32
    return %arg0, %c0_i32 : i32, i32
  }
}

</mosaic_0001>

<bundles_post_ra>
// kernel: tpu_custom_call.1
= control target key start
LH: loop header
LB: loop body
LE: loop exit
PB: predicated region body
PF: predicated region fallthrough
CT: control target
= control target key end

     0   :  { %s4099_s0 = inlined_call_operand.<no memory space> [shape: s32[1], index: 0, kind: input, shape index: {}]   ;;  %s4100_s1 = inlined_call_operand.hbm [shape: f32[512,1024], index: 1, kind: input, shape index: {}]   ;;  %s4101_s2 = inlined_call_operand.hbm [shape: f32[2,512,1024], index: 2, kind: input, shape index: {}]   ;;  %s4102_s3 = inlined_call_operand.hbm [shape: f32[512,1024], index: 3, kind: output, shape index: {}]  }
   0x1   :  { %8 = sst [smem:[#allocation3]] %s4099_s0 }
   0x2   :  { %9 = vsyncpa [#allocation5], 0 }
   0x3   :  { %11 = vsyncpa [#allocation5 + $0x1], 0 }
   0x4   :  { %12 = vsyncpa [#allocation8], 0 }
   0x5   :  { %14 = vsyncpa [#allocation8 + $0x1], 0 }
   0x6   :  { %15 = vsyncpa [#allocation6], 0 }
   0x7   :  { %17 = vsyncpa [#allocation6 + $0x1], 0  ;;  %s2621_s14 = smov 0   ;;  %s2623_s15 = smov 0  }
   0x8   :  { %s2625_s16 = smov 0   ;;  %s2627_s17 = smov 0  }
   0x9 LB: > { %s2642_s0 = sadd.s32 4294967295, %s2584_s17   ;;  %s2143_s18 = sadd.s32 4294967294, %s2584_s17   ;;  %s2584_s17 = sphi %s2627_s17, %s4115_s17   ;;  %s2580_s16 = sphi %s2625_s16, %s4114_s16   ;;  %s2576_s15 = sphi %s2623_s15, %s4113_s15   ;;  %s2572_s14 = sphi %s2621_s14, %s4112_s14  }
   0xa   : > { %s2646_s19 = sadd.s32 1, %s2584_s17   ;;  %s30_s20 = sadd.s32 1, %s2580_s16 }
   0xb   : > { %s27_s21 = ssub.s32 %s2584_s17, %s2646_s19  ;;  %p37_p0 = scmp.ne.s32.totalorder %s2580_s16, %s2576_s15 }
   0xc   : > { %p28_p1 = scmp.eq.s32.totalorder %s27_s21, 0  ;;  %p38_p2 = scmp.eq.s32.totalorder %s2584_s17, 0 }
   0xd   : > { %p43_p3 = scmp.ne.s32.totalorder %s2576_s15, %s2572_s14  ;;  %p44_p4 = scmp.eq.s32.totalorder %s2642_s0, 0 }
   0xe   : > { %s2658_s22 = scalar_select %p28_p1, %s2580_s16, %s30_s20  }
   0xf   : > { %p2660_p5 = por %p38_p2, %p37_p0  ;;  %p2664_p6 = por %p44_p4, %p43_p3 }
  0x10   : > { %p93_p7 = scmp.eq.s32.totalorder %s2642_s0, 1  ;;  %p99_p8 = scmp.eq.s32.totalorder %s2143_s18, 1 }
  0x11   : > { %p4103_p11 = scmp.ge.s32.totalorder %s2584_s17, 2 }
  0x12   : > { %p2669_p9 = por %p93_p7, %p37_p0  ;;  %p2673_p10 = por %p99_p8, %p43_p3 }
  0x13   : > { %115 = sbr.rel (%p4103_p11) target bundleno = 59 (0x3b), region = 16  ;;  %s2681_s27 = sand.u32 (!%p4103_p11), 1, %s2580_s16  }
  0x14   : > { %s4107_s25 = scalar_select %p2669_p9, 1, 0 }
  0x15   : > { %s4108_s26 = scalar_select %p2673_p10, 1, 0 }
  0x16   : > { %s2425_s28 = sshll.u32 (!%p4103_p11), %s2584_s17, 15  ;;  %s2146_s29 = sshll.u32 (!%p4103_p11), %s2681_s27, 11 }
  0x17   : > { %s2690_s5 = scalar_lea.hbm (!%p4103_p11), %s4100_s1, %s2425_s28  ;;  %s123_s6 = scalar_lea.vmem (!%p4103_p11), [#allocation4], %s2146_s29 }
  0x18   : > { %s131_s7 = sshll.u32 %s123_s6, 4  ;;  %s120_s8 = scalar_lea.sflag [#allocation5], %s2681_s27  ;;  %s2692_s7 = int_to_ptr.vmem [resolvable:$true] %s131_s7 }
  0x19   : > { %s2490_s9 = scalar_lea.hbm %s2690_s5, 32768  ;;  %s2494_s12 = scalar_lea.hbm %s4100_s1, 65536 }
  0x1a   : > { %p2491_p12 = scmp.ne.s32.totalorder %s2690_s5, %s2490_s9  ;;  %p2495_p1 = scmp.lt.s32.totalorder %s2690_s5, %s4100_s1 }
  0x1b   : > { %p2496_p2 = scmp.lt.s32.totalorder %s2494_s12, %s2490_s9 }
  0x1c   : > { %p2492_p13 = pnand %p2491_p12, %p2660_p5 }
  0x1d   : > { %p2497_p3 = por %p2496_p2, %p2495_p1 }
  0x1e   : > { %p2493_p0 = pneg %p2492_p13 }
  0x20   : > { %p2498_p4 = pnand %p2497_p3, %p2493_p0 }
  0x22   : > { %2501 = shalt.err (!%p2498_p4)
}
  0x23   : > { %s2502_s20 = scalar_lea.vmem %s2692_s7, 32768  ;;  %s2586_s21 = smov [#allocation4]  }
  0x24   : > { %p2503_p7 = scmp.ne.s32.totalorder %s2692_s7, %s2502_s20  ;;  %s2506_s29 = sshll.u32 %s2586_s21, 4  ;;  %s2507_s29 = int_to_ptr.vmem [resolvable:$false] %s2506_s29 }
  0x25   : > { %s2508_s30 = scalar_lea.vmem %s2507_s29, 65536  ;;  %p2509_p13 = scmp.lt.s32.totalorder %s2692_s7, %s2507_s29 }
  0x26   : > { %p2504_p8 = pnand %p2503_p7, %p2660_p5  ;;  %p2510_p11 = scmp.lt.s32.totalorder %s2508_s30, %s2502_s20 }
  0x28   : > { %p2505_p12 = pneg %p2504_p8  ;;  %p2511_p10 = por %p2510_p11, %p2509_p13 }
  0x2a   : > { %p2512_p9 = pnand %p2511_p10, %p2505_p12 }
  0x2c   : > { %2515 = shalt.err (!%p2512_p9)
}
  0x2d   : > { %s2587_s4 = smov 1024   ;;  %s2588_s6 = smov 64  }
  0x2e   : > { %2430 = dma.hbm_to_vmem [thread:$0]  (%p2660_p5), %s2690_s5, 32768, %s2692_s7, %s120_s8, %s2587_s4, %s2587_s4, %s2588_s6  }
  0x2f   : > { %s2150_s9 = sshll.u32 %s2681_s27, 12  ;;  %s152_s12 = scalar_lea.hbm %s4101_s2, %s2425_s28 }
  0x30   : > { %s2431_s13 = scalar_select %p2660_p5, [#allocation0], [#allocation12] }
  0x31   : > { %s145_s18 = scalar_lea.vmem [#allocation7], %s2150_s9  ;;  %s2589_s7 = smov 65536  }
  0x32   : > { %s165_s20 = sshll.u32 %s145_s18, 4  ;;  %s157_s5 = sld [smem:[%s2431_s13]]   ;;  %s166_s20 = int_to_ptr.vmem [resolvable:$true] %s165_s20 }
  0x33   : > { %2432 = sst [smem:[#allocation11]] (%p2660_p5), %s2589_s7  ;;  %s2590_s8 = smov 32768  }
  0x34   : > { %2433 = sst [smem:[#allocation11 + $0x1]] (%p2660_p5), %s2590_s8  ;;  %s2591_s21 = smov 32  }
  0x35   : > { %2434 = sst [smem:[#allocation11 + $0x2]] (%p2660_p5), %s2591_s21  ;;  %s2592_s29 = smov 1024  }
  0x36   : > { %2435 = sst [smem:[#allocation11 + $0x3]] (%p2660_p5), %s2592_s29  ;;  %s2593_s30 = smov 64  }
  0x37   : > { %2436 = sst [smem:[#allocation11 + $0x4]] (%p2660_p5), %s2592_s29  ;;  %s142_s6 = scalar_lea.sflag [#allocation8], %s2681_s27 }
  0x38   : > { %s2154_s28 = sshll.u32 %s157_s5, 26  ;;  %2437 = sst [smem:[#allocation11 + $0x5]] (%p2660_p5), %s2593_s30 }
  0x39   : > { %s2155_s4 = sadd.s32 134217728, %s2154_s28  ;;  %s2594_s9 = smov 131072  }
  0x3a   : > { %2438 = dma.general (%p2660_p5), %s152_s12, 65536, %s166_s20, %s142_s6, %s2594_s9, [#allocation11], %s2155_s4, 0  }
  0x3b PF: > { %p2156_p9 = scmp.ge.s32.totalorder %s2584_s17, 1  ;;  %p186_p10 = scmp.lt.s32.totalorder %s2584_s17, 3 }
  0x3d   : > { %p187_p11 = pnand %p2156_p9, %p186_p10 }
  0x3e   : > { %s2743_s10 = sand.u32 (!%p187_p11), 1, %s2576_s15  }
  0x3f   : > { %190 = sbr.rel (%p187_p11) target bundleno = 377 (0x179), region = 28  ;;  %s2157_s11 = sshll.u32 (!%p187_p11), %s2743_s10, 11 }
  0x40   : > { %s193_s13 = scalar_lea.sflag (!%p187_p11), [#allocation5], %s2743_s10  ;;  %s2749_s27 = scalar_lea.vmem (!%p187_p11), [#allocation4], %s2157_s11 }
  0x44   : > { %2559 = dma.done.wait (%p2664_p6), %s193_s13, 32768  }
  0x45   : > { %2561 = vsyncadd (%p2664_p6), %s193_s13, 4294934528  ;;  %s2158_s23 = sshll.u32 %s2743_s10, 12  ;;  %s202_s12 = scalar_lea.sflag [#allocation8], %s2743_s10 }
  0x46   : > { %s2757_s18 = scalar_lea.vmem [#allocation7], %s2158_s23 }
  0x47   : > { %2563 = dma.done.wait (%p2664_p6), %s202_s12, 65536  }
  0x48   : > { %2565 = vsyncadd (%p2664_p6), %s202_s12, 4294901760  ;;  %s234_s20 = sld [smem:[#allocation3]]  ;;  %v238_v0 = vld [vmem:[%s2749_s27] sm:$0xff]  ;;  %v239_v4 = vld [vmem:[%s2749_s27 + $0x8] sm:$0xff]  ;;  %s2790_s8 = scalar_lea.vmem [#allocation9], %s2157_s11 }
  0x49   : > { %v2162_v1 = vld [vmem:[%s2757_s18 + $0x800] sm:$0xff]  ;;  %v2163_v5 = vld [vmem:[%s2757_s18 + $0x808] sm:$0xff]  ;;  %v240_v8 = vld [vmem:[%s2749_s27 + $0x10] sm:$0xff]  ;;  %s2429_s21 = sshll.u32 %s2642_s0, 15  ;;  %s2047_s29 = sshll.u32 %s2790_s8, 4  ;;  %s4052_s29 = int_to_ptr.vmem [resolvable:$true] %s2047_s29 }
  0x4a   : > { %v751_v2 = vld [vmem:[%s2757_s18] sm:$0xff]  ;;  %v752_v6 = vld [vmem:[%s2757_s18 + $0x8] sm:$0xff]  ;;  %v2164_v9 = vld [vmem:[%s2757_s18 + $0x810] sm:$0xff]  ;;  %s4050_s4 = scalar_lea.hbm %s4102_s3, %s2429_s21  ;;  %s2033_s0 = scalar_lea.sflag [#allocation6], %s2743_s10 }
  0x4b   : > { %v1007_v3 = vsub.f32 %v2162_v1, %v751_v2  ;;  %v1008_v7 = vsub.f32 %v2163_v5, %v752_v6  ;;  %v753_v10 = vld [vmem:[%s2757_s18 + $0x10] sm:$0xff]  ;;  %v241_v13 = vld [vmem:[%s2749_s27 + $0x18] sm:$0xff]  ;;  %v242_v19 = vld [vmem:[%s2749_s27 + $0x20] sm:$0xff]  ;;  %s2516_s6 = scalar_lea.vmem %s4052_s29, 32768  ;;  %p4109_p6 = scmp.ne.s32.totalorder %s4107_s25, 0 }
  0x4c   : > { %v1009_v12 = vsub.f32 %v2164_v9, %v753_v10  ;;  %v2165_v14 = vld [vmem:[%s2757_s18 + $0x818] sm:$0xff]  ;;  %v2166_v20 = vld [vmem:[%s2757_s18 + $0x820] sm:$0xff]  ;;  %v243_v25 = vld [vmem:[%s2749_s27 + $0x28] sm:$0xff]  ;;  %p2517_p5 = scmp.ne.s32.totalorder %s4052_s29, %s2516_s6  ;;  %s2595_s9 = smov [#allocation9]  }
  0x4d   : > { %v1263_v11 = vmul.f32 %v1007_v3, %v238_v0  ;;  %v754_v15 = vld [vmem:[%s2757_s18 + $0x18] sm:$0xff]  ;;  %v1264_v17 = vmul.f32 %v1008_v7, %v239_v4  ;;  %v755_v21 = vld [vmem:[%s2757_s18 + $0x20] sm:$0xff]  ;;  %v2167_v26 = vld [vmem:[%s2757_s18 + $0x828] sm:$0xff]  ;;  %s2520_s11 = sshll.u32 %s2595_s9, 4  ;;  %s2521_s11 = int_to_ptr.vmem [resolvable:$false] %s2520_s11 }
  0x4e   : > { %s2160_s5 = sshll.u32 %s234_s20, 1  ;;  %v1010_v18 = vsub.f32 %v2165_v14, %v754_v15  ;;  %v1265_v23 = vmul.f32 %v1009_v12, %v240_v8  ;;  %v1011_v24 = vsub.f32 %v2166_v20, %v755_v21  ;;  %v756_v27 = vld [vmem:[%s2757_s18 + $0x28] sm:$0xff]  ;;  %v244_v31 = vld [vmem:[%s2749_s27 + $0x30] sm:$0xff]  ;;  %v245_v37 = vld [vmem:[%s2749_s27 + $0x38] sm:$0xff]  ;;  %p2518_p0 = pnand %p2517_p5, %p4109_p6 }
  0x4f   : > { %s2161_s7 = sadd.s32 4294967295, %s2160_s5  ;;  %v1012_v30 = vsub.f32 %v2167_v26, %v756_v27  ;;  %v2168_v32 = vld [vmem:[%s2757_s18 + $0x830] sm:$0xff]  ;;  %v2169_v38 = vld [vmem:[%s2757_s18 + $0x838] sm:$0xff]  ;;  %v246_v43 = vld [vmem:[%s2749_s27 + $0x40] sm:$0xff]  ;;  %s2522_s13 = scalar_lea.vmem %s2521_s11, 65536 }
  0x50   : > { %s237_s24 = scvt.s32.f32 %s2161_s7  ;;  %v1266_v29 = vmul.f32 %v1010_v18, %v241_v13  ;;  %v757_v33 = vld [vmem:[%s2757_s18 + $0x30] sm:$0xff]  ;;  %v1267_v35 = vmul.f32 %v1011_v24, %v242_v19  ;;  %v758_v39 = vld [vmem:[%s2757_s18 + $0x38] sm:$0xff]  ;;  %v2170_v44 = vld [vmem:[%s2757_s18 + $0x840] sm:$0xff]  ;;  %p2519_p1 = pneg %p2518_p0 }
  0x51   : > { %v1013_v36 = vsub.f32 %v2168_v32, %v757_v33  ;;  %v1268_v41 = vmul.f32 %v1012_v30, %v243_v25  ;;  %v1014_v42 = vsub.f32 %v2169_v38, %v758_v39  ;;  %v759_v45 = vld [vmem:[%s2757_s18 + $0x40] sm:$0xff]  ;;  %v247_v49 = vld [vmem:[%s2749_s27 + $0x48] sm:$0xff]  ;;  %v248_v55 = vld [vmem:[%s2749_s27 + $0x50] sm:$0xff]  ;;  %p2523_p2 = scmp.lt.s32.totalorder %s4052_s29, %s2521_s11  ;;  %p2524_p3 = scmp.lt.s32.totalorder %s2522_s13, %s2516_s6 }
  0x52   : > { %v2775_v16 = vstv %s237_s24  ;;  %v1015_v48 = vsub.f32 %v2170_v44, %v759_v45  ;;  %v2171_v50 = vld [vmem:[%s2757_s18 + $0x848] sm:$0xff]  ;;  %v2172_v56 = vld [vmem:[%s2757_s18 + $0x850] sm:$0xff]  ;;  %v249_v61 = vld [vmem:[%s2749_s27 + $0x58] sm:$0xff] }
  0x53   : > { %v1520_v22 = vmul.f32 %v2775_v16, %v1263_v11  ;;  %v1521_v28 = vmul.f32 %v2775_v16, %v1264_v17  ;;  %v1522_v34 = vmul.f32 %v2775_v16, %v1265_v23  ;;  %v1523_v40 = vmul.f32 %v2775_v16, %v1266_v29  ;;  %v760_v51 = vld [vmem:[%s2757_s18 + $0x48] sm:$0xff]  ;;  %v761_v57 = vld [vmem:[%s2757_s18 + $0x50] sm:$0xff]  ;;  %v2173_v62 = vld [vmem:[%s2757_s18 + $0x858] sm:$0xff]  ;;  %p2525_p4 = por %p2524_p3, %p2523_p2 }
  0x54   : > { %v1524_v46 = vmul.f32 %v2775_v16, %v1267_v35  ;;  %v1269_v47 = vmul.f32 %v1013_v36, %v244_v31  ;;  %v1525_v52 = vmul.f32 %v2775_v16, %v1268_v41  ;;  %v1270_v53 = vmul.f32 %v1014_v42, %v245_v37  ;;  %v762_v63 = vld [vmem:[%s2757_s18 + $0x58] sm:$0xff]  ;;  %v250_v3 = vld [vmem:[%s2749_s27 + $0x60] sm:$0xff]  ;;  %v251_v9 = vld [vmem:[%s2749_s27 + $0x68] sm:$0xff] }
  0x55   : > { %1776 = vst [vmem:[%s2790_s8] sm:$0xff] %v1520_v22  ;;  %1777 = vst [vmem:[%s2790_s8 + $0x8] sm:$0xff] %v1521_v28  ;;  %v1016_v54 = vsub.f32 %v2171_v50, %v760_v51  ;;  %v1271_v59 = vmul.f32 %v1015_v48, %v246_v43  ;;  %v1017_v60 = vsub.f32 %v2172_v56, %v761_v57  ;;  %v2174_v4 = vld [vmem:[%s2757_s18 + $0x860] sm:$0xff]  ;;  %v2175_v10 = vld [vmem:[%s2757_s18 + $0x868] sm:$0xff]  ;;  %p2526_p7 = pnand %p2525_p4, %p2519_p1 }
  0x56   : > { %1778 = vst [vmem:[%s2790_s8 + $0x10] sm:$0xff] %v1522_v34  ;;  %1779 = vst [vmem:[%s2790_s8 + $0x18] sm:$0xff] %v1523_v40  ;;  %v1526_v58 = vmul.f32 %v2775_v16, %v1269_v47  ;;  %v1527_v0 = vmul.f32 %v2775_v16, %v1270_v53  ;;  %v1018_v2 = vsub.f32 %v2173_v62, %v762_v63  ;;  %v763_v5 = vld [vmem:[%s2757_s18 + $0x60] sm:$0xff]  ;;  %v764_v11 = vld [vmem:[%s2757_s18 + $0x68] sm:$0xff] }
  0x57   : > { %1780 = vst [vmem:[%s2790_s8 + $0x20] sm:$0xff] %v1524_v46  ;;  %1781 = vst [vmem:[%s2790_s8 + $0x28] sm:$0xff] %v1525_v52  ;;  %v1272_v1 = vmul.f32 %v1016_v54, %v247_v49  ;;  %v1528_v6 = vmul.f32 %v2775_v16, %v1271_v59  ;;  %v1273_v7 = vmul.f32 %v1017_v60, %v248_v55  ;;  %v252_v15 = vld [vmem:[%s2749_s27 + $0x70] sm:$0xff]  ;;  %v253_v22 = vld [vmem:[%s2749_s27 + $0x78] sm:$0xff] }
  0x58   : > { %1782 = vst [vmem:[%s2790_s8 + $0x30] sm:$0xff] %v1526_v58  ;;  %v1019_v8 = vsub.f32 %v2174_v4, %v763_v5  ;;  %1783 = vst [vmem:[%s2790_s8 + $0x38] sm:$0xff] %v1527_v0  ;;  %v1274_v13 = vmul.f32 %v1018_v2, %v249_v61  ;;  %v1020_v14 = vsub.f32 %v2175_v10, %v764_v11  ;;  %v2176_v17 = vld [vmem:[%s2757_s18 + $0x870] sm:$0xff]  ;;  %v2177_v23 = vld [vmem:[%s2757_s18 + $0x878] sm:$0xff] }
  0x59   : > { %v1529_v12 = vmul.f32 %v2775_v16, %v1272_v1  ;;  %v765_v18 = vld [vmem:[%s2757_s18 + $0x70] sm:$0xff]  ;;  %1784 = vst [vmem:[%s2790_s8 + $0x40] sm:$0xff] %v1528_v6  ;;  %v1530_v19 = vmul.f32 %v2775_v16, %v1273_v7  ;;  %v766_v24 = vld [vmem:[%s2757_s18 + $0x78] sm:$0xff]  ;;  %v254_v28 = vld [vmem:[%s2749_s27 + $0x80] sm:$0xff] }
  0x5a   : > { %v1275_v20 = vmul.f32 %v1019_v8, %v250_v3  ;;  %v1021_v21 = vsub.f32 %v2176_v17, %v765_v18  ;;  %v1531_v25 = vmul.f32 %v2775_v16, %v1274_v13  ;;  %v1276_v26 = vmul.f32 %v1020_v14, %v251_v9  ;;  %v2178_v29 = vld [vmem:[%s2757_s18 + $0x880] sm:$0xff]  ;;  %v255_v34 = vld [vmem:[%s2749_s27 + $0x88] sm:$0xff]  ;;  %v256_v40 = vld [vmem:[%s2749_s27 + $0x90] sm:$0xff] }
  0x5b   : > { %1785 = vst [vmem:[%s2790_s8 + $0x48] sm:$0xff] %v1529_v12  ;;  %v1022_v27 = vsub.f32 %v2177_v23, %v766_v24  ;;  %v767_v30 = vld [vmem:[%s2757_s18 + $0x80] sm:$0xff]  ;;  %1786 = vst [vmem:[%s2790_s8 + $0x50] sm:$0xff] %v1530_v19  ;;  %v2179_v35 = vld [vmem:[%s2757_s18 + $0x888] sm:$0xff] }
  0x5c   : > { %v1532_v31 = vmul.f32 %v2775_v16, %v1275_v20  ;;  %v1277_v32 = vmul.f32 %v1021_v21, %v252_v15  ;;  %v1023_v33 = vsub.f32 %v2178_v29, %v767_v30  ;;  %v768_v36 = vld [vmem:[%s2757_s18 + $0x88] sm:$0xff]  ;;  %1787 = vst [vmem:[%s2790_s8 + $0x58] sm:$0xff] %v1531_v25  ;;  %v1533_v37 = vmul.f32 %v2775_v16, %v1276_v26  ;;  %v2180_v41 = vld [vmem:[%s2757_s18 + $0x890] sm:$0xff]  ;;  %v257_v46 = vld [vmem:[%s2749_s27 + $0x98] sm:$0xff] }
  0x5d   : > { %v1278_v38 = vmul.f32 %v1022_v27, %v253_v22  ;;  %v1024_v39 = vsub.f32 %v2179_v35, %v768_v36  ;;  %v769_v42 = vld [vmem:[%s2757_s18 + $0x90] sm:$0xff]  ;;  %v2181_v47 = vld [vmem:[%s2757_s18 + $0x898] sm:$0xff]  ;;  %v258_v52 = vld [vmem:[%s2749_s27 + $0xa0] sm:$0xff] }
  0x5e   : > { %1788 = vst [vmem:[%s2790_s8 + $0x60] sm:$0xff] %v1532_v31  ;;  %v1534_v43 = vmul.f32 %v2775_v16, %v1277_v32  ;;  %v1279_v44 = vmul.f32 %v1023_v33, %v254_v28  ;;  %v1025_v45 = vsub.f32 %v2180_v41, %v769_v42  ;;  %v770_v48 = vld [vmem:[%s2757_s18 + $0x98] sm:$0xff]  ;;  %1789 = vst [vmem:[%s2790_s8 + $0x68] sm:$0xff] %v1533_v37  ;;  %v2182_v53 = vld [vmem:[%s2757_s18 + $0x8a0] sm:$0xff] }
  0x5f   : > { %v1535_v49 = vmul.f32 %v2775_v16, %v1278_v38  ;;  %v1280_v50 = vmul.f32 %v1024_v39, %v255_v34  ;;  %v1026_v51 = vsub.f32 %v2181_v47, %v770_v48  ;;  %v771_v54 = vld [vmem:[%s2757_s18 + $0xa0] sm:$0xff]  ;;  %v259_v58 = vld [vmem:[%s2749_s27 + $0xa8] sm:$0xff]  ;;  %v260_v0 = vld [vmem:[%s2749_s27 + $0xb0] sm:$0xff] }
  0x60   : > { %1790 = vst [vmem:[%s2790_s8 + $0x70] sm:$0xff] %v1534_v43  ;;  %v1536_v55 = vmul.f32 %v2775_v16, %v1279_v44  ;;  %v1281_v56 = vmul.f32 %v1025_v45, %v256_v40  ;;  %v1027_v57 = vsub.f32 %v2182_v53, %v771_v54  ;;  %v2183_v59 = vld [vmem:[%s2757_s18 + $0x8a8] sm:$0xff]  ;;  %v2184_v1 = vld [vmem:[%s2757_s18 + $0x8b0] sm:$0xff]  ;;  %v261_v6 = vld [vmem:[%s2749_s27 + $0xb8] sm:$0xff] }
  0x61   : > { %v772_v60 = vld [vmem:[%s2757_s18 + $0xa8] sm:$0xff]  ;;  %1791 = vst [vmem:[%s2790_s8 + $0x78] sm:$0xff] %v1535_v49  ;;  %v1537_v61 = vmul.f32 %v2775_v16, %v1280_v50  ;;  %v1282_v62 = vmul.f32 %v1026_v51, %v257_v46  ;;  %v773_v2 = vld [vmem:[%s2757_s18 + $0xb0] sm:$0xff]  ;;  %v2185_v7 = vld [vmem:[%s2757_s18 + $0x8b8] sm:$0xff] }
  0x62   : > { %v1028_v63 = vsub.f32 %v2183_v59, %v772_v60  ;;  %1792 = vst [vmem:[%s2790_s8 + $0x80] sm:$0xff] %v1536_v55  ;;  %v1538_v3 = vmul.f32 %v2775_v16, %v1281_v56  ;;  %v1283_v4 = vmul.f32 %v1027_v57, %v258_v52  ;;  %v1029_v5 = vsub.f32 %v2184_v1, %v773_v2  ;;  %v774_v8 = vld [vmem:[%s2757_s18 + $0xb8] sm:$0xff]  ;;  %v262_v12 = vld [vmem:[%s2749_s27 + $0xc0] sm:$0xff]  ;;  %v263_v19 = vld [vmem:[%s2749_s27 + $0xc8] sm:$0xff] }
  0x63   : > { %1793 = vst [vmem:[%s2790_s8 + $0x88] sm:$0xff] %v1537_v61  ;;  %v1539_v9 = vmul.f32 %v2775_v16, %v1282_v62  ;;  %v1030_v11 = vsub.f32 %v2185_v7, %v774_v8  ;;  %v2186_v13 = vld [vmem:[%s2757_s18 + $0x8c0] sm:$0xff]  ;;  %v2187_v20 = vld [vmem:[%s2757_s18 + $0x8c8] sm:$0xff]  ;;  %v264_v25 = vld [vmem:[%s2749_s27 + $0xd0] sm:$0xff] }
  0x64   : > { %v1284_v10 = vmul.f32 %v1028_v63, %v259_v58  ;;  %v775_v14 = vld [vmem:[%s2757_s18 + $0xc0] sm:$0xff]  ;;  %1794 = vst [vmem:[%s2790_s8 + $0x90] sm:$0xff] %v1538_v3  ;;  %v1540_v15 = vmul.f32 %v2775_v16, %v1283_v4  ;;  %v1285_v17 = vmul.f32 %v1029_v5, %v260_v0  ;;  %v776_v21 = vld [vmem:[%s2757_s18 + $0xc8] sm:$0xff]  ;;  %v2188_v26 = vld [vmem:[%s2757_s18 + $0x8d0] sm:$0xff] }
  0x65   : > { %v1031_v18 = vsub.f32 %v2186_v13, %v775_v14  ;;  %1795 = vst [vmem:[%s2790_s8 + $0x98] sm:$0xff] %v1539_v9  ;;  %v1286_v23 = vmul.f32 %v1030_v11, %v261_v6  ;;  %v1032_v24 = vsub.f32 %v2187_v20, %v776_v21  ;;  %v777_v27 = vld [vmem:[%s2757_s18 + $0xd0] sm:$0xff]  ;;  %v265_v31 = vld [vmem:[%s2749_s27 + $0xd8] sm:$0xff]  ;;  %v266_v37 = vld [vmem:[%s2749_s27 + $0xe0] sm:$0xff] }
  0x66   : > { %v1541_v22 = vmul.f32 %v2775_v16, %v1284_v10  ;;  %1796 = vst [vmem:[%s2790_s8 + $0xa0] sm:$0xff] %v1540_v15  ;;  %v1542_v28 = vmul.f32 %v2775_v16, %v1285_v17  ;;  %v1033_v30 = vsub.f32 %v2188_v26, %v777_v27  ;;  %v2189_v32 = vld [vmem:[%s2757_s18 + $0x8d8] sm:$0xff]  ;;  %v2190_v38 = vld [vmem:[%s2757_s18 + $0x8e0] sm:$0xff]  ;;  %v267_v43 = vld [vmem:[%s2749_s27 + $0xe8] sm:$0xff] }
  0x67   : > { %v1287_v29 = vmul.f32 %v1031_v18, %v262_v12  ;;  %v778_v33 = vld [vmem:[%s2757_s18 + $0xd8] sm:$0xff]  ;;  %v1543_v34 = vmul.f32 %v2775_v16, %v1286_v23  ;;  %v1288_v35 = vmul.f32 %v1032_v24, %v263_v19  ;;  %v779_v39 = vld [vmem:[%s2757_s18 + $0xe0] sm:$0xff]  ;;  %v2191_v44 = vld [vmem:[%s2757_s18 + $0x8e8] sm:$0xff] }
  0x68   : > { %1797 = vst [vmem:[%s2790_s8 + $0xa8] sm:$0xff] %v1541_v22  ;;  %v1034_v36 = vsub.f32 %v2189_v32, %v778_v33  ;;  %1798 = vst [vmem:[%s2790_s8 + $0xb0] sm:$0xff] %v1542_v28  ;;  %v1289_v41 = vmul.f32 %v1033_v30, %v264_v25  ;;  %v1035_v42 = vsub.f32 %v2190_v38, %v779_v39  ;;  %v780_v45 = vld [vmem:[%s2757_s18 + $0xe8] sm:$0xff]  ;;  %v268_v49 = vld [vmem:[%s2749_s27 + $0xf0] sm:$0xff] }
  0x69   : > { %v1544_v40 = vmul.f32 %v2775_v16, %v1287_v29  ;;  %1799 = vst [vmem:[%s2790_s8 + $0xb8] sm:$0xff] %v1543_v34  ;;  %v1545_v46 = vmul.f32 %v2775_v16, %v1288_v35  ;;  %v1036_v48 = vsub.f32 %v2191_v44, %v780_v45  ;;  %v2192_v50 = vld [vmem:[%s2757_s18 + $0x8f0] sm:$0xff]  ;;  %v269_v55 = vld [vmem:[%s2749_s27 + $0xf8] sm:$0xff]  ;;  %v270_v61 = vld [vmem:[%s2749_s27 + $0x100] sm:$0xff] }
  0x6a   : > { %v1290_v47 = vmul.f32 %v1034_v36, %v265_v31  ;;  %v781_v51 = vld [vmem:[%s2757_s18 + $0xf0] sm:$0xff]  ;;  %v1546_v52 = vmul.f32 %v2775_v16, %v1289_v41  ;;  %v1291_v53 = vmul.f32 %v1035_v42, %v266_v37  ;;  %v2193_v56 = vld [vmem:[%s2757_s18 + $0x8f8] sm:$0xff]  ;;  %v2194_v62 = vld [vmem:[%s2757_s18 + $0x900] sm:$0xff] }
  0x6b   : > { %1800 = vst [vmem:[%s2790_s8 + $0xc0] sm:$0xff] %v1544_v40  ;;  %v1037_v54 = vsub.f32 %v2192_v50, %v781_v51  ;;  %v782_v57 = vld [vmem:[%s2757_s18 + $0xf8] sm:$0xff]  ;;  %1801 = vst [vmem:[%s2790_s8 + $0xc8] sm:$0xff] %v1545_v46  ;;  %v1292_v59 = vmul.f32 %v1036_v48, %v267_v43  ;;  %v783_v63 = vld [vmem:[%s2757_s18 + $0x100] sm:$0xff] }
  0x6c   : > { %v1547_v58 = vmul.f32 %v2775_v16, %v1290_v47  ;;  %v1038_v60 = vsub.f32 %v2193_v56, %v782_v57  ;;  %1802 = vst [vmem:[%s2790_s8 + $0xd0] sm:$0xff] %v1546_v52  ;;  %v1548_v0 = vmul.f32 %v2775_v16, %v1291_v53  ;;  %v1039_v2 = vsub.f32 %v2194_v62, %v783_v63  ;;  %v271_v3 = vld [vmem:[%s2749_s27 + $0x108] sm:$0xff]  ;;  %v272_v9 = vld [vmem:[%s2749_s27 + $0x110] sm:$0xff]  ;;  %v273_v15 = vld [vmem:[%s2749_s27 + $0x118] sm:$0xff] }
  0x6d   : > { %v1293_v1 = vmul.f32 %v1037_v54, %v268_v49  ;;  %v2195_v4 = vld [vmem:[%s2757_s18 + $0x908] sm:$0xff]  ;;  %v1549_v6 = vmul.f32 %v2775_v16, %v1292_v59  ;;  %v2196_v10 = vld [vmem:[%s2757_s18 + $0x910] sm:$0xff]  ;;  %v2197_v17 = vld [vmem:[%s2757_s18 + $0x918] sm:$0xff] }
  0x6e   : > { %v784_v5 = vld [vmem:[%s2757_s18 + $0x108] sm:$0xff]  ;;  %1803 = vst [vmem:[%s2790_s8 + $0xd8] sm:$0xff] %v1547_v58  ;;  %v1294_v7 = vmul.f32 %v1038_v60, %v269_v55  ;;  %v785_v11 = vld [vmem:[%s2757_s18 + $0x110] sm:$0xff]  ;;  %1804 = vst [vmem:[%s2790_s8 + $0xe0] sm:$0xff] %v1548_v0  ;;  %v1295_v13 = vmul.f32 %v1039_v2, %v270_v61 }
  0x6f   : > { %v1040_v8 = vsub.f32 %v2195_v4, %v784_v5  ;;  %v1550_v12 = vmul.f32 %v2775_v16, %v1293_v1  ;;  %v1041_v14 = vsub.f32 %v2196_v10, %v785_v11  ;;  %v786_v18 = vld [vmem:[%s2757_s18 + $0x118] sm:$0xff]  ;;  %1805 = vst [vmem:[%s2790_s8 + $0xe8] sm:$0xff] %v1549_v6  ;;  %v274_v22 = vld [vmem:[%s2749_s27 + $0x120] sm:$0xff]  ;;  %v275_v28 = vld [vmem:[%s2749_s27 + $0x128] sm:$0xff] }
  0x70   : > { %v1551_v19 = vmul.f32 %v2775_v16, %v1294_v7  ;;  %v1042_v21 = vsub.f32 %v2197_v17, %v786_v18  ;;  %v2198_v23 = vld [vmem:[%s2757_s18 + $0x920] sm:$0xff]  ;;  %v1552_v25 = vmul.f32 %v2775_v16, %v1295_v13  ;;  %v2199_v29 = vld [vmem:[%s2757_s18 + $0x928] sm:$0xff]  ;;  %v276_v34 = vld [vmem:[%s2749_s27 + $0x130] sm:$0xff] }
  0x71   : > { %v1296_v20 = vmul.f32 %v1040_v8, %v271_v3  ;;  %v787_v24 = vld [vmem:[%s2757_s18 + $0x120] sm:$0xff]  ;;  %1806 = vst [vmem:[%s2790_s8 + $0xf0] sm:$0xff] %v1550_v12  ;;  %v1297_v26 = vmul.f32 %v1041_v14, %v272_v9  ;;  %v788_v30 = vld [vmem:[%s2757_s18 + $0x128] sm:$0xff]  ;;  %v2200_v35 = vld [vmem:[%s2757_s18 + $0x930] sm:$0xff] }
  0x72   : > { %v1043_v27 = vsub.f32 %v2198_v23, %v787_v24  ;;  %1807 = vst [vmem:[%s2790_s8 + $0xf8] sm:$0xff] %v1551_v19  ;;  %v1298_v32 = vmul.f32 %v1042_v21, %v273_v15  ;;  %v1044_v33 = vsub.f32 %v2199_v29, %v788_v30  ;;  %v789_v36 = vld [vmem:[%s2757_s18 + $0x130] sm:$0xff]  ;;  %1808 = vst [vmem:[%s2790_s8 + $0x100] sm:$0xff] %v1552_v25  ;;  %v277_v40 = vld [vmem:[%s2749_s27 + $0x138] sm:$0xff] }
  0x73   : > { %v1553_v31 = vmul.f32 %v2775_v16, %v1296_v20  ;;  %v1554_v37 = vmul.f32 %v2775_v16, %v1297_v26  ;;  %v1045_v39 = vsub.f32 %v2200_v35, %v789_v36  ;;  %v2201_v41 = vld [vmem:[%s2757_s18 + $0x938] sm:$0xff]  ;;  %v278_v46 = vld [vmem:[%s2749_s27 + $0x140] sm:$0xff]  ;;  %v279_v52 = vld [vmem:[%s2749_s27 + $0x148] sm:$0xff] }
  0x74   : > { %v1299_v38 = vmul.f32 %v1043_v27, %v274_v22  ;;  %v790_v42 = vld [vmem:[%s2757_s18 + $0x138] sm:$0xff]  ;;  %v1555_v43 = vmul.f32 %v2775_v16, %v1298_v32  ;;  %v1300_v44 = vmul.f32 %v1044_v33, %v275_v28  ;;  %v2202_v47 = vld [vmem:[%s2757_s18 + $0x940] sm:$0xff]  ;;  %v2203_v53 = vld [vmem:[%s2757_s18 + $0x948] sm:$0xff] }
  0x75   : > { %1809 = vst [vmem:[%s2790_s8 + $0x108] sm:$0xff] %v1553_v31  ;;  %v1046_v45 = vsub.f32 %v2201_v41, %v790_v42  ;;  %v791_v48 = vld [vmem:[%s2757_s18 + $0x140] sm:$0xff]  ;;  %1810 = vst [vmem:[%s2790_s8 + $0x110] sm:$0xff] %v1554_v37  ;;  %v1301_v50 = vmul.f32 %v1045_v39, %v276_v34  ;;  %v792_v54 = vld [vmem:[%s2757_s18 + $0x148] sm:$0xff] }
  0x76   : > { %v1556_v49 = vmul.f32 %v2775_v16, %v1299_v38  ;;  %v1047_v51 = vsub.f32 %v2202_v47, %v791_v48  ;;  %1811 = vst [vmem:[%s2790_s8 + $0x118] sm:$0xff] %v1555_v43  ;;  %v1557_v55 = vmul.f32 %v2775_v16, %v1300_v44  ;;  %v1048_v57 = vsub.f32 %v2203_v53, %v792_v54  ;;  %v280_v58 = vld [vmem:[%s2749_s27 + $0x150] sm:$0xff]  ;;  %v281_v0 = vld [vmem:[%s2749_s27 + $0x158] sm:$0xff]  ;;  %v282_v6 = vld [vmem:[%s2749_s27 + $0x160] sm:$0xff] }
  0x77   : > { %v1302_v56 = vmul.f32 %v1046_v45, %v277_v40  ;;  %v2204_v59 = vld [vmem:[%s2757_s18 + $0x950] sm:$0xff]  ;;  %v1558_v61 = vmul.f32 %v2775_v16, %v1301_v50  ;;  %v2205_v1 = vld [vmem:[%s2757_s18 + $0x958] sm:$0xff]  ;;  %v2206_v7 = vld [vmem:[%s2757_s18 + $0x960] sm:$0xff] }
  0x78   : > { %v793_v60 = vld [vmem:[%s2757_s18 + $0x150] sm:$0xff]  ;;  %1812 = vst [vmem:[%s2790_s8 + $0x120] sm:$0xff] %v1556_v49  ;;  %v1303_v62 = vmul.f32 %v1047_v51, %v278_v46  ;;  %v794_v2 = vld [vmem:[%s2757_s18 + $0x158] sm:$0xff]  ;;  %1813 = vst [vmem:[%s2790_s8 + $0x128] sm:$0xff] %v1557_v55  ;;  %v1304_v4 = vmul.f32 %v1048_v57, %v279_v52 }
  0x79   : > { %v1049_v63 = vsub.f32 %v2204_v59, %v793_v60  ;;  %v1559_v3 = vmul.f32 %v2775_v16, %v1302_v56  ;;  %v1050_v5 = vsub.f32 %v2205_v1, %v794_v2  ;;  %v795_v8 = vld [vmem:[%s2757_s18 + $0x160] sm:$0xff]  ;;  %1814 = vst [vmem:[%s2790_s8 + $0x130] sm:$0xff] %v1558_v61  ;;  %v283_v12 = vld [vmem:[%s2749_s27 + $0x168] sm:$0xff]  ;;  %v284_v19 = vld [vmem:[%s2749_s27 + $0x170] sm:$0xff] }
  0x7a   : > { %v1560_v9 = vmul.f32 %v2775_v16, %v1303_v62  ;;  %v1051_v11 = vsub.f32 %v2206_v7, %v795_v8  ;;  %v2207_v13 = vld [vmem:[%s2757_s18 + $0x968] sm:$0xff]  ;;  %v1561_v15 = vmul.f32 %v2775_v16, %v1304_v4  ;;  %v2208_v20 = vld [vmem:[%s2757_s18 + $0x970] sm:$0xff]  ;;  %v285_v25 = vld [vmem:[%s2749_s27 + $0x178] sm:$0xff] }
  0x7b   : > { %v1305_v10 = vmul.f32 %v1049_v63, %v280_v58  ;;  %v796_v14 = vld [vmem:[%s2757_s18 + $0x168] sm:$0xff]  ;;  %1815 = vst [vmem:[%s2790_s8 + $0x138] sm:$0xff] %v1559_v3  ;;  %v1306_v17 = vmul.f32 %v1050_v5, %v281_v0  ;;  %v797_v21 = vld [vmem:[%s2757_s18 + $0x170] sm:$0xff]  ;;  %v2209_v26 = vld [vmem:[%s2757_s18 + $0x978] sm:$0xff] }
  0x7c   : > { %v1052_v18 = vsub.f32 %v2207_v13, %v796_v14  ;;  %1816 = vst [vmem:[%s2790_s8 + $0x140] sm:$0xff] %v1560_v9  ;;  %v1307_v23 = vmul.f32 %v1051_v11, %v282_v6  ;;  %v1053_v24 = vsub.f32 %v2208_v20, %v797_v21  ;;  %v798_v27 = vld [vmem:[%s2757_s18 + $0x178] sm:$0xff]  ;;  %1817 = vst [vmem:[%s2790_s8 + $0x148] sm:$0xff] %v1561_v15  ;;  %v286_v31 = vld [vmem:[%s2749_s27 + $0x180] sm:$0xff] }
  0x7d   : > { %v1562_v22 = vmul.f32 %v2775_v16, %v1305_v10  ;;  %v1563_v28 = vmul.f32 %v2775_v16, %v1306_v17  ;;  %v1054_v30 = vsub.f32 %v2209_v26, %v798_v27  ;;  %v2210_v32 = vld [vmem:[%s2757_s18 + $0x980] sm:$0xff]  ;;  %v287_v37 = vld [vmem:[%s2749_s27 + $0x188] sm:$0xff]  ;;  %v288_v43 = vld [vmem:[%s2749_s27 + $0x190] sm:$0xff] }
  0x7e   : > { %v1308_v29 = vmul.f32 %v1052_v18, %v283_v12  ;;  %v799_v33 = vld [vmem:[%s2757_s18 + $0x180] sm:$0xff]  ;;  %v1564_v34 = vmul.f32 %v2775_v16, %v1307_v23  ;;  %v1309_v35 = vmul.f32 %v1053_v24, %v284_v19  ;;  %v2211_v38 = vld [vmem:[%s2757_s18 + $0x988] sm:$0xff]  ;;  %v2212_v44 = vld [vmem:[%s2757_s18 + $0x990] sm:$0xff] }
  0x7f   : > { %1818 = vst [vmem:[%s2790_s8 + $0x150] sm:$0xff] %v1562_v22  ;;  %v1055_v36 = vsub.f32 %v2210_v32, %v799_v33  ;;  %v800_v39 = vld [vmem:[%s2757_s18 + $0x188] sm:$0xff]  ;;  %1819 = vst [vmem:[%s2790_s8 + $0x158] sm:$0xff] %v1563_v28  ;;  %v1310_v41 = vmul.f32 %v1054_v30, %v285_v25  ;;  %v801_v45 = vld [vmem:[%s2757_s18 + $0x190] sm:$0xff] }
  0x80   : > { %v1565_v40 = vmul.f32 %v2775_v16, %v1308_v29  ;;  %v1056_v42 = vsub.f32 %v2211_v38, %v800_v39  ;;  %1820 = vst [vmem:[%s2790_s8 + $0x160] sm:$0xff] %v1564_v34  ;;  %v1566_v46 = vmul.f32 %v2775_v16, %v1309_v35  ;;  %v1057_v48 = vsub.f32 %v2212_v44, %v801_v45  ;;  %v289_v49 = vld [vmem:[%s2749_s27 + $0x198] sm:$0xff]  ;;  %v290_v55 = vld [vmem:[%s2749_s27 + $0x1a0] sm:$0xff]  ;;  %v291_v61 = vld [vmem:[%s2749_s27 + $0x1a8] sm:$0xff] }
  0x81   : > { %v1311_v47 = vmul.f32 %v1055_v36, %v286_v31  ;;  %v2213_v50 = vld [vmem:[%s2757_s18 + $0x998] sm:$0xff]  ;;  %v1567_v52 = vmul.f32 %v2775_v16, %v1310_v41  ;;  %v2214_v56 = vld [vmem:[%s2757_s18 + $0x9a0] sm:$0xff]  ;;  %v2215_v62 = vld [vmem:[%s2757_s18 + $0x9a8] sm:$0xff] }
  0x82   : > { %v802_v51 = vld [vmem:[%s2757_s18 + $0x198] sm:$0xff]  ;;  %1821 = vst [vmem:[%s2790_s8 + $0x168] sm:$0xff] %v1565_v40  ;;  %v1312_v53 = vmul.f32 %v1056_v42, %v287_v37  ;;  %v803_v57 = vld [vmem:[%s2757_s18 + $0x1a0] sm:$0xff]  ;;  %1822 = vst [vmem:[%s2790_s8 + $0x170] sm:$0xff] %v1566_v46  ;;  %v1313_v59 = vmul.f32 %v1057_v48, %v288_v43 }
  0x83   : > { %v1058_v54 = vsub.f32 %v2213_v50, %v802_v51  ;;  %v1568_v58 = vmul.f32 %v2775_v16, %v1311_v47  ;;  %v1059_v60 = vsub.f32 %v2214_v56, %v803_v57  ;;  %v804_v63 = vld [vmem:[%s2757_s18 + $0x1a8] sm:$0xff]  ;;  %1823 = vst [vmem:[%s2790_s8 + $0x178] sm:$0xff] %v1567_v52  ;;  %v292_v3 = vld [vmem:[%s2749_s27 + $0x1b0] sm:$0xff]  ;;  %v293_v9 = vld [vmem:[%s2749_s27 + $0x1b8] sm:$0xff] }
  0x84   : > { %v1569_v0 = vmul.f32 %v2775_v16, %v1312_v53  ;;  %v1060_v2 = vsub.f32 %v2215_v62, %v804_v63  ;;  %v2216_v4 = vld [vmem:[%s2757_s18 + $0x9b0] sm:$0xff]  ;;  %v1570_v6 = vmul.f32 %v2775_v16, %v1313_v59  ;;  %v2217_v10 = vld [vmem:[%s2757_s18 + $0x9b8] sm:$0xff]  ;;  %v294_v15 = vld [vmem:[%s2749_s27 + $0x1c0] sm:$0xff] }
  0x85   : > { %v1314_v1 = vmul.f32 %v1058_v54, %v289_v49  ;;  %v805_v5 = vld [vmem:[%s2757_s18 + $0x1b0] sm:$0xff]  ;;  %1824 = vst [vmem:[%s2790_s8 + $0x180] sm:$0xff] %v1568_v58  ;;  %v1315_v7 = vmul.f32 %v1059_v60, %v290_v55  ;;  %v806_v11 = vld [vmem:[%s2757_s18 + $0x1b8] sm:$0xff]  ;;  %v2218_v17 = vld [vmem:[%s2757_s18 + $0x9c0] sm:$0xff] }
  0x86   : > { %v1061_v8 = vsub.f32 %v2216_v4, %v805_v5  ;;  %1825 = vst [vmem:[%s2790_s8 + $0x188] sm:$0xff] %v1569_v0  ;;  %v1316_v13 = vmul.f32 %v1060_v2, %v291_v61  ;;  %v1062_v14 = vsub.f32 %v2217_v10, %v806_v11  ;;  %v807_v18 = vld [vmem:[%s2757_s18 + $0x1c0] sm:$0xff]  ;;  %1826 = vst [vmem:[%s2790_s8 + $0x190] sm:$0xff] %v1570_v6  ;;  %v295_v22 = vld [vmem:[%s2749_s27 + $0x1c8] sm:$0xff] }
  0x87   : > { %v1571_v12 = vmul.f32 %v2775_v16, %v1314_v1  ;;  %v1572_v19 = vmul.f32 %v2775_v16, %v1315_v7  ;;  %v1063_v21 = vsub.f32 %v2218_v17, %v807_v18  ;;  %v2219_v23 = vld [vmem:[%s2757_s18 + $0x9c8] sm:$0xff]  ;;  %v296_v28 = vld [vmem:[%s2749_s27 + $0x1d0] sm:$0xff]  ;;  %v297_v34 = vld [vmem:[%s2749_s27 + $0x1d8] sm:$0xff] }
  0x88   : > { %v1317_v20 = vmul.f32 %v1061_v8, %v292_v3  ;;  %v808_v24 = vld [vmem:[%s2757_s18 + $0x1c8] sm:$0xff]  ;;  %v1573_v25 = vmul.f32 %v2775_v16, %v1316_v13  ;;  %v1318_v26 = vmul.f32 %v1062_v14, %v293_v9  ;;  %v2220_v29 = vld [vmem:[%s2757_s18 + $0x9d0] sm:$0xff]  ;;  %v2221_v35 = vld [vmem:[%s2757_s18 + $0x9d8] sm:$0xff] }
  0x89   : > { %1827 = vst [vmem:[%s2790_s8 + $0x198] sm:$0xff] %v1571_v12  ;;  %v1064_v27 = vsub.f32 %v2219_v23, %v808_v24  ;;  %v809_v30 = vld [vmem:[%s2757_s18 + $0x1d0] sm:$0xff]  ;;  %1828 = vst [vmem:[%s2790_s8 + $0x1a0] sm:$0xff] %v1572_v19  ;;  %v1319_v32 = vmul.f32 %v1063_v21, %v294_v15  ;;  %v810_v36 = vld [vmem:[%s2757_s18 + $0x1d8] sm:$0xff] }
  0x8a   : > { %v1574_v31 = vmul.f32 %v2775_v16, %v1317_v20  ;;  %v1065_v33 = vsub.f32 %v2220_v29, %v809_v30  ;;  %1829 = vst [vmem:[%s2790_s8 + $0x1a8] sm:$0xff] %v1573_v25  ;;  %v1575_v37 = vmul.f32 %v2775_v16, %v1318_v26  ;;  %v1066_v39 = vsub.f32 %v2221_v35, %v810_v36  ;;  %v298_v40 = vld [vmem:[%s2749_s27 + $0x1e0] sm:$0xff]  ;;  %v299_v46 = vld [vmem:[%s2749_s27 + $0x1e8] sm:$0xff]  ;;  %v300_v52 = vld [vmem:[%s2749_s27 + $0x1f0] sm:$0xff] }
  0x8b   : > { %v1320_v38 = vmul.f32 %v1064_v27, %v295_v22  ;;  %v2222_v41 = vld [vmem:[%s2757_s18 + $0x9e0] sm:$0xff]  ;;  %v1576_v43 = vmul.f32 %v2775_v16, %v1319_v32  ;;  %v2223_v47 = vld [vmem:[%s2757_s18 + $0x9e8] sm:$0xff]  ;;  %v2224_v53 = vld [vmem:[%s2757_s18 + $0x9f0] sm:$0xff] }
  0x8c   : > { %v811_v42 = vld [vmem:[%s2757_s18 + $0x1e0] sm:$0xff]  ;;  %1830 = vst [vmem:[%s2790_s8 + $0x1b0] sm:$0xff] %v1574_v31  ;;  %v1321_v44 = vmul.f32 %v1065_v33, %v296_v28  ;;  %v812_v48 = vld [vmem:[%s2757_s18 + $0x1e8] sm:$0xff]  ;;  %1831 = vst [vmem:[%s2790_s8 + $0x1b8] sm:$0xff] %v1575_v37  ;;  %v1322_v50 = vmul.f32 %v1066_v39, %v297_v34 }
  0x8d   : > { %v1067_v45 = vsub.f32 %v2222_v41, %v811_v42  ;;  %v1577_v49 = vmul.f32 %v2775_v16, %v1320_v38  ;;  %v1068_v51 = vsub.f32 %v2223_v47, %v812_v48  ;;  %v813_v54 = vld [vmem:[%s2757_s18 + $0x1f0] sm:$0xff]  ;;  %1832 = vst [vmem:[%s2790_s8 + $0x1c0] sm:$0xff] %v1576_v43  ;;  %v301_v58 = vld [vmem:[%s2749_s27 + $0x1f8] sm:$0xff]  ;;  %v302_v0 = vld [vmem:[%s2749_s27 + $0x200] sm:$0xff] }
  0x8e   : > { %v1578_v55 = vmul.f32 %v2775_v16, %v1321_v44  ;;  %v1069_v57 = vsub.f32 %v2224_v53, %v813_v54  ;;  %v2225_v59 = vld [vmem:[%s2757_s18 + $0x9f8] sm:$0xff]  ;;  %v1579_v61 = vmul.f32 %v2775_v16, %v1322_v50  ;;  %v2226_v1 = vld [vmem:[%s2757_s18 + $0xa00] sm:$0xff]  ;;  %v303_v6 = vld [vmem:[%s2749_s27 + $0x208] sm:$0xff] }
  0x8f   : > { %v1323_v56 = vmul.f32 %v1067_v45, %v298_v40  ;;  %v814_v60 = vld [vmem:[%s2757_s18 + $0x1f8] sm:$0xff]  ;;  %1833 = vst [vmem:[%s2790_s8 + $0x1c8] sm:$0xff] %v1577_v49  ;;  %v1324_v62 = vmul.f32 %v1068_v51, %v299_v46  ;;  %v815_v2 = vld [vmem:[%s2757_s18 + $0x200] sm:$0xff]  ;;  %v2227_v7 = vld [vmem:[%s2757_s18 + $0xa08] sm:$0xff] }
  0x90   : > { %v1070_v63 = vsub.f32 %v2225_v59, %v814_v60  ;;  %1834 = vst [vmem:[%s2790_s8 + $0x1d0] sm:$0xff] %v1578_v55  ;;  %v1325_v4 = vmul.f32 %v1069_v57, %v300_v52  ;;  %v1071_v5 = vsub.f32 %v2226_v1, %v815_v2  ;;  %v816_v8 = vld [vmem:[%s2757_s18 + $0x208] sm:$0xff]  ;;  %1835 = vst [vmem:[%s2790_s8 + $0x1d8] sm:$0xff] %v1579_v61  ;;  %v304_v12 = vld [vmem:[%s2749_s27 + $0x210] sm:$0xff] }
  0x91   : > { %v1580_v3 = vmul.f32 %v2775_v16, %v1323_v56  ;;  %v1581_v9 = vmul.f32 %v2775_v16, %v1324_v62  ;;  %v1072_v11 = vsub.f32 %v2227_v7, %v816_v8  ;;  %v2228_v13 = vld [vmem:[%s2757_s18 + $0xa10] sm:$0xff]  ;;  %v305_v19 = vld [vmem:[%s2749_s27 + $0x218] sm:$0xff]  ;;  %v306_v25 = vld [vmem:[%s2749_s27 + $0x220] sm:$0xff] }
  0x92   : > { %v1326_v10 = vmul.f32 %v1070_v63, %v301_v58  ;;  %v817_v14 = vld [vmem:[%s2757_s18 + $0x210] sm:$0xff]  ;;  %v1582_v15 = vmul.f32 %v2775_v16, %v1325_v4  ;;  %v1327_v17 = vmul.f32 %v1071_v5, %v302_v0  ;;  %v2229_v20 = vld [vmem:[%s2757_s18 + $0xa18] sm:$0xff]  ;;  %v2230_v26 = vld [vmem:[%s2757_s18 + $0xa20] sm:$0xff] }
  0x93   : > { %1836 = vst [vmem:[%s2790_s8 + $0x1e0] sm:$0xff] %v1580_v3  ;;  %v1073_v18 = vsub.f32 %v2228_v13, %v817_v14  ;;  %v818_v21 = vld [vmem:[%s2757_s18 + $0x218] sm:$0xff]  ;;  %1837 = vst [vmem:[%s2790_s8 + $0x1e8] sm:$0xff] %v1581_v9  ;;  %v1328_v23 = vmul.f32 %v1072_v11, %v303_v6  ;;  %v819_v27 = vld [vmem:[%s2757_s18 + $0x220] sm:$0xff] }
  0x94   : > { %v1583_v22 = vmul.f32 %v2775_v16, %v1326_v10  ;;  %v1074_v24 = vsub.f32 %v2229_v20, %v818_v21  ;;  %1838 = vst [vmem:[%s2790_s8 + $0x1f0] sm:$0xff] %v1582_v15  ;;  %v1584_v28 = vmul.f32 %v2775_v16, %v1327_v17  ;;  %v1075_v30 = vsub.f32 %v2230_v26, %v819_v27  ;;  %v307_v31 = vld [vmem:[%s2749_s27 + $0x228] sm:$0xff]  ;;  %v308_v37 = vld [vmem:[%s2749_s27 + $0x230] sm:$0xff]  ;;  %v309_v43 = vld [vmem:[%s2749_s27 + $0x238] sm:$0xff] }
  0x95   : > { %v1329_v29 = vmul.f32 %v1073_v18, %v304_v12  ;;  %v2231_v32 = vld [vmem:[%s2757_s18 + $0xa28] sm:$0xff]  ;;  %v1585_v34 = vmul.f32 %v2775_v16, %v1328_v23  ;;  %v2232_v38 = vld [vmem:[%s2757_s18 + $0xa30] sm:$0xff]  ;;  %v2233_v44 = vld [vmem:[%s2757_s18 + $0xa38] sm:$0xff] }
  0x96   : > { %v820_v33 = vld [vmem:[%s2757_s18 + $0x228] sm:$0xff]  ;;  %1839 = vst [vmem:[%s2790_s8 + $0x1f8] sm:$0xff] %v1583_v22  ;;  %v1330_v35 = vmul.f32 %v1074_v24, %v305_v19  ;;  %v821_v39 = vld [vmem:[%s2757_s18 + $0x230] sm:$0xff]  ;;  %1840 = vst [vmem:[%s2790_s8 + $0x200] sm:$0xff] %v1584_v28  ;;  %v1331_v41 = vmul.f32 %v1075_v30, %v306_v25 }
  0x97   : > { %v1076_v36 = vsub.f32 %v2231_v32, %v820_v33  ;;  %v1586_v40 = vmul.f32 %v2775_v16, %v1329_v29  ;;  %v1077_v42 = vsub.f32 %v2232_v38, %v821_v39  ;;  %v822_v45 = vld [vmem:[%s2757_s18 + $0x238] sm:$0xff]  ;;  %1841 = vst [vmem:[%s2790_s8 + $0x208] sm:$0xff] %v1585_v34  ;;  %v310_v49 = vld [vmem:[%s2749_s27 + $0x240] sm:$0xff]  ;;  %v311_v55 = vld [vmem:[%s2749_s27 + $0x248] sm:$0xff] }
  0x98   : > { %v1587_v46 = vmul.f32 %v2775_v16, %v1330_v35  ;;  %v1078_v48 = vsub.f32 %v2233_v44, %v822_v45  ;;  %v2234_v50 = vld [vmem:[%s2757_s18 + $0xa40] sm:$0xff]  ;;  %v1588_v52 = vmul.f32 %v2775_v16, %v1331_v41  ;;  %v2235_v56 = vld [vmem:[%s2757_s18 + $0xa48] sm:$0xff]  ;;  %v312_v61 = vld [vmem:[%s2749_s27 + $0x250] sm:$0xff] }
  0x99   : > { %v1332_v47 = vmul.f32 %v1076_v36, %v307_v31  ;;  %v823_v51 = vld [vmem:[%s2757_s18 + $0x240] sm:$0xff]  ;;  %1842 = vst [vmem:[%s2790_s8 + $0x210] sm:$0xff] %v1586_v40  ;;  %v1333_v53 = vmul.f32 %v1077_v42, %v308_v37  ;;  %v824_v57 = vld [vmem:[%s2757_s18 + $0x248] sm:$0xff]  ;;  %v2236_v62 = vld [vmem:[%s2757_s18 + $0xa50] sm:$0xff] }
  0x9a   : > { %v1079_v54 = vsub.f32 %v2234_v50, %v823_v51  ;;  %1843 = vst [vmem:[%s2790_s8 + $0x218] sm:$0xff] %v1587_v46  ;;  %v1334_v59 = vmul.f32 %v1078_v48, %v309_v43  ;;  %v1080_v60 = vsub.f32 %v2235_v56, %v824_v57  ;;  %v825_v63 = vld [vmem:[%s2757_s18 + $0x250] sm:$0xff]  ;;  %1844 = vst [vmem:[%s2790_s8 + $0x220] sm:$0xff] %v1588_v52  ;;  %v313_v3 = vld [vmem:[%s2749_s27 + $0x258] sm:$0xff] }
  0x9b   : > { %v1589_v58 = vmul.f32 %v2775_v16, %v1332_v47  ;;  %v1590_v0 = vmul.f32 %v2775_v16, %v1333_v53  ;;  %v1081_v2 = vsub.f32 %v2236_v62, %v825_v63  ;;  %v2237_v4 = vld [vmem:[%s2757_s18 + $0xa58] sm:$0xff]  ;;  %v314_v9 = vld [vmem:[%s2749_s27 + $0x260] sm:$0xff]  ;;  %v315_v15 = vld [vmem:[%s2749_s27 + $0x268] sm:$0xff] }
  0x9c   : > { %v1335_v1 = vmul.f32 %v1079_v54, %v310_v49  ;;  %v826_v5 = vld [vmem:[%s2757_s18 + $0x258] sm:$0xff]  ;;  %v1591_v6 = vmul.f32 %v2775_v16, %v1334_v59  ;;  %v1336_v7 = vmul.f32 %v1080_v60, %v311_v55  ;;  %v2238_v10 = vld [vmem:[%s2757_s18 + $0xa60] sm:$0xff]  ;;  %v2239_v17 = vld [vmem:[%s2757_s18 + $0xa68] sm:$0xff] }
  0x9d   : > { %1845 = vst [vmem:[%s2790_s8 + $0x228] sm:$0xff] %v1589_v58  ;;  %v1082_v8 = vsub.f32 %v2237_v4, %v826_v5  ;;  %v827_v11 = vld [vmem:[%s2757_s18 + $0x260] sm:$0xff]  ;;  %1846 = vst [vmem:[%s2790_s8 + $0x230] sm:$0xff] %v1590_v0  ;;  %v1337_v13 = vmul.f32 %v1081_v2, %v312_v61  ;;  %v828_v18 = vld [vmem:[%s2757_s18 + $0x268] sm:$0xff] }
  0x9e   : > { %v1592_v12 = vmul.f32 %v2775_v16, %v1335_v1  ;;  %v1083_v14 = vsub.f32 %v2238_v10, %v827_v11  ;;  %1847 = vst [vmem:[%s2790_s8 + $0x238] sm:$0xff] %v1591_v6  ;;  %v1593_v19 = vmul.f32 %v2775_v16, %v1336_v7  ;;  %v1084_v21 = vsub.f32 %v2239_v17, %v828_v18  ;;  %v316_v22 = vld [vmem:[%s2749_s27 + $0x270] sm:$0xff]  ;;  %v317_v28 = vld [vmem:[%s2749_s27 + $0x278] sm:$0xff]  ;;  %v318_v34 = vld [vmem:[%s2749_s27 + $0x280] sm:$0xff] }
  0x9f   : > { %v1338_v20 = vmul.f32 %v1082_v8, %v313_v3  ;;  %v2240_v23 = vld [vmem:[%s2757_s18 + $0xa70] sm:$0xff]  ;;  %v1594_v25 = vmul.f32 %v2775_v16, %v1337_v13  ;;  %v2241_v29 = vld [vmem:[%s2757_s18 + $0xa78] sm:$0xff]  ;;  %v2242_v35 = vld [vmem:[%s2757_s18 + $0xa80] sm:$0xff] }
  0xa0   : > { %v829_v24 = vld [vmem:[%s2757_s18 + $0x270] sm:$0xff]  ;;  %1848 = vst [vmem:[%s2790_s8 + $0x240] sm:$0xff] %v1592_v12  ;;  %v1339_v26 = vmul.f32 %v1083_v14, %v314_v9  ;;  %v830_v30 = vld [vmem:[%s2757_s18 + $0x278] sm:$0xff]  ;;  %1849 = vst [vmem:[%s2790_s8 + $0x248] sm:$0xff] %v1593_v19  ;;  %v1340_v32 = vmul.f32 %v1084_v21, %v315_v15 }
  0xa1   : > { %v1085_v27 = vsub.f32 %v2240_v23, %v829_v24  ;;  %v1595_v31 = vmul.f32 %v2775_v16, %v1338_v20  ;;  %v1086_v33 = vsub.f32 %v2241_v29, %v830_v30  ;;  %v831_v36 = vld [vmem:[%s2757_s18 + $0x280] sm:$0xff]  ;;  %1850 = vst [vmem:[%s2790_s8 + $0x250] sm:$0xff] %v1594_v25  ;;  %v319_v40 = vld [vmem:[%s2749_s27 + $0x288] sm:$0xff]  ;;  %v320_v46 = vld [vmem:[%s2749_s27 + $0x290] sm:$0xff] }
  0xa2   : > { %v1596_v37 = vmul.f32 %v2775_v16, %v1339_v26  ;;  %v1087_v39 = vsub.f32 %v2242_v35, %v831_v36  ;;  %v2243_v41 = vld [vmem:[%s2757_s18 + $0xa88] sm:$0xff]  ;;  %v1597_v43 = vmul.f32 %v2775_v16, %v1340_v32  ;;  %v2244_v47 = vld [vmem:[%s2757_s18 + $0xa90] sm:$0xff]  ;;  %v321_v52 = vld [vmem:[%s2749_s27 + $0x298] sm:$0xff] }
  0xa3   : > { %v1341_v38 = vmul.f32 %v1085_v27, %v316_v22  ;;  %v832_v42 = vld [vmem:[%s2757_s18 + $0x288] sm:$0xff]  ;;  %1851 = vst [vmem:[%s2790_s8 + $0x258] sm:$0xff] %v1595_v31  ;;  %v1342_v44 = vmul.f32 %v1086_v33, %v317_v28  ;;  %v833_v48 = vld [vmem:[%s2757_s18 + $0x290] sm:$0xff]  ;;  %v2245_v53 = vld [vmem:[%s2757_s18 + $0xa98] sm:$0xff] }
  0xa4   : > { %v1088_v45 = vsub.f32 %v2243_v41, %v832_v42  ;;  %1852 = vst [vmem:[%s2790_s8 + $0x260] sm:$0xff] %v1596_v37  ;;  %v1343_v50 = vmul.f32 %v1087_v39, %v318_v34  ;;  %v1089_v51 = vsub.f32 %v2244_v47, %v833_v48  ;;  %v834_v54 = vld [vmem:[%s2757_s18 + $0x298] sm:$0xff]  ;;  %1853 = vst [vmem:[%s2790_s8 + $0x268] sm:$0xff] %v1597_v43  ;;  %v322_v58 = vld [vmem:[%s2749_s27 + $0x2a0] sm:$0xff] }
  0xa5   : > { %v1598_v49 = vmul.f32 %v2775_v16, %v1341_v38  ;;  %v1599_v55 = vmul.f32 %v2775_v16, %v1342_v44  ;;  %v1090_v57 = vsub.f32 %v2245_v53, %v834_v54  ;;  %v2246_v59 = vld [vmem:[%s2757_s18 + $0xaa0] sm:$0xff]  ;;  %v323_v0 = vld [vmem:[%s2749_s27 + $0x2a8] sm:$0xff]  ;;  %v324_v6 = vld [vmem:[%s2749_s27 + $0x2b0] sm:$0xff] }
  0xa6   : > { %v1344_v56 = vmul.f32 %v1088_v45, %v319_v40  ;;  %v835_v60 = vld [vmem:[%s2757_s18 + $0x2a0] sm:$0xff]  ;;  %v1600_v61 = vmul.f32 %v2775_v16, %v1343_v50  ;;  %v1345_v62 = vmul.f32 %v1089_v51, %v320_v46  ;;  %v2247_v1 = vld [vmem:[%s2757_s18 + $0xaa8] sm:$0xff]  ;;  %v2248_v7 = vld [vmem:[%s2757_s18 + $0xab0] sm:$0xff] }
  0xa7   : > { %1854 = vst [vmem:[%s2790_s8 + $0x270] sm:$0xff] %v1598_v49  ;;  %v1091_v63 = vsub.f32 %v2246_v59, %v835_v60  ;;  %v836_v2 = vld [vmem:[%s2757_s18 + $0x2a8] sm:$0xff]  ;;  %1855 = vst [vmem:[%s2790_s8 + $0x278] sm:$0xff] %v1599_v55  ;;  %v1346_v4 = vmul.f32 %v1090_v57, %v321_v52  ;;  %v837_v8 = vld [vmem:[%s2757_s18 + $0x2b0] sm:$0xff] }
  0xa8   : > { %v1601_v3 = vmul.f32 %v2775_v16, %v1344_v56  ;;  %v1092_v5 = vsub.f32 %v2247_v1, %v836_v2  ;;  %1856 = vst [vmem:[%s2790_s8 + $0x280] sm:$0xff] %v1600_v61  ;;  %v1602_v9 = vmul.f32 %v2775_v16, %v1345_v62  ;;  %v1093_v11 = vsub.f32 %v2248_v7, %v837_v8  ;;  %v325_v12 = vld [vmem:[%s2749_s27 + $0x2b8] sm:$0xff]  ;;  %v326_v19 = vld [vmem:[%s2749_s27 + $0x2c0] sm:$0xff]  ;;  %v327_v25 = vld [vmem:[%s2749_s27 + $0x2c8] sm:$0xff] }
  0xa9   : > { %v1347_v10 = vmul.f32 %v1091_v63, %v322_v58  ;;  %v2249_v13 = vld [vmem:[%s2757_s18 + $0xab8] sm:$0xff]  ;;  %v1603_v15 = vmul.f32 %v2775_v16, %v1346_v4  ;;  %v2250_v20 = vld [vmem:[%s2757_s18 + $0xac0] sm:$0xff]  ;;  %v2251_v26 = vld [vmem:[%s2757_s18 + $0xac8] sm:$0xff] }
  0xaa   : > { %v838_v14 = vld [vmem:[%s2757_s18 + $0x2b8] sm:$0xff]  ;;  %1857 = vst [vmem:[%s2790_s8 + $0x288] sm:$0xff] %v1601_v3  ;;  %v1348_v17 = vmul.f32 %v1092_v5, %v323_v0  ;;  %v839_v21 = vld [vmem:[%s2757_s18 + $0x2c0] sm:$0xff]  ;;  %1858 = vst [vmem:[%s2790_s8 + $0x290] sm:$0xff] %v1602_v9  ;;  %v1349_v23 = vmul.f32 %v1093_v11, %v324_v6 }
  0xab   : > { %v1094_v18 = vsub.f32 %v2249_v13, %v838_v14  ;;  %v1604_v22 = vmul.f32 %v2775_v16, %v1347_v10  ;;  %v1095_v24 = vsub.f32 %v2250_v20, %v839_v21  ;;  %v840_v27 = vld [vmem:[%s2757_s18 + $0x2c8] sm:$0xff]  ;;  %1859 = vst [vmem:[%s2790_s8 + $0x298] sm:$0xff] %v1603_v15  ;;  %v328_v31 = vld [vmem:[%s2749_s27 + $0x2d0] sm:$0xff]  ;;  %v329_v37 = vld [vmem:[%s2749_s27 + $0x2d8] sm:$0xff] }
  0xac   : > { %v1605_v28 = vmul.f32 %v2775_v16, %v1348_v17  ;;  %v1096_v30 = vsub.f32 %v2251_v26, %v840_v27  ;;  %v2252_v32 = vld [vmem:[%s2757_s18 + $0xad0] sm:$0xff]  ;;  %v1606_v34 = vmul.f32 %v2775_v16, %v1349_v23  ;;  %v2253_v38 = vld [vmem:[%s2757_s18 + $0xad8] sm:$0xff]  ;;  %v330_v43 = vld [vmem:[%s2749_s27 + $0x2e0] sm:$0xff] }
  0xad   : > { %v1350_v29 = vmul.f32 %v1094_v18, %v325_v12  ;;  %v841_v33 = vld [vmem:[%s2757_s18 + $0x2d0] sm:$0xff]  ;;  %1860 = vst [vmem:[%s2790_s8 + $0x2a0] sm:$0xff] %v1604_v22  ;;  %v1351_v35 = vmul.f32 %v1095_v24, %v326_v19  ;;  %v842_v39 = vld [vmem:[%s2757_s18 + $0x2d8] sm:$0xff]  ;;  %v2254_v44 = vld [vmem:[%s2757_s18 + $0xae0] sm:$0xff] }
  0xae   : > { %v1097_v36 = vsub.f32 %v2252_v32, %v841_v33  ;;  %1861 = vst [vmem:[%s2790_s8 + $0x2a8] sm:$0xff] %v1605_v28  ;;  %v1352_v41 = vmul.f32 %v1096_v30, %v327_v25  ;;  %v1098_v42 = vsub.f32 %v2253_v38, %v842_v39  ;;  %v843_v45 = vld [vmem:[%s2757_s18 + $0x2e0] sm:$0xff]  ;;  %1862 = vst [vmem:[%s2790_s8 + $0x2b0] sm:$0xff] %v1606_v34  ;;  %v331_v49 = vld [vmem:[%s2749_s27 + $0x2e8] sm:$0xff] }
  0xaf   : > { %v1607_v40 = vmul.f32 %v2775_v16, %v1350_v29  ;;  %v1608_v46 = vmul.f32 %v2775_v16, %v1351_v35  ;;  %v1099_v48 = vsub.f32 %v2254_v44, %v843_v45  ;;  %v2255_v50 = vld [vmem:[%s2757_s18 + $0xae8] sm:$0xff]  ;;  %v332_v55 = vld [vmem:[%s2749_s27 + $0x2f0] sm:$0xff]  ;;  %v333_v61 = vld [vmem:[%s2749_s27 + $0x2f8] sm:$0xff] }
  0xb0   : > { %v1353_v47 = vmul.f32 %v1097_v36, %v328_v31  ;;  %v844_v51 = vld [vmem:[%s2757_s18 + $0x2e8] sm:$0xff]  ;;  %v1609_v52 = vmul.f32 %v2775_v16, %v1352_v41  ;;  %v1354_v53 = vmul.f32 %v1098_v42, %v329_v37  ;;  %v2256_v56 = vld [vmem:[%s2757_s18 + $0xaf0] sm:$0xff]  ;;  %v2257_v62 = vld [vmem:[%s2757_s18 + $0xaf8] sm:$0xff] }
  0xb1   : > { %1863 = vst [vmem:[%s2790_s8 + $0x2b8] sm:$0xff] %v1607_v40  ;;  %v1100_v54 = vsub.f32 %v2255_v50, %v844_v51  ;;  %v845_v57 = vld [vmem:[%s2757_s18 + $0x2f0] sm:$0xff]  ;;  %1864 = vst [vmem:[%s2790_s8 + $0x2c0] sm:$0xff] %v1608_v46  ;;  %v1355_v59 = vmul.f32 %v1099_v48, %v330_v43  ;;  %v846_v63 = vld [vmem:[%s2757_s18 + $0x2f8] sm:$0xff] }
  0xb2   : > { %v1610_v58 = vmul.f32 %v2775_v16, %v1353_v47  ;;  %v1101_v60 = vsub.f32 %v2256_v56, %v845_v57  ;;  %1865 = vst [vmem:[%s2790_s8 + $0x2c8] sm:$0xff] %v1609_v52  ;;  %v1611_v0 = vmul.f32 %v2775_v16, %v1354_v53  ;;  %v1102_v2 = vsub.f32 %v2257_v62, %v846_v63  ;;  %v334_v3 = vld [vmem:[%s2749_s27 + $0x300] sm:$0xff]  ;;  %v335_v9 = vld [vmem:[%s2749_s27 + $0x308] sm:$0xff]  ;;  %v336_v15 = vld [vmem:[%s2749_s27 + $0x310] sm:$0xff] }
  0xb3   : > { %v1356_v1 = vmul.f32 %v1100_v54, %v331_v49  ;;  %v2258_v4 = vld [vmem:[%s2757_s18 + $0xb00] sm:$0xff]  ;;  %v1612_v6 = vmul.f32 %v2775_v16, %v1355_v59  ;;  %v2259_v10 = vld [vmem:[%s2757_s18 + $0xb08] sm:$0xff]  ;;  %v2260_v17 = vld [vmem:[%s2757_s18 + $0xb10] sm:$0xff] }
  0xb4   : > { %v847_v5 = vld [vmem:[%s2757_s18 + $0x300] sm:$0xff]  ;;  %1866 = vst [vmem:[%s2790_s8 + $0x2d0] sm:$0xff] %v1610_v58  ;;  %v1357_v7 = vmul.f32 %v1101_v60, %v332_v55  ;;  %v848_v11 = vld [vmem:[%s2757_s18 + $0x308] sm:$0xff]  ;;  %1867 = vst [vmem:[%s2790_s8 + $0x2d8] sm:$0xff] %v1611_v0  ;;  %v1358_v13 = vmul.f32 %v1102_v2, %v333_v61 }
  0xb5   : > { %v1103_v8 = vsub.f32 %v2258_v4, %v847_v5  ;;  %v1613_v12 = vmul.f32 %v2775_v16, %v1356_v1  ;;  %v1104_v14 = vsub.f32 %v2259_v10, %v848_v11  ;;  %v849_v18 = vld [vmem:[%s2757_s18 + $0x310] sm:$0xff]  ;;  %1868 = vst [vmem:[%s2790_s8 + $0x2e0] sm:$0xff] %v1612_v6  ;;  %v337_v22 = vld [vmem:[%s2749_s27 + $0x318] sm:$0xff]  ;;  %v338_v28 = vld [vmem:[%s2749_s27 + $0x320] sm:$0xff] }
  0xb6   : > { %v1614_v19 = vmul.f32 %v2775_v16, %v1357_v7  ;;  %v1105_v21 = vsub.f32 %v2260_v17, %v849_v18  ;;  %v2261_v23 = vld [vmem:[%s2757_s18 + $0xb18] sm:$0xff]  ;;  %v1615_v25 = vmul.f32 %v2775_v16, %v1358_v13  ;;  %v2262_v29 = vld [vmem:[%s2757_s18 + $0xb20] sm:$0xff]  ;;  %v339_v34 = vld [vmem:[%s2749_s27 + $0x328] sm:$0xff] }
  0xb7   : > { %v1359_v20 = vmul.f32 %v1103_v8, %v334_v3  ;;  %v850_v24 = vld [vmem:[%s2757_s18 + $0x318] sm:$0xff]  ;;  %1869 = vst [vmem:[%s2790_s8 + $0x2e8] sm:$0xff] %v1613_v12  ;;  %v1360_v26 = vmul.f32 %v1104_v14, %v335_v9  ;;  %v851_v30 = vld [vmem:[%s2757_s18 + $0x320] sm:$0xff]  ;;  %v2263_v35 = vld [vmem:[%s2757_s18 + $0xb28] sm:$0xff] }
  0xb8   : > { %v1106_v27 = vsub.f32 %v2261_v23, %v850_v24  ;;  %1870 = vst [vmem:[%s2790_s8 + $0x2f0] sm:$0xff] %v1614_v19  ;;  %v1361_v32 = vmul.f32 %v1105_v21, %v336_v15  ;;  %v1107_v33 = vsub.f32 %v2262_v29, %v851_v30  ;;  %v852_v36 = vld [vmem:[%s2757_s18 + $0x328] sm:$0xff]  ;;  %1871 = vst [vmem:[%s2790_s8 + $0x2f8] sm:$0xff] %v1615_v25  ;;  %v340_v40 = vld [vmem:[%s2749_s27 + $0x330] sm:$0xff] }
  0xb9   : > { %v1616_v31 = vmul.f32 %v2775_v16, %v1359_v20  ;;  %v1617_v37 = vmul.f32 %v2775_v16, %v1360_v26  ;;  %v1108_v39 = vsub.f32 %v2263_v35, %v852_v36  ;;  %v2264_v41 = vld [vmem:[%s2757_s18 + $0xb30] sm:$0xff]  ;;  %v341_v46 = vld [vmem:[%s2749_s27 + $0x338] sm:$0xff]  ;;  %v342_v52 = vld [vmem:[%s2749_s27 + $0x340] sm:$0xff] }
  0xba   : > { %v1362_v38 = vmul.f32 %v1106_v27, %v337_v22  ;;  %v853_v42 = vld [vmem:[%s2757_s18 + $0x330] sm:$0xff]  ;;  %v1618_v43 = vmul.f32 %v2775_v16, %v1361_v32  ;;  %v1363_v44 = vmul.f32 %v1107_v33, %v338_v28  ;;  %v2265_v47 = vld [vmem:[%s2757_s18 + $0xb38] sm:$0xff]  ;;  %v2266_v53 = vld [vmem:[%s2757_s18 + $0xb40] sm:$0xff] }
  0xbb   : > { %1872 = vst [vmem:[%s2790_s8 + $0x300] sm:$0xff] %v1616_v31  ;;  %v1109_v45 = vsub.f32 %v2264_v41, %v853_v42  ;;  %v854_v48 = vld [vmem:[%s2757_s18 + $0x338] sm:$0xff]  ;;  %1873 = vst [vmem:[%s2790_s8 + $0x308] sm:$0xff] %v1617_v37  ;;  %v1364_v50 = vmul.f32 %v1108_v39, %v339_v34  ;;  %v855_v54 = vld [vmem:[%s2757_s18 + $0x340] sm:$0xff] }
  0xbc   : > { %v1619_v49 = vmul.f32 %v2775_v16, %v1362_v38  ;;  %v1110_v51 = vsub.f32 %v2265_v47, %v854_v48  ;;  %1874 = vst [vmem:[%s2790_s8 + $0x310] sm:$0xff] %v1618_v43  ;;  %v1620_v55 = vmul.f32 %v2775_v16, %v1363_v44  ;;  %v1111_v57 = vsub.f32 %v2266_v53, %v855_v54  ;;  %v343_v58 = vld [vmem:[%s2749_s27 + $0x348] sm:$0xff]  ;;  %v344_v0 = vld [vmem:[%s2749_s27 + $0x350] sm:$0xff]  ;;  %v345_v6 = vld [vmem:[%s2749_s27 + $0x358] sm:$0xff] }
  0xbd   : > { %v1365_v56 = vmul.f32 %v1109_v45, %v340_v40  ;;  %v2267_v59 = vld [vmem:[%s2757_s18 + $0xb48] sm:$0xff]  ;;  %v1621_v61 = vmul.f32 %v2775_v16, %v1364_v50  ;;  %v2268_v1 = vld [vmem:[%s2757_s18 + $0xb50] sm:$0xff]  ;;  %v2269_v7 = vld [vmem:[%s2757_s18 + $0xb58] sm:$0xff] }
  0xbe   : > { %v856_v60 = vld [vmem:[%s2757_s18 + $0x348] sm:$0xff]  ;;  %1875 = vst [vmem:[%s2790_s8 + $0x318] sm:$0xff] %v1619_v49  ;;  %v1366_v62 = vmul.f32 %v1110_v51, %v341_v46  ;;  %v857_v2 = vld [vmem:[%s2757_s18 + $0x350] sm:$0xff]  ;;  %1876 = vst [vmem:[%s2790_s8 + $0x320] sm:$0xff] %v1620_v55  ;;  %v1367_v4 = vmul.f32 %v1111_v57, %v342_v52 }
  0xbf   : > { %v1112_v63 = vsub.f32 %v2267_v59, %v856_v60  ;;  %v1622_v3 = vmul.f32 %v2775_v16, %v1365_v56  ;;  %v1113_v5 = vsub.f32 %v2268_v1, %v857_v2  ;;  %v858_v8 = vld [vmem:[%s2757_s18 + $0x358] sm:$0xff]  ;;  %1877 = vst [vmem:[%s2790_s8 + $0x328] sm:$0xff] %v1621_v61  ;;  %v346_v12 = vld [vmem:[%s2749_s27 + $0x360] sm:$0xff]  ;;  %v347_v19 = vld [vmem:[%s2749_s27 + $0x368] sm:$0xff] }
  0xc0   : > { %v1623_v9 = vmul.f32 %v2775_v16, %v1366_v62  ;;  %v1114_v11 = vsub.f32 %v2269_v7, %v858_v8  ;;  %v2270_v13 = vld [vmem:[%s2757_s18 + $0xb60] sm:$0xff]  ;;  %v1624_v15 = vmul.f32 %v2775_v16, %v1367_v4  ;;  %v2271_v20 = vld [vmem:[%s2757_s18 + $0xb68] sm:$0xff]  ;;  %v348_v25 = vld [vmem:[%s2749_s27 + $0x370] sm:$0xff] }
  0xc1   : > { %v1368_v10 = vmul.f32 %v1112_v63, %v343_v58  ;;  %v859_v14 = vld [vmem:[%s2757_s18 + $0x360] sm:$0xff]  ;;  %1878 = vst [vmem:[%s2790_s8 + $0x330] sm:$0xff] %v1622_v3  ;;  %v1369_v17 = vmul.f32 %v1113_v5, %v344_v0  ;;  %v860_v21 = vld [vmem:[%s2757_s18 + $0x368] sm:$0xff]  ;;  %v2272_v26 = vld [vmem:[%s2757_s18 + $0xb70] sm:$0xff] }
  0xc2   : > { %v1115_v18 = vsub.f32 %v2270_v13, %v859_v14  ;;  %1879 = vst [vmem:[%s2790_s8 + $0x338] sm:$0xff] %v1623_v9  ;;  %v1370_v23 = vmul.f32 %v1114_v11, %v345_v6  ;;  %v1116_v24 = vsub.f32 %v2271_v20, %v860_v21  ;;  %v861_v27 = vld [vmem:[%s2757_s18 + $0x370] sm:$0xff]  ;;  %1880 = vst [vmem:[%s2790_s8 + $0x340] sm:$0xff] %v1624_v15  ;;  %v349_v31 = vld [vmem:[%s2749_s27 + $0x378] sm:$0xff] }
  0xc3   : > { %v1625_v22 = vmul.f32 %v2775_v16, %v1368_v10  ;;  %v1626_v28 = vmul.f32 %v2775_v16, %v1369_v17  ;;  %v1117_v30 = vsub.f32 %v2272_v26, %v861_v27  ;;  %v2273_v32 = vld [vmem:[%s2757_s18 + $0xb78] sm:$0xff]  ;;  %v350_v37 = vld [vmem:[%s2749_s27 + $0x380] sm:$0xff]  ;;  %v351_v43 = vld [vmem:[%s2749_s27 + $0x388] sm:$0xff] }
  0xc4   : > { %v1371_v29 = vmul.f32 %v1115_v18, %v346_v12  ;;  %v862_v33 = vld [vmem:[%s2757_s18 + $0x378] sm:$0xff]  ;;  %v1627_v34 = vmul.f32 %v2775_v16, %v1370_v23  ;;  %v1372_v35 = vmul.f32 %v1116_v24, %v347_v19  ;;  %v2274_v38 = vld [vmem:[%s2757_s18 + $0xb80] sm:$0xff]  ;;  %v2275_v44 = vld [vmem:[%s2757_s18 + $0xb88] sm:$0xff] }
  0xc5   : > { %1881 = vst [vmem:[%s2790_s8 + $0x348] sm:$0xff] %v1625_v22  ;;  %v1118_v36 = vsub.f32 %v2273_v32, %v862_v33  ;;  %v863_v39 = vld [vmem:[%s2757_s18 + $0x380] sm:$0xff]  ;;  %1882 = vst [vmem:[%s2790_s8 + $0x350] sm:$0xff] %v1626_v28  ;;  %v1373_v41 = vmul.f32 %v1117_v30, %v348_v25  ;;  %v864_v45 = vld [vmem:[%s2757_s18 + $0x388] sm:$0xff] }
  0xc6   : > { %v1628_v40 = vmul.f32 %v2775_v16, %v1371_v29  ;;  %v1119_v42 = vsub.f32 %v2274_v38, %v863_v39  ;;  %1883 = vst [vmem:[%s2790_s8 + $0x358] sm:$0xff] %v1627_v34  ;;  %v1629_v46 = vmul.f32 %v2775_v16, %v1372_v35  ;;  %v1120_v48 = vsub.f32 %v2275_v44, %v864_v45  ;;  %v352_v49 = vld [vmem:[%s2749_s27 + $0x390] sm:$0xff]  ;;  %v353_v55 = vld [vmem:[%s2749_s27 + $0x398] sm:$0xff]  ;;  %v354_v61 = vld [vmem:[%s2749_s27 + $0x3a0] sm:$0xff] }
  0xc7   : > { %v1374_v47 = vmul.f32 %v1118_v36, %v349_v31  ;;  %v2276_v50 = vld [vmem:[%s2757_s18 + $0xb90] sm:$0xff]  ;;  %v1630_v52 = vmul.f32 %v2775_v16, %v1373_v41  ;;  %v2277_v56 = vld [vmem:[%s2757_s18 + $0xb98] sm:$0xff]  ;;  %v2278_v62 = vld [vmem:[%s2757_s18 + $0xba0] sm:$0xff] }
  0xc8   : > { %v865_v51 = vld [vmem:[%s2757_s18 + $0x390] sm:$0xff]  ;;  %1884 = vst [vmem:[%s2790_s8 + $0x360] sm:$0xff] %v1628_v40  ;;  %v1375_v53 = vmul.f32 %v1119_v42, %v350_v37  ;;  %v866_v57 = vld [vmem:[%s2757_s18 + $0x398] sm:$0xff]  ;;  %1885 = vst [vmem:[%s2790_s8 + $0x368] sm:$0xff] %v1629_v46  ;;  %v1376_v59 = vmul.f32 %v1120_v48, %v351_v43 }
  0xc9   : > { %v1121_v54 = vsub.f32 %v2276_v50, %v865_v51  ;;  %v1631_v58 = vmul.f32 %v2775_v16, %v1374_v47  ;;  %v1122_v60 = vsub.f32 %v2277_v56, %v866_v57  ;;  %v867_v63 = vld [vmem:[%s2757_s18 + $0x3a0] sm:$0xff]  ;;  %1886 = vst [vmem:[%s2790_s8 + $0x370] sm:$0xff] %v1630_v52  ;;  %v355_v3 = vld [vmem:[%s2749_s27 + $0x3a8] sm:$0xff]  ;;  %v356_v9 = vld [vmem:[%s2749_s27 + $0x3b0] sm:$0xff] }
  0xca   : > { %v1632_v0 = vmul.f32 %v2775_v16, %v1375_v53  ;;  %v1123_v2 = vsub.f32 %v2278_v62, %v867_v63  ;;  %v2279_v4 = vld [vmem:[%s2757_s18 + $0xba8] sm:$0xff]  ;;  %v1633_v6 = vmul.f32 %v2775_v16, %v1376_v59  ;;  %v2280_v10 = vld [vmem:[%s2757_s18 + $0xbb0] sm:$0xff]  ;;  %v357_v15 = vld [vmem:[%s2749_s27 + $0x3b8] sm:$0xff] }
  0xcb   : > { %v1377_v1 = vmul.f32 %v1121_v54, %v352_v49  ;;  %v868_v5 = vld [vmem:[%s2757_s18 + $0x3a8] sm:$0xff]  ;;  %1887 = vst [vmem:[%s2790_s8 + $0x378] sm:$0xff] %v1631_v58  ;;  %v1378_v7 = vmul.f32 %v1122_v60, %v353_v55  ;;  %v869_v11 = vld [vmem:[%s2757_s18 + $0x3b0] sm:$0xff]  ;;  %v2281_v17 = vld [vmem:[%s2757_s18 + $0xbb8] sm:$0xff] }
  0xcc   : > { %v1124_v8 = vsub.f32 %v2279_v4, %v868_v5  ;;  %1888 = vst [vmem:[%s2790_s8 + $0x380] sm:$0xff] %v1632_v0  ;;  %v1379_v13 = vmul.f32 %v1123_v2, %v354_v61  ;;  %v1125_v14 = vsub.f32 %v2280_v10, %v869_v11  ;;  %v870_v18 = vld [vmem:[%s2757_s18 + $0x3b8] sm:$0xff]  ;;  %1889 = vst [vmem:[%s2790_s8 + $0x388] sm:$0xff] %v1633_v6  ;;  %v358_v22 = vld [vmem:[%s2749_s27 + $0x3c0] sm:$0xff] }
  0xcd   : > { %v1634_v12 = vmul.f32 %v2775_v16, %v1377_v1  ;;  %v1635_v19 = vmul.f32 %v2775_v16, %v1378_v7  ;;  %v1126_v21 = vsub.f32 %v2281_v17, %v870_v18  ;;  %v2282_v23 = vld [vmem:[%s2757_s18 + $0xbc0] sm:$0xff]  ;;  %v359_v28 = vld [vmem:[%s2749_s27 + $0x3c8] sm:$0xff]  ;;  %v360_v34 = vld [vmem:[%s2749_s27 + $0x3d0] sm:$0xff] }
  0xce   : > { %v1380_v20 = vmul.f32 %v1124_v8, %v355_v3  ;;  %v871_v24 = vld [vmem:[%s2757_s18 + $0x3c0] sm:$0xff]  ;;  %v1636_v25 = vmul.f32 %v2775_v16, %v1379_v13  ;;  %v1381_v26 = vmul.f32 %v1125_v14, %v356_v9  ;;  %v2283_v29 = vld [vmem:[%s2757_s18 + $0xbc8] sm:$0xff]  ;;  %v2284_v35 = vld [vmem:[%s2757_s18 + $0xbd0] sm:$0xff] }
  0xcf   : > { %1890 = vst [vmem:[%s2790_s8 + $0x390] sm:$0xff] %v1634_v12  ;;  %v1127_v27 = vsub.f32 %v2282_v23, %v871_v24  ;;  %v872_v30 = vld [vmem:[%s2757_s18 + $0x3c8] sm:$0xff]  ;;  %1891 = vst [vmem:[%s2790_s8 + $0x398] sm:$0xff] %v1635_v19  ;;  %v1382_v32 = vmul.f32 %v1126_v21, %v357_v15  ;;  %v873_v36 = vld [vmem:[%s2757_s18 + $0x3d0] sm:$0xff] }
  0xd0   : > { %v1637_v31 = vmul.f32 %v2775_v16, %v1380_v20  ;;  %v1128_v33 = vsub.f32 %v2283_v29, %v872_v30  ;;  %1892 = vst [vmem:[%s2790_s8 + $0x3a0] sm:$0xff] %v1636_v25  ;;  %v1638_v37 = vmul.f32 %v2775_v16, %v1381_v26  ;;  %v1129_v39 = vsub.f32 %v2284_v35, %v873_v36  ;;  %v361_v40 = vld [vmem:[%s2749_s27 + $0x3d8] sm:$0xff]  ;;  %v362_v46 = vld [vmem:[%s2749_s27 + $0x3e0] sm:$0xff]  ;;  %v363_v52 = vld [vmem:[%s2749_s27 + $0x3e8] sm:$0xff] }
  0xd1   : > { %v1383_v38 = vmul.f32 %v1127_v27, %v358_v22  ;;  %v2285_v41 = vld [vmem:[%s2757_s18 + $0xbd8] sm:$0xff]  ;;  %v1639_v43 = vmul.f32 %v2775_v16, %v1382_v32  ;;  %v2286_v47 = vld [vmem:[%s2757_s18 + $0xbe0] sm:$0xff]  ;;  %v2287_v53 = vld [vmem:[%s2757_s18 + $0xbe8] sm:$0xff] }
  0xd2   : > { %v874_v42 = vld [vmem:[%s2757_s18 + $0x3d8] sm:$0xff]  ;;  %1893 = vst [vmem:[%s2790_s8 + $0x3a8] sm:$0xff] %v1637_v31  ;;  %v1384_v44 = vmul.f32 %v1128_v33, %v359_v28  ;;  %v875_v48 = vld [vmem:[%s2757_s18 + $0x3e0] sm:$0xff]  ;;  %1894 = vst [vmem:[%s2790_s8 + $0x3b0] sm:$0xff] %v1638_v37  ;;  %v1385_v50 = vmul.f32 %v1129_v39, %v360_v34 }
  0xd3   : > { %v1130_v45 = vsub.f32 %v2285_v41, %v874_v42  ;;  %v1640_v49 = vmul.f32 %v2775_v16, %v1383_v38  ;;  %v1131_v51 = vsub.f32 %v2286_v47, %v875_v48  ;;  %v876_v54 = vld [vmem:[%s2757_s18 + $0x3e8] sm:$0xff]  ;;  %1895 = vst [vmem:[%s2790_s8 + $0x3b8] sm:$0xff] %v1639_v43  ;;  %v364_v58 = vld [vmem:[%s2749_s27 + $0x3f0] sm:$0xff]  ;;  %v365_v0 = vld [vmem:[%s2749_s27 + $0x3f8] sm:$0xff] }
  0xd4   : > { %v1641_v55 = vmul.f32 %v2775_v16, %v1384_v44  ;;  %v1132_v57 = vsub.f32 %v2287_v53, %v876_v54  ;;  %v2288_v59 = vld [vmem:[%s2757_s18 + $0xbf0] sm:$0xff]  ;;  %v1642_v61 = vmul.f32 %v2775_v16, %v1385_v50  ;;  %v2289_v1 = vld [vmem:[%s2757_s18 + $0xbf8] sm:$0xff]  ;;  %v366_v6 = vld [vmem:[%s2749_s27 + $0x400] sm:$0xff] }
  0xd5   : > { %v1386_v56 = vmul.f32 %v1130_v45, %v361_v40  ;;  %v877_v60 = vld [vmem:[%s2757_s18 + $0x3f0] sm:$0xff]  ;;  %1896 = vst [vmem:[%s2790_s8 + $0x3c0] sm:$0xff] %v1640_v49  ;;  %v1387_v62 = vmul.f32 %v1131_v51, %v362_v46  ;;  %v878_v2 = vld [vmem:[%s2757_s18 + $0x3f8] sm:$0xff]  ;;  %v2290_v7 = vld [vmem:[%s2757_s18 + $0xc00] sm:$0xff] }
  0xd6   : > { %v1133_v63 = vsub.f32 %v2288_v59, %v877_v60  ;;  %1897 = vst [vmem:[%s2790_s8 + $0x3c8] sm:$0xff] %v1641_v55  ;;  %v1388_v4 = vmul.f32 %v1132_v57, %v363_v52  ;;  %v1134_v5 = vsub.f32 %v2289_v1, %v878_v2  ;;  %v879_v8 = vld [vmem:[%s2757_s18 + $0x400] sm:$0xff]  ;;  %1898 = vst [vmem:[%s2790_s8 + $0x3d0] sm:$0xff] %v1642_v61  ;;  %v367_v12 = vld [vmem:[%s2749_s27 + $0x408] sm:$0xff] }
  0xd7   : > { %v1643_v3 = vmul.f32 %v2775_v16, %v1386_v56  ;;  %v1644_v9 = vmul.f32 %v2775_v16, %v1387_v62  ;;  %v1135_v11 = vsub.f32 %v2290_v7, %v879_v8  ;;  %v2291_v13 = vld [vmem:[%s2757_s18 + $0xc08] sm:$0xff]  ;;  %v368_v19 = vld [vmem:[%s2749_s27 + $0x410] sm:$0xff]  ;;  %v369_v25 = vld [vmem:[%s2749_s27 + $0x418] sm:$0xff] }
  0xd8   : > { %v1389_v10 = vmul.f32 %v1133_v63, %v364_v58  ;;  %v880_v14 = vld [vmem:[%s2757_s18 + $0x408] sm:$0xff]  ;;  %v1645_v15 = vmul.f32 %v2775_v16, %v1388_v4  ;;  %v1390_v17 = vmul.f32 %v1134_v5, %v365_v0  ;;  %v2292_v20 = vld [vmem:[%s2757_s18 + $0xc10] sm:$0xff]  ;;  %v2293_v26 = vld [vmem:[%s2757_s18 + $0xc18] sm:$0xff] }
  0xd9   : > { %1899 = vst [vmem:[%s2790_s8 + $0x3d8] sm:$0xff] %v1643_v3  ;;  %v1136_v18 = vsub.f32 %v2291_v13, %v880_v14  ;;  %v881_v21 = vld [vmem:[%s2757_s18 + $0x410] sm:$0xff]  ;;  %1900 = vst [vmem:[%s2790_s8 + $0x3e0] sm:$0xff] %v1644_v9  ;;  %v1391_v23 = vmul.f32 %v1135_v11, %v366_v6  ;;  %v882_v27 = vld [vmem:[%s2757_s18 + $0x418] sm:$0xff] }
  0xda   : > { %v1646_v22 = vmul.f32 %v2775_v16, %v1389_v10  ;;  %v1137_v24 = vsub.f32 %v2292_v20, %v881_v21  ;;  %1901 = vst [vmem:[%s2790_s8 + $0x3e8] sm:$0xff] %v1645_v15  ;;  %v1647_v28 = vmul.f32 %v2775_v16, %v1390_v17  ;;  %v1138_v30 = vsub.f32 %v2293_v26, %v882_v27  ;;  %v370_v31 = vld [vmem:[%s2749_s27 + $0x420] sm:$0xff]  ;;  %v371_v37 = vld [vmem:[%s2749_s27 + $0x428] sm:$0xff]  ;;  %v372_v43 = vld [vmem:[%s2749_s27 + $0x430] sm:$0xff] }
  0xdb   : > { %v1392_v29 = vmul.f32 %v1136_v18, %v367_v12  ;;  %v2294_v32 = vld [vmem:[%s2757_s18 + $0xc20] sm:$0xff]  ;;  %v1648_v34 = vmul.f32 %v2775_v16, %v1391_v23  ;;  %v2295_v38 = vld [vmem:[%s2757_s18 + $0xc28] sm:$0xff]  ;;  %v2296_v44 = vld [vmem:[%s2757_s18 + $0xc30] sm:$0xff] }
  0xdc   : > { %v883_v33 = vld [vmem:[%s2757_s18 + $0x420] sm:$0xff]  ;;  %1902 = vst [vmem:[%s2790_s8 + $0x3f0] sm:$0xff] %v1646_v22  ;;  %v1393_v35 = vmul.f32 %v1137_v24, %v368_v19  ;;  %v884_v39 = vld [vmem:[%s2757_s18 + $0x428] sm:$0xff]  ;;  %1903 = vst [vmem:[%s2790_s8 + $0x3f8] sm:$0xff] %v1647_v28  ;;  %v1394_v41 = vmul.f32 %v1138_v30, %v369_v25 }
  0xdd   : > { %v1139_v36 = vsub.f32 %v2294_v32, %v883_v33  ;;  %v1649_v40 = vmul.f32 %v2775_v16, %v1392_v29  ;;  %v1140_v42 = vsub.f32 %v2295_v38, %v884_v39  ;;  %v885_v45 = vld [vmem:[%s2757_s18 + $0x430] sm:$0xff]  ;;  %1904 = vst [vmem:[%s2790_s8 + $0x400] sm:$0xff] %v1648_v34  ;;  %v373_v49 = vld [vmem:[%s2749_s27 + $0x438] sm:$0xff]  ;;  %v374_v55 = vld [vmem:[%s2749_s27 + $0x440] sm:$0xff] }
  0xde   : > { %v1650_v46 = vmul.f32 %v2775_v16, %v1393_v35  ;;  %v1141_v48 = vsub.f32 %v2296_v44, %v885_v45  ;;  %v2297_v50 = vld [vmem:[%s2757_s18 + $0xc38] sm:$0xff]  ;;  %v1651_v52 = vmul.f32 %v2775_v16, %v1394_v41  ;;  %v2298_v56 = vld [vmem:[%s2757_s18 + $0xc40] sm:$0xff]  ;;  %v375_v61 = vld [vmem:[%s2749_s27 + $0x448] sm:$0xff] }
  0xdf   : > { %v1395_v47 = vmul.f32 %v1139_v36, %v370_v31  ;;  %v886_v51 = vld [vmem:[%s2757_s18 + $0x438] sm:$0xff]  ;;  %1905 = vst [vmem:[%s2790_s8 + $0x408] sm:$0xff] %v1649_v40  ;;  %v1396_v53 = vmul.f32 %v1140_v42, %v371_v37  ;;  %v887_v57 = vld [vmem:[%s2757_s18 + $0x440] sm:$0xff]  ;;  %v2299_v62 = vld [vmem:[%s2757_s18 + $0xc48] sm:$0xff] }
  0xe0   : > { %v1142_v54 = vsub.f32 %v2297_v50, %v886_v51  ;;  %1906 = vst [vmem:[%s2790_s8 + $0x410] sm:$0xff] %v1650_v46  ;;  %v1397_v59 = vmul.f32 %v1141_v48, %v372_v43  ;;  %v1143_v60 = vsub.f32 %v2298_v56, %v887_v57  ;;  %v888_v63 = vld [vmem:[%s2757_s18 + $0x448] sm:$0xff]  ;;  %1907 = vst [vmem:[%s2790_s8 + $0x418] sm:$0xff] %v1651_v52  ;;  %v376_v3 = vld [vmem:[%s2749_s27 + $0x450] sm:$0xff] }
  0xe1   : > { %v1652_v58 = vmul.f32 %v2775_v16, %v1395_v47  ;;  %v1653_v0 = vmul.f32 %v2775_v16, %v1396_v53  ;;  %v1144_v2 = vsub.f32 %v2299_v62, %v888_v63  ;;  %v2300_v4 = vld [vmem:[%s2757_s18 + $0xc50] sm:$0xff]  ;;  %v377_v9 = vld [vmem:[%s2749_s27 + $0x458] sm:$0xff]  ;;  %v378_v15 = vld [vmem:[%s2749_s27 + $0x460] sm:$0xff] }
  0xe2   : > { %v1398_v1 = vmul.f32 %v1142_v54, %v373_v49  ;;  %v889_v5 = vld [vmem:[%s2757_s18 + $0x450] sm:$0xff]  ;;  %v1654_v6 = vmul.f32 %v2775_v16, %v1397_v59  ;;  %v1399_v7 = vmul.f32 %v1143_v60, %v374_v55  ;;  %v2301_v10 = vld [vmem:[%s2757_s18 + $0xc58] sm:$0xff]  ;;  %v2302_v17 = vld [vmem:[%s2757_s18 + $0xc60] sm:$0xff] }
  0xe3   : > { %1908 = vst [vmem:[%s2790_s8 + $0x420] sm:$0xff] %v1652_v58  ;;  %v1145_v8 = vsub.f32 %v2300_v4, %v889_v5  ;;  %v890_v11 = vld [vmem:[%s2757_s18 + $0x458] sm:$0xff]  ;;  %1909 = vst [vmem:[%s2790_s8 + $0x428] sm:$0xff] %v1653_v0  ;;  %v1400_v13 = vmul.f32 %v1144_v2, %v375_v61  ;;  %v891_v18 = vld [vmem:[%s2757_s18 + $0x460] sm:$0xff] }
  0xe4   : > { %v1655_v12 = vmul.f32 %v2775_v16, %v1398_v1  ;;  %v1146_v14 = vsub.f32 %v2301_v10, %v890_v11  ;;  %1910 = vst [vmem:[%s2790_s8 + $0x430] sm:$0xff] %v1654_v6  ;;  %v1656_v19 = vmul.f32 %v2775_v16, %v1399_v7  ;;  %v1147_v21 = vsub.f32 %v2302_v17, %v891_v18  ;;  %v379_v22 = vld [vmem:[%s2749_s27 + $0x468] sm:$0xff]  ;;  %v380_v28 = vld [vmem:[%s2749_s27 + $0x470] sm:$0xff]  ;;  %v381_v34 = vld [vmem:[%s2749_s27 + $0x478] sm:$0xff] }
  0xe5   : > { %v1401_v20 = vmul.f32 %v1145_v8, %v376_v3  ;;  %v2303_v23 = vld [vmem:[%s2757_s18 + $0xc68] sm:$0xff]  ;;  %v1657_v25 = vmul.f32 %v2775_v16, %v1400_v13  ;;  %v2304_v29 = vld [vmem:[%s2757_s18 + $0xc70] sm:$0xff]  ;;  %v2305_v35 = vld [vmem:[%s2757_s18 + $0xc78] sm:$0xff] }
  0xe6   : > { %v892_v24 = vld [vmem:[%s2757_s18 + $0x468] sm:$0xff]  ;;  %1911 = vst [vmem:[%s2790_s8 + $0x438] sm:$0xff] %v1655_v12  ;;  %v1402_v26 = vmul.f32 %v1146_v14, %v377_v9  ;;  %v893_v30 = vld [vmem:[%s2757_s18 + $0x470] sm:$0xff]  ;;  %1912 = vst [vmem:[%s2790_s8 + $0x440] sm:$0xff] %v1656_v19  ;;  %v1403_v32 = vmul.f32 %v1147_v21, %v378_v15 }
  0xe7   : > { %v1148_v27 = vsub.f32 %v2303_v23, %v892_v24  ;;  %v1658_v31 = vmul.f32 %v2775_v16, %v1401_v20  ;;  %v1149_v33 = vsub.f32 %v2304_v29, %v893_v30  ;;  %v894_v36 = vld [vmem:[%s2757_s18 + $0x478] sm:$0xff]  ;;  %1913 = vst [vmem:[%s2790_s8 + $0x448] sm:$0xff] %v1657_v25  ;;  %v382_v40 = vld [vmem:[%s2749_s27 + $0x480] sm:$0xff]  ;;  %v383_v46 = vld [vmem:[%s2749_s27 + $0x488] sm:$0xff] }
  0xe8   : > { %v1659_v37 = vmul.f32 %v2775_v16, %v1402_v26  ;;  %v1150_v39 = vsub.f32 %v2305_v35, %v894_v36  ;;  %v2306_v41 = vld [vmem:[%s2757_s18 + $0xc80] sm:$0xff]  ;;  %v1660_v43 = vmul.f32 %v2775_v16, %v1403_v32  ;;  %v2307_v47 = vld [vmem:[%s2757_s18 + $0xc88] sm:$0xff]  ;;  %v384_v52 = vld [vmem:[%s2749_s27 + $0x490] sm:$0xff] }
  0xe9   : > { %v1404_v38 = vmul.f32 %v1148_v27, %v379_v22  ;;  %v895_v42 = vld [vmem:[%s2757_s18 + $0x480] sm:$0xff]  ;;  %1914 = vst [vmem:[%s2790_s8 + $0x450] sm:$0xff] %v1658_v31  ;;  %v1405_v44 = vmul.f32 %v1149_v33, %v380_v28  ;;  %v896_v48 = vld [vmem:[%s2757_s18 + $0x488] sm:$0xff]  ;;  %v2308_v53 = vld [vmem:[%s2757_s18 + $0xc90] sm:$0xff] }
  0xea   : > { %v1151_v45 = vsub.f32 %v2306_v41, %v895_v42  ;;  %1915 = vst [vmem:[%s2790_s8 + $0x458] sm:$0xff] %v1659_v37  ;;  %v1406_v50 = vmul.f32 %v1150_v39, %v381_v34  ;;  %v1152_v51 = vsub.f32 %v2307_v47, %v896_v48  ;;  %v897_v54 = vld [vmem:[%s2757_s18 + $0x490] sm:$0xff]  ;;  %1916 = vst [vmem:[%s2790_s8 + $0x460] sm:$0xff] %v1660_v43  ;;  %v385_v58 = vld [vmem:[%s2749_s27 + $0x498] sm:$0xff] }
  0xeb   : > { %v1661_v49 = vmul.f32 %v2775_v16, %v1404_v38  ;;  %v1662_v55 = vmul.f32 %v2775_v16, %v1405_v44  ;;  %v1153_v57 = vsub.f32 %v2308_v53, %v897_v54  ;;  %v2309_v59 = vld [vmem:[%s2757_s18 + $0xc98] sm:$0xff]  ;;  %v386_v0 = vld [vmem:[%s2749_s27 + $0x4a0] sm:$0xff]  ;;  %v387_v6 = vld [vmem:[%s2749_s27 + $0x4a8] sm:$0xff] }
  0xec   : > { %v1407_v56 = vmul.f32 %v1151_v45, %v382_v40  ;;  %v898_v60 = vld [vmem:[%s2757_s18 + $0x498] sm:$0xff]  ;;  %v1663_v61 = vmul.f32 %v2775_v16, %v1406_v50  ;;  %v1408_v62 = vmul.f32 %v1152_v51, %v383_v46  ;;  %v2310_v1 = vld [vmem:[%s2757_s18 + $0xca0] sm:$0xff]  ;;  %v2311_v7 = vld [vmem:[%s2757_s18 + $0xca8] sm:$0xff] }
  0xed   : > { %1917 = vst [vmem:[%s2790_s8 + $0x468] sm:$0xff] %v1661_v49  ;;  %v1154_v63 = vsub.f32 %v2309_v59, %v898_v60  ;;  %v899_v2 = vld [vmem:[%s2757_s18 + $0x4a0] sm:$0xff]  ;;  %1918 = vst [vmem:[%s2790_s8 + $0x470] sm:$0xff] %v1662_v55  ;;  %v1409_v4 = vmul.f32 %v1153_v57, %v384_v52  ;;  %v900_v8 = vld [vmem:[%s2757_s18 + $0x4a8] sm:$0xff] }
  0xee   : > { %v1664_v3 = vmul.f32 %v2775_v16, %v1407_v56  ;;  %v1155_v5 = vsub.f32 %v2310_v1, %v899_v2  ;;  %1919 = vst [vmem:[%s2790_s8 + $0x478] sm:$0xff] %v1663_v61  ;;  %v1665_v9 = vmul.f32 %v2775_v16, %v1408_v62  ;;  %v1156_v11 = vsub.f32 %v2311_v7, %v900_v8  ;;  %v388_v12 = vld [vmem:[%s2749_s27 + $0x4b0] sm:$0xff]  ;;  %v389_v19 = vld [vmem:[%s2749_s27 + $0x4b8] sm:$0xff]  ;;  %v390_v25 = vld [vmem:[%s2749_s27 + $0x4c0] sm:$0xff] }
  0xef   : > { %v1410_v10 = vmul.f32 %v1154_v63, %v385_v58  ;;  %v2312_v13 = vld [vmem:[%s2757_s18 + $0xcb0] sm:$0xff]  ;;  %v1666_v15 = vmul.f32 %v2775_v16, %v1409_v4  ;;  %v2313_v20 = vld [vmem:[%s2757_s18 + $0xcb8] sm:$0xff]  ;;  %v2314_v26 = vld [vmem:[%s2757_s18 + $0xcc0] sm:$0xff] }
  0xf0   : > { %v901_v14 = vld [vmem:[%s2757_s18 + $0x4b0] sm:$0xff]  ;;  %1920 = vst [vmem:[%s2790_s8 + $0x480] sm:$0xff] %v1664_v3  ;;  %v1411_v17 = vmul.f32 %v1155_v5, %v386_v0  ;;  %v902_v21 = vld [vmem:[%s2757_s18 + $0x4b8] sm:$0xff]  ;;  %1921 = vst [vmem:[%s2790_s8 + $0x488] sm:$0xff] %v1665_v9  ;;  %v1412_v23 = vmul.f32 %v1156_v11, %v387_v6 }
  0xf1   : > { %v1157_v18 = vsub.f32 %v2312_v13, %v901_v14  ;;  %v1667_v22 = vmul.f32 %v2775_v16, %v1410_v10  ;;  %v1158_v24 = vsub.f32 %v2313_v20, %v902_v21  ;;  %v903_v27 = vld [vmem:[%s2757_s18 + $0x4c0] sm:$0xff]  ;;  %1922 = vst [vmem:[%s2790_s8 + $0x490] sm:$0xff] %v1666_v15  ;;  %v391_v31 = vld [vmem:[%s2749_s27 + $0x4c8] sm:$0xff]  ;;  %v392_v37 = vld [vmem:[%s2749_s27 + $0x4d0] sm:$0xff] }
  0xf2   : > { %v1668_v28 = vmul.f32 %v2775_v16, %v1411_v17  ;;  %v1159_v30 = vsub.f32 %v2314_v26, %v903_v27  ;;  %v2315_v32 = vld [vmem:[%s2757_s18 + $0xcc8] sm:$0xff]  ;;  %v1669_v34 = vmul.f32 %v2775_v16, %v1412_v23  ;;  %v2316_v38 = vld [vmem:[%s2757_s18 + $0xcd0] sm:$0xff]  ;;  %v393_v43 = vld [vmem:[%s2749_s27 + $0x4d8] sm:$0xff] }
  0xf3   : > { %v1413_v29 = vmul.f32 %v1157_v18, %v388_v12  ;;  %v904_v33 = vld [vmem:[%s2757_s18 + $0x4c8] sm:$0xff]  ;;  %1923 = vst [vmem:[%s2790_s8 + $0x498] sm:$0xff] %v1667_v22  ;;  %v1414_v35 = vmul.f32 %v1158_v24, %v389_v19  ;;  %v905_v39 = vld [vmem:[%s2757_s18 + $0x4d0] sm:$0xff]  ;;  %v2317_v44 = vld [vmem:[%s2757_s18 + $0xcd8] sm:$0xff] }
  0xf4   : > { %v1160_v36 = vsub.f32 %v2315_v32, %v904_v33  ;;  %1924 = vst [vmem:[%s2790_s8 + $0x4a0] sm:$0xff] %v1668_v28  ;;  %v1415_v41 = vmul.f32 %v1159_v30, %v390_v25  ;;  %v1161_v42 = vsub.f32 %v2316_v38, %v905_v39  ;;  %v906_v45 = vld [vmem:[%s2757_s18 + $0x4d8] sm:$0xff]  ;;  %1925 = vst [vmem:[%s2790_s8 + $0x4a8] sm:$0xff] %v1669_v34  ;;  %v394_v49 = vld [vmem:[%s2749_s27 + $0x4e0] sm:$0xff] }
  0xf5   : > { %v1670_v40 = vmul.f32 %v2775_v16, %v1413_v29  ;;  %v1671_v46 = vmul.f32 %v2775_v16, %v1414_v35  ;;  %v1162_v48 = vsub.f32 %v2317_v44, %v906_v45  ;;  %v2318_v50 = vld [vmem:[%s2757_s18 + $0xce0] sm:$0xff]  ;;  %v395_v55 = vld [vmem:[%s2749_s27 + $0x4e8] sm:$0xff]  ;;  %v396_v61 = vld [vmem:[%s2749_s27 + $0x4f0] sm:$0xff] }
  0xf6   : > { %v1416_v47 = vmul.f32 %v1160_v36, %v391_v31  ;;  %v907_v51 = vld [vmem:[%s2757_s18 + $0x4e0] sm:$0xff]  ;;  %v1672_v52 = vmul.f32 %v2775_v16, %v1415_v41  ;;  %v1417_v53 = vmul.f32 %v1161_v42, %v392_v37  ;;  %v2319_v56 = vld [vmem:[%s2757_s18 + $0xce8] sm:$0xff]  ;;  %v2320_v62 = vld [vmem:[%s2757_s18 + $0xcf0] sm:$0xff] }
  0xf7   : > { %1926 = vst [vmem:[%s2790_s8 + $0x4b0] sm:$0xff] %v1670_v40  ;;  %v1163_v54 = vsub.f32 %v2318_v50, %v907_v51  ;;  %v908_v57 = vld [vmem:[%s2757_s18 + $0x4e8] sm:$0xff]  ;;  %1927 = vst [vmem:[%s2790_s8 + $0x4b8] sm:$0xff] %v1671_v46  ;;  %v1418_v59 = vmul.f32 %v1162_v48, %v393_v43  ;;  %v909_v63 = vld [vmem:[%s2757_s18 + $0x4f0] sm:$0xff] }
  0xf8   : > { %v1673_v58 = vmul.f32 %v2775_v16, %v1416_v47  ;;  %v1164_v60 = vsub.f32 %v2319_v56, %v908_v57  ;;  %1928 = vst [vmem:[%s2790_s8 + $0x4c0] sm:$0xff] %v1672_v52  ;;  %v1674_v0 = vmul.f32 %v2775_v16, %v1417_v53  ;;  %v1165_v2 = vsub.f32 %v2320_v62, %v909_v63  ;;  %v397_v3 = vld [vmem:[%s2749_s27 + $0x4f8] sm:$0xff]  ;;  %v398_v9 = vld [vmem:[%s2749_s27 + $0x500] sm:$0xff]  ;;  %v399_v15 = vld [vmem:[%s2749_s27 + $0x508] sm:$0xff] }
  0xf9   : > { %v1419_v1 = vmul.f32 %v1163_v54, %v394_v49  ;;  %v2321_v4 = vld [vmem:[%s2757_s18 + $0xcf8] sm:$0xff]  ;;  %v1675_v6 = vmul.f32 %v2775_v16, %v1418_v59  ;;  %v2322_v10 = vld [vmem:[%s2757_s18 + $0xd00] sm:$0xff]  ;;  %v2323_v17 = vld [vmem:[%s2757_s18 + $0xd08] sm:$0xff] }
  0xfa   : > { %v910_v5 = vld [vmem:[%s2757_s18 + $0x4f8] sm:$0xff]  ;;  %1929 = vst [vmem:[%s2790_s8 + $0x4c8] sm:$0xff] %v1673_v58  ;;  %v1420_v7 = vmul.f32 %v1164_v60, %v395_v55  ;;  %v911_v11 = vld [vmem:[%s2757_s18 + $0x500] sm:$0xff]  ;;  %1930 = vst [vmem:[%s2790_s8 + $0x4d0] sm:$0xff] %v1674_v0  ;;  %v1421_v13 = vmul.f32 %v1165_v2, %v396_v61 }
  0xfb   : > { %v1166_v8 = vsub.f32 %v2321_v4, %v910_v5  ;;  %v1676_v12 = vmul.f32 %v2775_v16, %v1419_v1  ;;  %v1167_v14 = vsub.f32 %v2322_v10, %v911_v11  ;;  %v912_v18 = vld [vmem:[%s2757_s18 + $0x508] sm:$0xff]  ;;  %1931 = vst [vmem:[%s2790_s8 + $0x4d8] sm:$0xff] %v1675_v6  ;;  %v400_v22 = vld [vmem:[%s2749_s27 + $0x510] sm:$0xff]  ;;  %v401_v28 = vld [vmem:[%s2749_s27 + $0x518] sm:$0xff] }
  0xfc   : > { %v1677_v19 = vmul.f32 %v2775_v16, %v1420_v7  ;;  %v1168_v21 = vsub.f32 %v2323_v17, %v912_v18  ;;  %v2324_v23 = vld [vmem:[%s2757_s18 + $0xd10] sm:$0xff]  ;;  %v1678_v25 = vmul.f32 %v2775_v16, %v1421_v13  ;;  %v2325_v29 = vld [vmem:[%s2757_s18 + $0xd18] sm:$0xff]  ;;  %v402_v34 = vld [vmem:[%s2749_s27 + $0x520] sm:$0xff] }
  0xfd   : > { %v1422_v20 = vmul.f32 %v1166_v8, %v397_v3  ;;  %v913_v24 = vld [vmem:[%s2757_s18 + $0x510] sm:$0xff]  ;;  %1932 = vst [vmem:[%s2790_s8 + $0x4e0] sm:$0xff] %v1676_v12  ;;  %v1423_v26 = vmul.f32 %v1167_v14, %v398_v9  ;;  %v914_v30 = vld [vmem:[%s2757_s18 + $0x518] sm:$0xff]  ;;  %v2326_v35 = vld [vmem:[%s2757_s18 + $0xd20] sm:$0xff] }
  0xfe   : > { %v1169_v27 = vsub.f32 %v2324_v23, %v913_v24  ;;  %1933 = vst [vmem:[%s2790_s8 + $0x4e8] sm:$0xff] %v1677_v19  ;;  %v1424_v32 = vmul.f32 %v1168_v21, %v399_v15  ;;  %v1170_v33 = vsub.f32 %v2325_v29, %v914_v30  ;;  %v915_v36 = vld [vmem:[%s2757_s18 + $0x520] sm:$0xff]  ;;  %1934 = vst [vmem:[%s2790_s8 + $0x4f0] sm:$0xff] %v1678_v25  ;;  %v403_v40 = vld [vmem:[%s2749_s27 + $0x528] sm:$0xff] }
  0xff   : > { %v1679_v31 = vmul.f32 %v2775_v16, %v1422_v20  ;;  %v1680_v37 = vmul.f32 %v2775_v16, %v1423_v26  ;;  %v1171_v39 = vsub.f32 %v2326_v35, %v915_v36  ;;  %v2327_v41 = vld [vmem:[%s2757_s18 + $0xd28] sm:$0xff]  ;;  %v404_v46 = vld [vmem:[%s2749_s27 + $0x530] sm:$0xff]  ;;  %v405_v52 = vld [vmem:[%s2749_s27 + $0x538] sm:$0xff] }
 0x100   : > { %v1425_v38 = vmul.f32 %v1169_v27, %v400_v22  ;;  %v916_v42 = vld [vmem:[%s2757_s18 + $0x528] sm:$0xff]  ;;  %v1681_v43 = vmul.f32 %v2775_v16, %v1424_v32  ;;  %v1426_v44 = vmul.f32 %v1170_v33, %v401_v28  ;;  %v2328_v47 = vld [vmem:[%s2757_s18 + $0xd30] sm:$0xff]  ;;  %v2329_v53 = vld [vmem:[%s2757_s18 + $0xd38] sm:$0xff] }
 0x101   : > { %1935 = vst [vmem:[%s2790_s8 + $0x4f8] sm:$0xff] %v1679_v31  ;;  %v1172_v45 = vsub.f32 %v2327_v41, %v916_v42  ;;  %v917_v48 = vld [vmem:[%s2757_s18 + $0x530] sm:$0xff]  ;;  %1936 = vst [vmem:[%s2790_s8 + $0x500] sm:$0xff] %v1680_v37  ;;  %v1427_v50 = vmul.f32 %v1171_v39, %v402_v34  ;;  %v918_v54 = vld [vmem:[%s2757_s18 + $0x538] sm:$0xff] }
 0x102   : > { %v1682_v49 = vmul.f32 %v2775_v16, %v1425_v38  ;;  %v1173_v51 = vsub.f32 %v2328_v47, %v917_v48  ;;  %1937 = vst [vmem:[%s2790_s8 + $0x508] sm:$0xff] %v1681_v43  ;;  %v1683_v55 = vmul.f32 %v2775_v16, %v1426_v44  ;;  %v1174_v57 = vsub.f32 %v2329_v53, %v918_v54  ;;  %v406_v58 = vld [vmem:[%s2749_s27 + $0x540] sm:$0xff]  ;;  %v407_v0 = vld [vmem:[%s2749_s27 + $0x548] sm:$0xff]  ;;  %v408_v6 = vld [vmem:[%s2749_s27 + $0x550] sm:$0xff] }
 0x103   : > { %v1428_v56 = vmul.f32 %v1172_v45, %v403_v40  ;;  %v2330_v59 = vld [vmem:[%s2757_s18 + $0xd40] sm:$0xff]  ;;  %v1684_v61 = vmul.f32 %v2775_v16, %v1427_v50  ;;  %v2331_v1 = vld [vmem:[%s2757_s18 + $0xd48] sm:$0xff]  ;;  %v2332_v7 = vld [vmem:[%s2757_s18 + $0xd50] sm:$0xff] }
 0x104   : > { %v919_v60 = vld [vmem:[%s2757_s18 + $0x540] sm:$0xff]  ;;  %1938 = vst [vmem:[%s2790_s8 + $0x510] sm:$0xff] %v1682_v49  ;;  %v1429_v62 = vmul.f32 %v1173_v51, %v404_v46  ;;  %v920_v2 = vld [vmem:[%s2757_s18 + $0x548] sm:$0xff]  ;;  %1939 = vst [vmem:[%s2790_s8 + $0x518] sm:$0xff] %v1683_v55  ;;  %v1430_v4 = vmul.f32 %v1174_v57, %v405_v52 }
 0x105   : > { %v1175_v63 = vsub.f32 %v2330_v59, %v919_v60  ;;  %v1685_v3 = vmul.f32 %v2775_v16, %v1428_v56  ;;  %v1176_v5 = vsub.f32 %v2331_v1, %v920_v2  ;;  %v921_v8 = vld [vmem:[%s2757_s18 + $0x550] sm:$0xff]  ;;  %1940 = vst [vmem:[%s2790_s8 + $0x520] sm:$0xff] %v1684_v61  ;;  %v409_v12 = vld [vmem:[%s2749_s27 + $0x558] sm:$0xff]  ;;  %v410_v19 = vld [vmem:[%s2749_s27 + $0x560] sm:$0xff] }
 0x106   : > { %v1686_v9 = vmul.f32 %v2775_v16, %v1429_v62  ;;  %v1177_v11 = vsub.f32 %v2332_v7, %v921_v8  ;;  %v2333_v13 = vld [vmem:[%s2757_s18 + $0xd58] sm:$0xff]  ;;  %v1687_v15 = vmul.f32 %v2775_v16, %v1430_v4  ;;  %v2334_v20 = vld [vmem:[%s2757_s18 + $0xd60] sm:$0xff]  ;;  %v411_v25 = vld [vmem:[%s2749_s27 + $0x568] sm:$0xff] }
 0x107   : > { %v1431_v10 = vmul.f32 %v1175_v63, %v406_v58  ;;  %v922_v14 = vld [vmem:[%s2757_s18 + $0x558] sm:$0xff]  ;;  %1941 = vst [vmem:[%s2790_s8 + $0x528] sm:$0xff] %v1685_v3  ;;  %v1432_v17 = vmul.f32 %v1176_v5, %v407_v0  ;;  %v923_v21 = vld [vmem:[%s2757_s18 + $0x560] sm:$0xff]  ;;  %v2335_v26 = vld [vmem:[%s2757_s18 + $0xd68] sm:$0xff] }
 0x108   : > { %v1178_v18 = vsub.f32 %v2333_v13, %v922_v14  ;;  %1942 = vst [vmem:[%s2790_s8 + $0x530] sm:$0xff] %v1686_v9  ;;  %v1433_v23 = vmul.f32 %v1177_v11, %v408_v6  ;;  %v1179_v24 = vsub.f32 %v2334_v20, %v923_v21  ;;  %v924_v27 = vld [vmem:[%s2757_s18 + $0x568] sm:$0xff]  ;;  %1943 = vst [vmem:[%s2790_s8 + $0x538] sm:$0xff] %v1687_v15  ;;  %v412_v31 = vld [vmem:[%s2749_s27 + $0x570] sm:$0xff] }
 0x109   : > { %v1688_v22 = vmul.f32 %v2775_v16, %v1431_v10  ;;  %v1689_v28 = vmul.f32 %v2775_v16, %v1432_v17  ;;  %v1180_v30 = vsub.f32 %v2335_v26, %v924_v27  ;;  %v2336_v32 = vld [vmem:[%s2757_s18 + $0xd70] sm:$0xff]  ;;  %v413_v37 = vld [vmem:[%s2749_s27 + $0x578] sm:$0xff]  ;;  %v414_v43 = vld [vmem:[%s2749_s27 + $0x580] sm:$0xff] }
 0x10a   : > { %v1434_v29 = vmul.f32 %v1178_v18, %v409_v12  ;;  %v925_v33 = vld [vmem:[%s2757_s18 + $0x570] sm:$0xff]  ;;  %v1690_v34 = vmul.f32 %v2775_v16, %v1433_v23  ;;  %v1435_v35 = vmul.f32 %v1179_v24, %v410_v19  ;;  %v2337_v38 = vld [vmem:[%s2757_s18 + $0xd78] sm:$0xff]  ;;  %v2338_v44 = vld [vmem:[%s2757_s18 + $0xd80] sm:$0xff] }
 0x10b   : > { %1944 = vst [vmem:[%s2790_s8 + $0x540] sm:$0xff] %v1688_v22  ;;  %v1181_v36 = vsub.f32 %v2336_v32, %v925_v33  ;;  %v926_v39 = vld [vmem:[%s2757_s18 + $0x578] sm:$0xff]  ;;  %1945 = vst [vmem:[%s2790_s8 + $0x548] sm:$0xff] %v1689_v28  ;;  %v1436_v41 = vmul.f32 %v1180_v30, %v411_v25  ;;  %v927_v45 = vld [vmem:[%s2757_s18 + $0x580] sm:$0xff] }
 0x10c   : > { %v1691_v40 = vmul.f32 %v2775_v16, %v1434_v29  ;;  %v1182_v42 = vsub.f32 %v2337_v38, %v926_v39  ;;  %1946 = vst [vmem:[%s2790_s8 + $0x550] sm:$0xff] %v1690_v34  ;;  %v1692_v46 = vmul.f32 %v2775_v16, %v1435_v35  ;;  %v1183_v48 = vsub.f32 %v2338_v44, %v927_v45  ;;  %v415_v49 = vld [vmem:[%s2749_s27 + $0x588] sm:$0xff]  ;;  %v416_v55 = vld [vmem:[%s2749_s27 + $0x590] sm:$0xff]  ;;  %v417_v61 = vld [vmem:[%s2749_s27 + $0x598] sm:$0xff] }
 0x10d   : > { %v1437_v47 = vmul.f32 %v1181_v36, %v412_v31  ;;  %v2339_v50 = vld [vmem:[%s2757_s18 + $0xd88] sm:$0xff]  ;;  %v1693_v52 = vmul.f32 %v2775_v16, %v1436_v41  ;;  %v2340_v56 = vld [vmem:[%s2757_s18 + $0xd90] sm:$0xff]  ;;  %v2341_v62 = vld [vmem:[%s2757_s18 + $0xd98] sm:$0xff] }
 0x10e   : > { %v928_v51 = vld [vmem:[%s2757_s18 + $0x588] sm:$0xff]  ;;  %1947 = vst [vmem:[%s2790_s8 + $0x558] sm:$0xff] %v1691_v40  ;;  %v1438_v53 = vmul.f32 %v1182_v42, %v413_v37  ;;  %v929_v57 = vld [vmem:[%s2757_s18 + $0x590] sm:$0xff]  ;;  %1948 = vst [vmem:[%s2790_s8 + $0x560] sm:$0xff] %v1692_v46  ;;  %v1439_v59 = vmul.f32 %v1183_v48, %v414_v43 }
 0x10f   : > { %v1184_v54 = vsub.f32 %v2339_v50, %v928_v51  ;;  %v1694_v58 = vmul.f32 %v2775_v16, %v1437_v47  ;;  %v1185_v60 = vsub.f32 %v2340_v56, %v929_v57  ;;  %v930_v63 = vld [vmem:[%s2757_s18 + $0x598] sm:$0xff]  ;;  %1949 = vst [vmem:[%s2790_s8 + $0x568] sm:$0xff] %v1693_v52  ;;  %v418_v3 = vld [vmem:[%s2749_s27 + $0x5a0] sm:$0xff]  ;;  %v419_v9 = vld [vmem:[%s2749_s27 + $0x5a8] sm:$0xff] }
 0x110   : > { %v1695_v0 = vmul.f32 %v2775_v16, %v1438_v53  ;;  %v1186_v2 = vsub.f32 %v2341_v62, %v930_v63  ;;  %v2342_v4 = vld [vmem:[%s2757_s18 + $0xda0] sm:$0xff]  ;;  %v1696_v6 = vmul.f32 %v2775_v16, %v1439_v59  ;;  %v2343_v10 = vld [vmem:[%s2757_s18 + $0xda8] sm:$0xff]  ;;  %v420_v15 = vld [vmem:[%s2749_s27 + $0x5b0] sm:$0xff] }
 0x111   : > { %v1440_v1 = vmul.f32 %v1184_v54, %v415_v49  ;;  %v931_v5 = vld [vmem:[%s2757_s18 + $0x5a0] sm:$0xff]  ;;  %1950 = vst [vmem:[%s2790_s8 + $0x570] sm:$0xff] %v1694_v58  ;;  %v1441_v7 = vmul.f32 %v1185_v60, %v416_v55  ;;  %v932_v11 = vld [vmem:[%s2757_s18 + $0x5a8] sm:$0xff]  ;;  %v2344_v17 = vld [vmem:[%s2757_s18 + $0xdb0] sm:$0xff] }
 0x112   : > { %v1187_v8 = vsub.f32 %v2342_v4, %v931_v5  ;;  %1951 = vst [vmem:[%s2790_s8 + $0x578] sm:$0xff] %v1695_v0  ;;  %v1442_v13 = vmul.f32 %v1186_v2, %v417_v61  ;;  %v1188_v14 = vsub.f32 %v2343_v10, %v932_v11  ;;  %v933_v18 = vld [vmem:[%s2757_s18 + $0x5b0] sm:$0xff]  ;;  %1952 = vst [vmem:[%s2790_s8 + $0x580] sm:$0xff] %v1696_v6  ;;  %v421_v22 = vld [vmem:[%s2749_s27 + $0x5b8] sm:$0xff] }
 0x113   : > { %v1697_v12 = vmul.f32 %v2775_v16, %v1440_v1  ;;  %v1698_v19 = vmul.f32 %v2775_v16, %v1441_v7  ;;  %v1189_v21 = vsub.f32 %v2344_v17, %v933_v18  ;;  %v2345_v23 = vld [vmem:[%s2757_s18 + $0xdb8] sm:$0xff]  ;;  %v422_v28 = vld [vmem:[%s2749_s27 + $0x5c0] sm:$0xff]  ;;  %v423_v34 = vld [vmem:[%s2749_s27 + $0x5c8] sm:$0xff] }
 0x114   : > { %v1443_v20 = vmul.f32 %v1187_v8, %v418_v3  ;;  %v934_v24 = vld [vmem:[%s2757_s18 + $0x5b8] sm:$0xff]  ;;  %v1699_v25 = vmul.f32 %v2775_v16, %v1442_v13  ;;  %v1444_v26 = vmul.f32 %v1188_v14, %v419_v9  ;;  %v2346_v29 = vld [vmem:[%s2757_s18 + $0xdc0] sm:$0xff]  ;;  %v2347_v35 = vld [vmem:[%s2757_s18 + $0xdc8] sm:$0xff] }
 0x115   : > { %1953 = vst [vmem:[%s2790_s8 + $0x588] sm:$0xff] %v1697_v12  ;;  %v1190_v27 = vsub.f32 %v2345_v23, %v934_v24  ;;  %v935_v30 = vld [vmem:[%s2757_s18 + $0x5c0] sm:$0xff]  ;;  %1954 = vst [vmem:[%s2790_s8 + $0x590] sm:$0xff] %v1698_v19  ;;  %v1445_v32 = vmul.f32 %v1189_v21, %v420_v15  ;;  %v936_v36 = vld [vmem:[%s2757_s18 + $0x5c8] sm:$0xff] }
 0x116   : > { %v1700_v31 = vmul.f32 %v2775_v16, %v1443_v20  ;;  %v1191_v33 = vsub.f32 %v2346_v29, %v935_v30  ;;  %1955 = vst [vmem:[%s2790_s8 + $0x598] sm:$0xff] %v1699_v25  ;;  %v1701_v37 = vmul.f32 %v2775_v16, %v1444_v26  ;;  %v1192_v39 = vsub.f32 %v2347_v35, %v936_v36  ;;  %v424_v40 = vld [vmem:[%s2749_s27 + $0x5d0] sm:$0xff]  ;;  %v425_v46 = vld [vmem:[%s2749_s27 + $0x5d8] sm:$0xff]  ;;  %v426_v52 = vld [vmem:[%s2749_s27 + $0x5e0] sm:$0xff] }
 0x117   : > { %v1446_v38 = vmul.f32 %v1190_v27, %v421_v22  ;;  %v2348_v41 = vld [vmem:[%s2757_s18 + $0xdd0] sm:$0xff]  ;;  %v1702_v43 = vmul.f32 %v2775_v16, %v1445_v32  ;;  %v2349_v47 = vld [vmem:[%s2757_s18 + $0xdd8] sm:$0xff]  ;;  %v2350_v53 = vld [vmem:[%s2757_s18 + $0xde0] sm:$0xff] }
 0x118   : > { %v937_v42 = vld [vmem:[%s2757_s18 + $0x5d0] sm:$0xff]  ;;  %1956 = vst [vmem:[%s2790_s8 + $0x5a0] sm:$0xff] %v1700_v31  ;;  %v1447_v44 = vmul.f32 %v1191_v33, %v422_v28  ;;  %v938_v48 = vld [vmem:[%s2757_s18 + $0x5d8] sm:$0xff]  ;;  %1957 = vst [vmem:[%s2790_s8 + $0x5a8] sm:$0xff] %v1701_v37  ;;  %v1448_v50 = vmul.f32 %v1192_v39, %v423_v34 }
 0x119   : > { %v1193_v45 = vsub.f32 %v2348_v41, %v937_v42  ;;  %v1703_v49 = vmul.f32 %v2775_v16, %v1446_v38  ;;  %v1194_v51 = vsub.f32 %v2349_v47, %v938_v48  ;;  %v939_v54 = vld [vmem:[%s2757_s18 + $0x5e0] sm:$0xff]  ;;  %1958 = vst [vmem:[%s2790_s8 + $0x5b0] sm:$0xff] %v1702_v43  ;;  %v427_v58 = vld [vmem:[%s2749_s27 + $0x5e8] sm:$0xff]  ;;  %v428_v0 = vld [vmem:[%s2749_s27 + $0x5f0] sm:$0xff] }
 0x11a   : > { %v1704_v55 = vmul.f32 %v2775_v16, %v1447_v44  ;;  %v1195_v57 = vsub.f32 %v2350_v53, %v939_v54  ;;  %v2351_v59 = vld [vmem:[%s2757_s18 + $0xde8] sm:$0xff]  ;;  %v1705_v61 = vmul.f32 %v2775_v16, %v1448_v50  ;;  %v2352_v1 = vld [vmem:[%s2757_s18 + $0xdf0] sm:$0xff]  ;;  %v429_v6 = vld [vmem:[%s2749_s27 + $0x5f8] sm:$0xff] }
 0x11b   : > { %v1449_v56 = vmul.f32 %v1193_v45, %v424_v40  ;;  %v940_v60 = vld [vmem:[%s2757_s18 + $0x5e8] sm:$0xff]  ;;  %1959 = vst [vmem:[%s2790_s8 + $0x5b8] sm:$0xff] %v1703_v49  ;;  %v1450_v62 = vmul.f32 %v1194_v51, %v425_v46  ;;  %v941_v2 = vld [vmem:[%s2757_s18 + $0x5f0] sm:$0xff]  ;;  %v2353_v7 = vld [vmem:[%s2757_s18 + $0xdf8] sm:$0xff] }
 0x11c   : > { %v1196_v63 = vsub.f32 %v2351_v59, %v940_v60  ;;  %1960 = vst [vmem:[%s2790_s8 + $0x5c0] sm:$0xff] %v1704_v55  ;;  %v1451_v4 = vmul.f32 %v1195_v57, %v426_v52  ;;  %v1197_v5 = vsub.f32 %v2352_v1, %v941_v2  ;;  %v942_v8 = vld [vmem:[%s2757_s18 + $0x5f8] sm:$0xff]  ;;  %1961 = vst [vmem:[%s2790_s8 + $0x5c8] sm:$0xff] %v1705_v61  ;;  %v430_v12 = vld [vmem:[%s2749_s27 + $0x600] sm:$0xff] }
 0x11d   : > { %v1706_v3 = vmul.f32 %v2775_v16, %v1449_v56  ;;  %v1707_v9 = vmul.f32 %v2775_v16, %v1450_v62  ;;  %v1198_v11 = vsub.f32 %v2353_v7, %v942_v8  ;;  %v2354_v13 = vld [vmem:[%s2757_s18 + $0xe00] sm:$0xff]  ;;  %v431_v19 = vld [vmem:[%s2749_s27 + $0x608] sm:$0xff]  ;;  %v432_v25 = vld [vmem:[%s2749_s27 + $0x610] sm:$0xff] }
 0x11e   : > { %v1452_v10 = vmul.f32 %v1196_v63, %v427_v58  ;;  %v943_v14 = vld [vmem:[%s2757_s18 + $0x600] sm:$0xff]  ;;  %v1708_v15 = vmul.f32 %v2775_v16, %v1451_v4  ;;  %v1453_v17 = vmul.f32 %v1197_v5, %v428_v0  ;;  %v2355_v20 = vld [vmem:[%s2757_s18 + $0xe08] sm:$0xff]  ;;  %v2356_v26 = vld [vmem:[%s2757_s18 + $0xe10] sm:$0xff] }
 0x11f   : > { %1962 = vst [vmem:[%s2790_s8 + $0x5d0] sm:$0xff] %v1706_v3  ;;  %v1199_v18 = vsub.f32 %v2354_v13, %v943_v14  ;;  %v944_v21 = vld [vmem:[%s2757_s18 + $0x608] sm:$0xff]  ;;  %1963 = vst [vmem:[%s2790_s8 + $0x5d8] sm:$0xff] %v1707_v9  ;;  %v1454_v23 = vmul.f32 %v1198_v11, %v429_v6  ;;  %v945_v27 = vld [vmem:[%s2757_s18 + $0x610] sm:$0xff] }
 0x120   : > { %v1709_v22 = vmul.f32 %v2775_v16, %v1452_v10  ;;  %v1200_v24 = vsub.f32 %v2355_v20, %v944_v21  ;;  %1964 = vst [vmem:[%s2790_s8 + $0x5e0] sm:$0xff] %v1708_v15  ;;  %v1710_v28 = vmul.f32 %v2775_v16, %v1453_v17  ;;  %v1201_v30 = vsub.f32 %v2356_v26, %v945_v27  ;;  %v433_v31 = vld [vmem:[%s2749_s27 + $0x618] sm:$0xff]  ;;  %v434_v37 = vld [vmem:[%s2749_s27 + $0x620] sm:$0xff]  ;;  %v435_v43 = vld [vmem:[%s2749_s27 + $0x628] sm:$0xff] }
 0x121   : > { %v1455_v29 = vmul.f32 %v1199_v18, %v430_v12  ;;  %v2357_v32 = vld [vmem:[%s2757_s18 + $0xe18] sm:$0xff]  ;;  %v1711_v34 = vmul.f32 %v2775_v16, %v1454_v23  ;;  %v2358_v38 = vld [vmem:[%s2757_s18 + $0xe20] sm:$0xff]  ;;  %v2359_v44 = vld [vmem:[%s2757_s18 + $0xe28] sm:$0xff] }
 0x122   : > { %v946_v33 = vld [vmem:[%s2757_s18 + $0x618] sm:$0xff]  ;;  %1965 = vst [vmem:[%s2790_s8 + $0x5e8] sm:$0xff] %v1709_v22  ;;  %v1456_v35 = vmul.f32 %v1200_v24, %v431_v19  ;;  %v947_v39 = vld [vmem:[%s2757_s18 + $0x620] sm:$0xff]  ;;  %1966 = vst [vmem:[%s2790_s8 + $0x5f0] sm:$0xff] %v1710_v28  ;;  %v1457_v41 = vmul.f32 %v1201_v30, %v432_v25 }
 0x123   : > { %v1202_v36 = vsub.f32 %v2357_v32, %v946_v33  ;;  %v1712_v40 = vmul.f32 %v2775_v16, %v1455_v29  ;;  %v1203_v42 = vsub.f32 %v2358_v38, %v947_v39  ;;  %v948_v45 = vld [vmem:[%s2757_s18 + $0x628] sm:$0xff]  ;;  %1967 = vst [vmem:[%s2790_s8 + $0x5f8] sm:$0xff] %v1711_v34  ;;  %v436_v49 = vld [vmem:[%s2749_s27 + $0x630] sm:$0xff]  ;;  %v437_v55 = vld [vmem:[%s2749_s27 + $0x638] sm:$0xff] }
 0x124   : > { %v1713_v46 = vmul.f32 %v2775_v16, %v1456_v35  ;;  %v1204_v48 = vsub.f32 %v2359_v44, %v948_v45  ;;  %v2360_v50 = vld [vmem:[%s2757_s18 + $0xe30] sm:$0xff]  ;;  %v1714_v52 = vmul.f32 %v2775_v16, %v1457_v41  ;;  %v2361_v56 = vld [vmem:[%s2757_s18 + $0xe38] sm:$0xff]  ;;  %v438_v61 = vld [vmem:[%s2749_s27 + $0x640] sm:$0xff] }
 0x125   : > { %v1458_v47 = vmul.f32 %v1202_v36, %v433_v31  ;;  %v949_v51 = vld [vmem:[%s2757_s18 + $0x630] sm:$0xff]  ;;  %1968 = vst [vmem:[%s2790_s8 + $0x600] sm:$0xff] %v1712_v40  ;;  %v1459_v53 = vmul.f32 %v1203_v42, %v434_v37  ;;  %v950_v57 = vld [vmem:[%s2757_s18 + $0x638] sm:$0xff]  ;;  %v2362_v62 = vld [vmem:[%s2757_s18 + $0xe40] sm:$0xff] }
 0x126   : > { %v1205_v54 = vsub.f32 %v2360_v50, %v949_v51  ;;  %1969 = vst [vmem:[%s2790_s8 + $0x608] sm:$0xff] %v1713_v46  ;;  %v1460_v59 = vmul.f32 %v1204_v48, %v435_v43  ;;  %v1206_v60 = vsub.f32 %v2361_v56, %v950_v57  ;;  %v951_v63 = vld [vmem:[%s2757_s18 + $0x640] sm:$0xff]  ;;  %1970 = vst [vmem:[%s2790_s8 + $0x610] sm:$0xff] %v1714_v52  ;;  %v439_v3 = vld [vmem:[%s2749_s27 + $0x648] sm:$0xff] }
 0x127   : > { %v1715_v58 = vmul.f32 %v2775_v16, %v1458_v47  ;;  %v1716_v0 = vmul.f32 %v2775_v16, %v1459_v53  ;;  %v1207_v2 = vsub.f32 %v2362_v62, %v951_v63  ;;  %v2363_v4 = vld [vmem:[%s2757_s18 + $0xe48] sm:$0xff]  ;;  %v440_v9 = vld [vmem:[%s2749_s27 + $0x650] sm:$0xff]  ;;  %v441_v15 = vld [vmem:[%s2749_s27 + $0x658] sm:$0xff] }
 0x128   : > { %v1461_v1 = vmul.f32 %v1205_v54, %v436_v49  ;;  %v952_v5 = vld [vmem:[%s2757_s18 + $0x648] sm:$0xff]  ;;  %v1717_v6 = vmul.f32 %v2775_v16, %v1460_v59  ;;  %v1462_v7 = vmul.f32 %v1206_v60, %v437_v55  ;;  %v2364_v10 = vld [vmem:[%s2757_s18 + $0xe50] sm:$0xff]  ;;  %v2365_v17 = vld [vmem:[%s2757_s18 + $0xe58] sm:$0xff] }
 0x129   : > { %1971 = vst [vmem:[%s2790_s8 + $0x618] sm:$0xff] %v1715_v58  ;;  %v1208_v8 = vsub.f32 %v2363_v4, %v952_v5  ;;  %v953_v11 = vld [vmem:[%s2757_s18 + $0x650] sm:$0xff]  ;;  %1972 = vst [vmem:[%s2790_s8 + $0x620] sm:$0xff] %v1716_v0  ;;  %v1463_v13 = vmul.f32 %v1207_v2, %v438_v61  ;;  %v954_v18 = vld [vmem:[%s2757_s18 + $0x658] sm:$0xff] }
 0x12a   : > { %v1718_v12 = vmul.f32 %v2775_v16, %v1461_v1  ;;  %v1209_v14 = vsub.f32 %v2364_v10, %v953_v11  ;;  %1973 = vst [vmem:[%s2790_s8 + $0x628] sm:$0xff] %v1717_v6  ;;  %v1719_v19 = vmul.f32 %v2775_v16, %v1462_v7  ;;  %v1210_v21 = vsub.f32 %v2365_v17, %v954_v18  ;;  %v442_v22 = vld [vmem:[%s2749_s27 + $0x660] sm:$0xff]  ;;  %v443_v28 = vld [vmem:[%s2749_s27 + $0x668] sm:$0xff]  ;;  %v444_v34 = vld [vmem:[%s2749_s27 + $0x670] sm:$0xff] }
 0x12b   : > { %v1464_v20 = vmul.f32 %v1208_v8, %v439_v3  ;;  %v2366_v23 = vld [vmem:[%s2757_s18 + $0xe60] sm:$0xff]  ;;  %v1720_v25 = vmul.f32 %v2775_v16, %v1463_v13  ;;  %v2367_v29 = vld [vmem:[%s2757_s18 + $0xe68] sm:$0xff]  ;;  %v2368_v35 = vld [vmem:[%s2757_s18 + $0xe70] sm:$0xff] }
 0x12c   : > { %v955_v24 = vld [vmem:[%s2757_s18 + $0x660] sm:$0xff]  ;;  %1974 = vst [vmem:[%s2790_s8 + $0x630] sm:$0xff] %v1718_v12  ;;  %v1465_v26 = vmul.f32 %v1209_v14, %v440_v9  ;;  %v956_v30 = vld [vmem:[%s2757_s18 + $0x668] sm:$0xff]  ;;  %1975 = vst [vmem:[%s2790_s8 + $0x638] sm:$0xff] %v1719_v19  ;;  %v1466_v32 = vmul.f32 %v1210_v21, %v441_v15 }
 0x12d   : > { %v1211_v27 = vsub.f32 %v2366_v23, %v955_v24  ;;  %v1721_v31 = vmul.f32 %v2775_v16, %v1464_v20  ;;  %v1212_v33 = vsub.f32 %v2367_v29, %v956_v30  ;;  %v957_v36 = vld [vmem:[%s2757_s18 + $0x670] sm:$0xff]  ;;  %1976 = vst [vmem:[%s2790_s8 + $0x640] sm:$0xff] %v1720_v25  ;;  %v445_v40 = vld [vmem:[%s2749_s27 + $0x678] sm:$0xff]  ;;  %v446_v46 = vld [vmem:[%s2749_s27 + $0x680] sm:$0xff] }
 0x12e   : > { %v1722_v37 = vmul.f32 %v2775_v16, %v1465_v26  ;;  %v1213_v39 = vsub.f32 %v2368_v35, %v957_v36  ;;  %v2369_v41 = vld [vmem:[%s2757_s18 + $0xe78] sm:$0xff]  ;;  %v1723_v43 = vmul.f32 %v2775_v16, %v1466_v32  ;;  %v2370_v47 = vld [vmem:[%s2757_s18 + $0xe80] sm:$0xff]  ;;  %v447_v52 = vld [vmem:[%s2749_s27 + $0x688] sm:$0xff] }
 0x12f   : > { %v1467_v38 = vmul.f32 %v1211_v27, %v442_v22  ;;  %v958_v42 = vld [vmem:[%s2757_s18 + $0x678] sm:$0xff]  ;;  %1977 = vst [vmem:[%s2790_s8 + $0x648] sm:$0xff] %v1721_v31  ;;  %v1468_v44 = vmul.f32 %v1212_v33, %v443_v28  ;;  %v959_v48 = vld [vmem:[%s2757_s18 + $0x680] sm:$0xff]  ;;  %v2371_v53 = vld [vmem:[%s2757_s18 + $0xe88] sm:$0xff] }
 0x130   : > { %v1214_v45 = vsub.f32 %v2369_v41, %v958_v42  ;;  %1978 = vst [vmem:[%s2790_s8 + $0x650] sm:$0xff] %v1722_v37  ;;  %v1469_v50 = vmul.f32 %v1213_v39, %v444_v34  ;;  %v1215_v51 = vsub.f32 %v2370_v47, %v959_v48  ;;  %v960_v54 = vld [vmem:[%s2757_s18 + $0x688] sm:$0xff]  ;;  %1979 = vst [vmem:[%s2790_s8 + $0x658] sm:$0xff] %v1723_v43  ;;  %v448_v58 = vld [vmem:[%s2749_s27 + $0x690] sm:$0xff] }
 0x131   : > { %v1724_v49 = vmul.f32 %v2775_v16, %v1467_v38  ;;  %v1725_v55 = vmul.f32 %v2775_v16, %v1468_v44  ;;  %v1216_v57 = vsub.f32 %v2371_v53, %v960_v54  ;;  %v2372_v59 = vld [vmem:[%s2757_s18 + $0xe90] sm:$0xff]  ;;  %v449_v0 = vld [vmem:[%s2749_s27 + $0x698] sm:$0xff]  ;;  %v450_v6 = vld [vmem:[%s2749_s27 + $0x6a0] sm:$0xff] }
 0x132   : > { %v1470_v56 = vmul.f32 %v1214_v45, %v445_v40  ;;  %v961_v60 = vld [vmem:[%s2757_s18 + $0x690] sm:$0xff]  ;;  %v1726_v61 = vmul.f32 %v2775_v16, %v1469_v50  ;;  %v1471_v62 = vmul.f32 %v1215_v51, %v446_v46  ;;  %v2373_v1 = vld [vmem:[%s2757_s18 + $0xe98] sm:$0xff]  ;;  %v2374_v7 = vld [vmem:[%s2757_s18 + $0xea0] sm:$0xff] }
 0x133   : > { %1980 = vst [vmem:[%s2790_s8 + $0x660] sm:$0xff] %v1724_v49  ;;  %v1217_v63 = vsub.f32 %v2372_v59, %v961_v60  ;;  %v962_v2 = vld [vmem:[%s2757_s18 + $0x698] sm:$0xff]  ;;  %1981 = vst [vmem:[%s2790_s8 + $0x668] sm:$0xff] %v1725_v55  ;;  %v1472_v4 = vmul.f32 %v1216_v57, %v447_v52  ;;  %v963_v8 = vld [vmem:[%s2757_s18 + $0x6a0] sm:$0xff] }
 0x134   : > { %v1727_v3 = vmul.f32 %v2775_v16, %v1470_v56  ;;  %v1218_v5 = vsub.f32 %v2373_v1, %v962_v2  ;;  %1982 = vst [vmem:[%s2790_s8 + $0x670] sm:$0xff] %v1726_v61  ;;  %v1728_v9 = vmul.f32 %v2775_v16, %v1471_v62  ;;  %v1219_v11 = vsub.f32 %v2374_v7, %v963_v8  ;;  %v451_v12 = vld [vmem:[%s2749_s27 + $0x6a8] sm:$0xff]  ;;  %v452_v19 = vld [vmem:[%s2749_s27 + $0x6b0] sm:$0xff]  ;;  %v453_v25 = vld [vmem:[%s2749_s27 + $0x6b8] sm:$0xff] }
 0x135   : > { %v1473_v10 = vmul.f32 %v1217_v63, %v448_v58  ;;  %v2375_v13 = vld [vmem:[%s2757_s18 + $0xea8] sm:$0xff]  ;;  %v1729_v15 = vmul.f32 %v2775_v16, %v1472_v4  ;;  %v2376_v20 = vld [vmem:[%s2757_s18 + $0xeb0] sm:$0xff]  ;;  %v2377_v26 = vld [vmem:[%s2757_s18 + $0xeb8] sm:$0xff] }
 0x136   : > { %v964_v14 = vld [vmem:[%s2757_s18 + $0x6a8] sm:$0xff]  ;;  %1983 = vst [vmem:[%s2790_s8 + $0x678] sm:$0xff] %v1727_v3  ;;  %v1474_v17 = vmul.f32 %v1218_v5, %v449_v0  ;;  %v965_v21 = vld [vmem:[%s2757_s18 + $0x6b0] sm:$0xff]  ;;  %1984 = vst [vmem:[%s2790_s8 + $0x680] sm:$0xff] %v1728_v9  ;;  %v1475_v23 = vmul.f32 %v1219_v11, %v450_v6 }
 0x137   : > { %v1220_v18 = vsub.f32 %v2375_v13, %v964_v14  ;;  %v1730_v22 = vmul.f32 %v2775_v16, %v1473_v10  ;;  %v1221_v24 = vsub.f32 %v2376_v20, %v965_v21  ;;  %v966_v27 = vld [vmem:[%s2757_s18 + $0x6b8] sm:$0xff]  ;;  %1985 = vst [vmem:[%s2790_s8 + $0x688] sm:$0xff] %v1729_v15  ;;  %v454_v31 = vld [vmem:[%s2749_s27 + $0x6c0] sm:$0xff]  ;;  %v455_v37 = vld [vmem:[%s2749_s27 + $0x6c8] sm:$0xff] }
 0x138   : > { %v1731_v28 = vmul.f32 %v2775_v16, %v1474_v17  ;;  %v1222_v30 = vsub.f32 %v2377_v26, %v966_v27  ;;  %v2378_v32 = vld [vmem:[%s2757_s18 + $0xec0] sm:$0xff]  ;;  %v1732_v34 = vmul.f32 %v2775_v16, %v1475_v23  ;;  %v2379_v38 = vld [vmem:[%s2757_s18 + $0xec8] sm:$0xff]  ;;  %v456_v43 = vld [vmem:[%s2749_s27 + $0x6d0] sm:$0xff] }
 0x139   : > { %v1476_v29 = vmul.f32 %v1220_v18, %v451_v12  ;;  %v967_v33 = vld [vmem:[%s2757_s18 + $0x6c0] sm:$0xff]  ;;  %1986 = vst [vmem:[%s2790_s8 + $0x690] sm:$0xff] %v1730_v22  ;;  %v1477_v35 = vmul.f32 %v1221_v24, %v452_v19  ;;  %v968_v39 = vld [vmem:[%s2757_s18 + $0x6c8] sm:$0xff]  ;;  %v2380_v44 = vld [vmem:[%s2757_s18 + $0xed0] sm:$0xff] }
 0x13a   : > { %v1223_v36 = vsub.f32 %v2378_v32, %v967_v33  ;;  %1987 = vst [vmem:[%s2790_s8 + $0x698] sm:$0xff] %v1731_v28  ;;  %v1478_v41 = vmul.f32 %v1222_v30, %v453_v25  ;;  %v1224_v42 = vsub.f32 %v2379_v38, %v968_v39  ;;  %v969_v45 = vld [vmem:[%s2757_s18 + $0x6d0] sm:$0xff]  ;;  %1988 = vst [vmem:[%s2790_s8 + $0x6a0] sm:$0xff] %v1732_v34  ;;  %v457_v49 = vld [vmem:[%s2749_s27 + $0x6d8] sm:$0xff] }
 0x13b   : > { %v1733_v40 = vmul.f32 %v2775_v16, %v1476_v29  ;;  %v1734_v46 = vmul.f32 %v2775_v16, %v1477_v35  ;;  %v1225_v48 = vsub.f32 %v2380_v44, %v969_v45  ;;  %v2381_v50 = vld [vmem:[%s2757_s18 + $0xed8] sm:$0xff]  ;;  %v458_v55 = vld [vmem:[%s2749_s27 + $0x6e0] sm:$0xff]  ;;  %v459_v61 = vld [vmem:[%s2749_s27 + $0x6e8] sm:$0xff] }
 0x13c   : > { %v1479_v47 = vmul.f32 %v1223_v36, %v454_v31  ;;  %v970_v51 = vld [vmem:[%s2757_s18 + $0x6d8] sm:$0xff]  ;;  %v1735_v52 = vmul.f32 %v2775_v16, %v1478_v41  ;;  %v1480_v53 = vmul.f32 %v1224_v42, %v455_v37  ;;  %v2382_v56 = vld [vmem:[%s2757_s18 + $0xee0] sm:$0xff]  ;;  %v2383_v62 = vld [vmem:[%s2757_s18 + $0xee8] sm:$0xff] }
 0x13d   : > { %1989 = vst [vmem:[%s2790_s8 + $0x6a8] sm:$0xff] %v1733_v40  ;;  %v1226_v54 = vsub.f32 %v2381_v50, %v970_v51  ;;  %v971_v57 = vld [vmem:[%s2757_s18 + $0x6e0] sm:$0xff]  ;;  %1990 = vst [vmem:[%s2790_s8 + $0x6b0] sm:$0xff] %v1734_v46  ;;  %v1481_v59 = vmul.f32 %v1225_v48, %v456_v43  ;;  %v972_v63 = vld [vmem:[%s2757_s18 + $0x6e8] sm:$0xff] }
 0x13e   : > { %v1736_v58 = vmul.f32 %v2775_v16, %v1479_v47  ;;  %v1227_v60 = vsub.f32 %v2382_v56, %v971_v57  ;;  %1991 = vst [vmem:[%s2790_s8 + $0x6b8] sm:$0xff] %v1735_v52  ;;  %v1737_v0 = vmul.f32 %v2775_v16, %v1480_v53  ;;  %v1228_v2 = vsub.f32 %v2383_v62, %v972_v63  ;;  %v460_v3 = vld [vmem:[%s2749_s27 + $0x6f0] sm:$0xff]  ;;  %v461_v9 = vld [vmem:[%s2749_s27 + $0x6f8] sm:$0xff]  ;;  %v462_v15 = vld [vmem:[%s2749_s27 + $0x700] sm:$0xff] }
 0x13f   : > { %v1482_v1 = vmul.f32 %v1226_v54, %v457_v49  ;;  %v2384_v4 = vld [vmem:[%s2757_s18 + $0xef0] sm:$0xff]  ;;  %v1738_v6 = vmul.f32 %v2775_v16, %v1481_v59  ;;  %v2385_v10 = vld [vmem:[%s2757_s18 + $0xef8] sm:$0xff]  ;;  %v2386_v17 = vld [vmem:[%s2757_s18 + $0xf00] sm:$0xff] }
 0x140   : > { %v973_v5 = vld [vmem:[%s2757_s18 + $0x6f0] sm:$0xff]  ;;  %1992 = vst [vmem:[%s2790_s8 + $0x6c0] sm:$0xff] %v1736_v58  ;;  %v1483_v7 = vmul.f32 %v1227_v60, %v458_v55  ;;  %v974_v11 = vld [vmem:[%s2757_s18 + $0x6f8] sm:$0xff]  ;;  %1993 = vst [vmem:[%s2790_s8 + $0x6c8] sm:$0xff] %v1737_v0  ;;  %v1484_v13 = vmul.f32 %v1228_v2, %v459_v61 }
 0x141   : > { %v1229_v8 = vsub.f32 %v2384_v4, %v973_v5  ;;  %v1739_v12 = vmul.f32 %v2775_v16, %v1482_v1  ;;  %v1230_v14 = vsub.f32 %v2385_v10, %v974_v11  ;;  %v975_v18 = vld [vmem:[%s2757_s18 + $0x700] sm:$0xff]  ;;  %1994 = vst [vmem:[%s2790_s8 + $0x6d0] sm:$0xff] %v1738_v6  ;;  %v463_v22 = vld [vmem:[%s2749_s27 + $0x708] sm:$0xff]  ;;  %v464_v28 = vld [vmem:[%s2749_s27 + $0x710] sm:$0xff] }
 0x142   : > { %v1740_v19 = vmul.f32 %v2775_v16, %v1483_v7  ;;  %v1231_v21 = vsub.f32 %v2386_v17, %v975_v18  ;;  %v2387_v23 = vld [vmem:[%s2757_s18 + $0xf08] sm:$0xff]  ;;  %v1741_v25 = vmul.f32 %v2775_v16, %v1484_v13  ;;  %v2388_v29 = vld [vmem:[%s2757_s18 + $0xf10] sm:$0xff]  ;;  %v465_v34 = vld [vmem:[%s2749_s27 + $0x718] sm:$0xff] }
 0x143   : > { %v1485_v20 = vmul.f32 %v1229_v8, %v460_v3  ;;  %v976_v24 = vld [vmem:[%s2757_s18 + $0x708] sm:$0xff]  ;;  %1995 = vst [vmem:[%s2790_s8 + $0x6d8] sm:$0xff] %v1739_v12  ;;  %v1486_v26 = vmul.f32 %v1230_v14, %v461_v9  ;;  %v977_v30 = vld [vmem:[%s2757_s18 + $0x710] sm:$0xff]  ;;  %v2389_v35 = vld [vmem:[%s2757_s18 + $0xf18] sm:$0xff] }
 0x144   : > { %v1232_v27 = vsub.f32 %v2387_v23, %v976_v24  ;;  %1996 = vst [vmem:[%s2790_s8 + $0x6e0] sm:$0xff] %v1740_v19  ;;  %v1487_v32 = vmul.f32 %v1231_v21, %v462_v15  ;;  %v1233_v33 = vsub.f32 %v2388_v29, %v977_v30  ;;  %v978_v36 = vld [vmem:[%s2757_s18 + $0x718] sm:$0xff]  ;;  %1997 = vst [vmem:[%s2790_s8 + $0x6e8] sm:$0xff] %v1741_v25  ;;  %v466_v40 = vld [vmem:[%s2749_s27 + $0x720] sm:$0xff] }
 0x145   : > { %v1742_v31 = vmul.f32 %v2775_v16, %v1485_v20  ;;  %v1743_v37 = vmul.f32 %v2775_v16, %v1486_v26  ;;  %v1234_v39 = vsub.f32 %v2389_v35, %v978_v36  ;;  %v2390_v41 = vld [vmem:[%s2757_s18 + $0xf20] sm:$0xff]  ;;  %v467_v46 = vld [vmem:[%s2749_s27 + $0x728] sm:$0xff]  ;;  %v468_v52 = vld [vmem:[%s2749_s27 + $0x730] sm:$0xff] }
 0x146   : > { %v1488_v38 = vmul.f32 %v1232_v27, %v463_v22  ;;  %v979_v42 = vld [vmem:[%s2757_s18 + $0x720] sm:$0xff]  ;;  %v1744_v43 = vmul.f32 %v2775_v16, %v1487_v32  ;;  %v1489_v44 = vmul.f32 %v1233_v33, %v464_v28  ;;  %v2391_v47 = vld [vmem:[%s2757_s18 + $0xf28] sm:$0xff]  ;;  %v2392_v53 = vld [vmem:[%s2757_s18 + $0xf30] sm:$0xff] }
 0x147   : > { %1998 = vst [vmem:[%s2790_s8 + $0x6f0] sm:$0xff] %v1742_v31  ;;  %v1235_v45 = vsub.f32 %v2390_v41, %v979_v42  ;;  %v980_v48 = vld [vmem:[%s2757_s18 + $0x728] sm:$0xff]  ;;  %1999 = vst [vmem:[%s2790_s8 + $0x6f8] sm:$0xff] %v1743_v37  ;;  %v1490_v50 = vmul.f32 %v1234_v39, %v465_v34  ;;  %v981_v54 = vld [vmem:[%s2757_s18 + $0x730] sm:$0xff] }
 0x148   : > { %v1745_v49 = vmul.f32 %v2775_v16, %v1488_v38  ;;  %v1236_v51 = vsub.f32 %v2391_v47, %v980_v48  ;;  %2000 = vst [vmem:[%s2790_s8 + $0x700] sm:$0xff] %v1744_v43  ;;  %v1746_v55 = vmul.f32 %v2775_v16, %v1489_v44  ;;  %v1237_v57 = vsub.f32 %v2392_v53, %v981_v54  ;;  %v469_v58 = vld [vmem:[%s2749_s27 + $0x738] sm:$0xff]  ;;  %v470_v0 = vld [vmem:[%s2749_s27 + $0x740] sm:$0xff]  ;;  %v471_v6 = vld [vmem:[%s2749_s27 + $0x748] sm:$0xff] }
 0x149   : > { %v1491_v56 = vmul.f32 %v1235_v45, %v466_v40  ;;  %v2393_v59 = vld [vmem:[%s2757_s18 + $0xf38] sm:$0xff]  ;;  %v1747_v61 = vmul.f32 %v2775_v16, %v1490_v50  ;;  %v2394_v1 = vld [vmem:[%s2757_s18 + $0xf40] sm:$0xff]  ;;  %v2395_v7 = vld [vmem:[%s2757_s18 + $0xf48] sm:$0xff] }
 0x14a   : > { %v982_v60 = vld [vmem:[%s2757_s18 + $0x738] sm:$0xff]  ;;  %2001 = vst [vmem:[%s2790_s8 + $0x708] sm:$0xff] %v1745_v49  ;;  %v1492_v62 = vmul.f32 %v1236_v51, %v467_v46  ;;  %v983_v2 = vld [vmem:[%s2757_s18 + $0x740] sm:$0xff]  ;;  %2002 = vst [vmem:[%s2790_s8 + $0x710] sm:$0xff] %v1746_v55  ;;  %v1493_v4 = vmul.f32 %v1237_v57, %v468_v52 }
 0x14b   : > { %v1238_v63 = vsub.f32 %v2393_v59, %v982_v60  ;;  %v1748_v3 = vmul.f32 %v2775_v16, %v1491_v56  ;;  %v1239_v5 = vsub.f32 %v2394_v1, %v983_v2  ;;  %v984_v8 = vld [vmem:[%s2757_s18 + $0x748] sm:$0xff]  ;;  %2003 = vst [vmem:[%s2790_s8 + $0x718] sm:$0xff] %v1747_v61  ;;  %v472_v12 = vld [vmem:[%s2749_s27 + $0x750] sm:$0xff]  ;;  %v473_v19 = vld [vmem:[%s2749_s27 + $0x758] sm:$0xff] }
 0x14c   : > { %v1749_v9 = vmul.f32 %v2775_v16, %v1492_v62  ;;  %v1240_v11 = vsub.f32 %v2395_v7, %v984_v8  ;;  %v2396_v13 = vld [vmem:[%s2757_s18 + $0xf50] sm:$0xff]  ;;  %v1750_v15 = vmul.f32 %v2775_v16, %v1493_v4  ;;  %v2397_v20 = vld [vmem:[%s2757_s18 + $0xf58] sm:$0xff]  ;;  %v474_v25 = vld [vmem:[%s2749_s27 + $0x760] sm:$0xff] }
 0x14d   : > { %v1494_v10 = vmul.f32 %v1238_v63, %v469_v58  ;;  %v985_v14 = vld [vmem:[%s2757_s18 + $0x750] sm:$0xff]  ;;  %2004 = vst [vmem:[%s2790_s8 + $0x720] sm:$0xff] %v1748_v3  ;;  %v1495_v17 = vmul.f32 %v1239_v5, %v470_v0  ;;  %v986_v21 = vld [vmem:[%s2757_s18 + $0x758] sm:$0xff]  ;;  %v2398_v26 = vld [vmem:[%s2757_s18 + $0xf60] sm:$0xff] }
 0x14e   : > { %v1241_v18 = vsub.f32 %v2396_v13, %v985_v14  ;;  %2005 = vst [vmem:[%s2790_s8 + $0x728] sm:$0xff] %v1749_v9  ;;  %v1496_v23 = vmul.f32 %v1240_v11, %v471_v6  ;;  %v1242_v24 = vsub.f32 %v2397_v20, %v986_v21  ;;  %v987_v27 = vld [vmem:[%s2757_s18 + $0x760] sm:$0xff]  ;;  %2006 = vst [vmem:[%s2790_s8 + $0x730] sm:$0xff] %v1750_v15  ;;  %v475_v31 = vld [vmem:[%s2749_s27 + $0x768] sm:$0xff] }
 0x14f   : > { %v1751_v22 = vmul.f32 %v2775_v16, %v1494_v10  ;;  %v1752_v28 = vmul.f32 %v2775_v16, %v1495_v17  ;;  %v1243_v30 = vsub.f32 %v2398_v26, %v987_v27  ;;  %v2399_v32 = vld [vmem:[%s2757_s18 + $0xf68] sm:$0xff]  ;;  %v476_v37 = vld [vmem:[%s2749_s27 + $0x770] sm:$0xff]  ;;  %v477_v43 = vld [vmem:[%s2749_s27 + $0x778] sm:$0xff] }
 0x150   : > { %v1497_v29 = vmul.f32 %v1241_v18, %v472_v12  ;;  %v988_v33 = vld [vmem:[%s2757_s18 + $0x768] sm:$0xff]  ;;  %v1753_v34 = vmul.f32 %v2775_v16, %v1496_v23  ;;  %v1498_v35 = vmul.f32 %v1242_v24, %v473_v19  ;;  %v2400_v38 = vld [vmem:[%s2757_s18 + $0xf70] sm:$0xff]  ;;  %v2401_v44 = vld [vmem:[%s2757_s18 + $0xf78] sm:$0xff] }
 0x151   : > { %2007 = vst [vmem:[%s2790_s8 + $0x738] sm:$0xff] %v1751_v22  ;;  %v1244_v36 = vsub.f32 %v2399_v32, %v988_v33  ;;  %v989_v39 = vld [vmem:[%s2757_s18 + $0x770] sm:$0xff]  ;;  %2008 = vst [vmem:[%s2790_s8 + $0x740] sm:$0xff] %v1752_v28  ;;  %v1499_v41 = vmul.f32 %v1243_v30, %v474_v25  ;;  %v990_v45 = vld [vmem:[%s2757_s18 + $0x778] sm:$0xff] }
 0x152   : > { %v1754_v40 = vmul.f32 %v2775_v16, %v1497_v29  ;;  %v1245_v42 = vsub.f32 %v2400_v38, %v989_v39  ;;  %2009 = vst [vmem:[%s2790_s8 + $0x748] sm:$0xff] %v1753_v34  ;;  %v1755_v46 = vmul.f32 %v2775_v16, %v1498_v35  ;;  %v1246_v48 = vsub.f32 %v2401_v44, %v990_v45  ;;  %v478_v49 = vld [vmem:[%s2749_s27 + $0x780] sm:$0xff]  ;;  %v479_v55 = vld [vmem:[%s2749_s27 + $0x788] sm:$0xff]  ;;  %v480_v61 = vld [vmem:[%s2749_s27 + $0x790] sm:$0xff] }
 0x153   : > { %v1500_v47 = vmul.f32 %v1244_v36, %v475_v31  ;;  %v2402_v50 = vld [vmem:[%s2757_s18 + $0xf80] sm:$0xff]  ;;  %v1756_v52 = vmul.f32 %v2775_v16, %v1499_v41  ;;  %v2403_v56 = vld [vmem:[%s2757_s18 + $0xf88] sm:$0xff]  ;;  %v2404_v62 = vld [vmem:[%s2757_s18 + $0xf90] sm:$0xff] }
 0x154   : > { %v991_v51 = vld [vmem:[%s2757_s18 + $0x780] sm:$0xff]  ;;  %2010 = vst [vmem:[%s2790_s8 + $0x750] sm:$0xff] %v1754_v40  ;;  %v1501_v53 = vmul.f32 %v1245_v42, %v476_v37  ;;  %v992_v57 = vld [vmem:[%s2757_s18 + $0x788] sm:$0xff]  ;;  %2011 = vst [vmem:[%s2790_s8 + $0x758] sm:$0xff] %v1755_v46  ;;  %v1502_v59 = vmul.f32 %v1246_v48, %v477_v43 }
 0x155   : > { %v1247_v54 = vsub.f32 %v2402_v50, %v991_v51  ;;  %v1757_v58 = vmul.f32 %v2775_v16, %v1500_v47  ;;  %v1248_v60 = vsub.f32 %v2403_v56, %v992_v57  ;;  %v993_v63 = vld [vmem:[%s2757_s18 + $0x790] sm:$0xff]  ;;  %2012 = vst [vmem:[%s2790_s8 + $0x760] sm:$0xff] %v1756_v52  ;;  %v481_v3 = vld [vmem:[%s2749_s27 + $0x798] sm:$0xff]  ;;  %v482_v9 = vld [vmem:[%s2749_s27 + $0x7a0] sm:$0xff] }
 0x156   : > { %v1758_v0 = vmul.f32 %v2775_v16, %v1501_v53  ;;  %v1249_v2 = vsub.f32 %v2404_v62, %v993_v63  ;;  %v2405_v4 = vld [vmem:[%s2757_s18 + $0xf98] sm:$0xff]  ;;  %v1759_v6 = vmul.f32 %v2775_v16, %v1502_v59  ;;  %v2406_v10 = vld [vmem:[%s2757_s18 + $0xfa0] sm:$0xff]  ;;  %v483_v15 = vld [vmem:[%s2749_s27 + $0x7a8] sm:$0xff] }
 0x157   : > { %v1503_v1 = vmul.f32 %v1247_v54, %v478_v49  ;;  %v994_v5 = vld [vmem:[%s2757_s18 + $0x798] sm:$0xff]  ;;  %2013 = vst [vmem:[%s2790_s8 + $0x768] sm:$0xff] %v1757_v58  ;;  %v1504_v7 = vmul.f32 %v1248_v60, %v479_v55  ;;  %v995_v11 = vld [vmem:[%s2757_s18 + $0x7a0] sm:$0xff]  ;;  %v2407_v17 = vld [vmem:[%s2757_s18 + $0xfa8] sm:$0xff] }
 0x158   : > { %v1250_v8 = vsub.f32 %v2405_v4, %v994_v5  ;;  %2014 = vst [vmem:[%s2790_s8 + $0x770] sm:$0xff] %v1758_v0  ;;  %v1505_v13 = vmul.f32 %v1249_v2, %v480_v61  ;;  %v1251_v14 = vsub.f32 %v2406_v10, %v995_v11  ;;  %v996_v18 = vld [vmem:[%s2757_s18 + $0x7a8] sm:$0xff]  ;;  %2015 = vst [vmem:[%s2790_s8 + $0x778] sm:$0xff] %v1759_v6  ;;  %v484_v22 = vld [vmem:[%s2749_s27 + $0x7b0] sm:$0xff] }
 0x159   : > { %v1760_v12 = vmul.f32 %v2775_v16, %v1503_v1  ;;  %v1761_v19 = vmul.f32 %v2775_v16, %v1504_v7  ;;  %v1252_v21 = vsub.f32 %v2407_v17, %v996_v18  ;;  %v2408_v23 = vld [vmem:[%s2757_s18 + $0xfb0] sm:$0xff]  ;;  %v485_v28 = vld [vmem:[%s2749_s27 + $0x7b8] sm:$0xff]  ;;  %v486_v34 = vld [vmem:[%s2749_s27 + $0x7c0] sm:$0xff] }
 0x15a   : > { %v1506_v20 = vmul.f32 %v1250_v8, %v481_v3  ;;  %v997_v24 = vld [vmem:[%s2757_s18 + $0x7b0] sm:$0xff]  ;;  %v1762_v25 = vmul.f32 %v2775_v16, %v1505_v13  ;;  %v1507_v26 = vmul.f32 %v1251_v14, %v482_v9  ;;  %v2409_v29 = vld [vmem:[%s2757_s18 + $0xfb8] sm:$0xff]  ;;  %v2410_v35 = vld [vmem:[%s2757_s18 + $0xfc0] sm:$0xff] }
 0x15b   : > { %2016 = vst [vmem:[%s2790_s8 + $0x780] sm:$0xff] %v1760_v12  ;;  %v1253_v27 = vsub.f32 %v2408_v23, %v997_v24  ;;  %v998_v30 = vld [vmem:[%s2757_s18 + $0x7b8] sm:$0xff]  ;;  %2017 = vst [vmem:[%s2790_s8 + $0x788] sm:$0xff] %v1761_v19  ;;  %v1508_v32 = vmul.f32 %v1252_v21, %v483_v15  ;;  %v999_v36 = vld [vmem:[%s2757_s18 + $0x7c0] sm:$0xff] }
 0x15c   : > { %v1763_v31 = vmul.f32 %v2775_v16, %v1506_v20  ;;  %v1254_v33 = vsub.f32 %v2409_v29, %v998_v30  ;;  %2018 = vst [vmem:[%s2790_s8 + $0x790] sm:$0xff] %v1762_v25  ;;  %v1764_v37 = vmul.f32 %v2775_v16, %v1507_v26  ;;  %v1255_v39 = vsub.f32 %v2410_v35, %v999_v36  ;;  %v487_v40 = vld [vmem:[%s2749_s27 + $0x7c8] sm:$0xff]  ;;  %v488_v46 = vld [vmem:[%s2749_s27 + $0x7d0] sm:$0xff]  ;;  %v489_v52 = vld [vmem:[%s2749_s27 + $0x7d8] sm:$0xff] }
 0x15d   : > { %v1509_v38 = vmul.f32 %v1253_v27, %v484_v22  ;;  %v2411_v41 = vld [vmem:[%s2757_s18 + $0xfc8] sm:$0xff]  ;;  %v1765_v43 = vmul.f32 %v2775_v16, %v1508_v32  ;;  %v2412_v47 = vld [vmem:[%s2757_s18 + $0xfd0] sm:$0xff]  ;;  %v2413_v53 = vld [vmem:[%s2757_s18 + $0xfd8] sm:$0xff] }
 0x15e   : > { %v1000_v42 = vld [vmem:[%s2757_s18 + $0x7c8] sm:$0xff]  ;;  %2019 = vst [vmem:[%s2790_s8 + $0x798] sm:$0xff] %v1763_v31  ;;  %v1510_v44 = vmul.f32 %v1254_v33, %v485_v28  ;;  %v1001_v48 = vld [vmem:[%s2757_s18 + $0x7d0] sm:$0xff]  ;;  %2020 = vst [vmem:[%s2790_s8 + $0x7a0] sm:$0xff] %v1764_v37  ;;  %v1511_v50 = vmul.f32 %v1255_v39, %v486_v34 }
 0x15f   : > { %v1256_v45 = vsub.f32 %v2411_v41, %v1000_v42  ;;  %v1766_v49 = vmul.f32 %v2775_v16, %v1509_v38  ;;  %v1257_v51 = vsub.f32 %v2412_v47, %v1001_v48  ;;  %v1002_v54 = vld [vmem:[%s2757_s18 + $0x7d8] sm:$0xff]  ;;  %2021 = vst [vmem:[%s2790_s8 + $0x7a8] sm:$0xff] %v1765_v43  ;;  %v490_v58 = vld [vmem:[%s2749_s27 + $0x7e0] sm:$0xff]  ;;  %v491_v0 = vld [vmem:[%s2749_s27 + $0x7e8] sm:$0xff] }
 0x160   : > { %v1767_v55 = vmul.f32 %v2775_v16, %v1510_v44  ;;  %v1258_v57 = vsub.f32 %v2413_v53, %v1002_v54  ;;  %v2414_v59 = vld [vmem:[%s2757_s18 + $0xfe0] sm:$0xff]  ;;  %v1768_v61 = vmul.f32 %v2775_v16, %v1511_v50  ;;  %v2415_v1 = vld [vmem:[%s2757_s18 + $0xfe8] sm:$0xff]  ;;  %v492_v6 = vld [vmem:[%s2749_s27 + $0x7f0] sm:$0xff] }
 0x161   : > { %v1512_v56 = vmul.f32 %v1256_v45, %v487_v40  ;;  %v1003_v60 = vld [vmem:[%s2757_s18 + $0x7e0] sm:$0xff]  ;;  %2022 = vst [vmem:[%s2790_s8 + $0x7b0] sm:$0xff] %v1766_v49  ;;  %v1513_v62 = vmul.f32 %v1257_v51, %v488_v46  ;;  %v1004_v2 = vld [vmem:[%s2757_s18 + $0x7e8] sm:$0xff]  ;;  %v2416_v7 = vld [vmem:[%s2757_s18 + $0xff0] sm:$0xff] }
 0x162   : > { %v1259_v63 = vsub.f32 %v2414_v59, %v1003_v60  ;;  %2023 = vst [vmem:[%s2790_s8 + $0x7b8] sm:$0xff] %v1767_v55  ;;  %v1514_v4 = vmul.f32 %v1258_v57, %v489_v52  ;;  %v1260_v5 = vsub.f32 %v2415_v1, %v1004_v2  ;;  %v1005_v8 = vld [vmem:[%s2757_s18 + $0x7f0] sm:$0xff]  ;;  %2024 = vst [vmem:[%s2790_s8 + $0x7c0] sm:$0xff] %v1768_v61  ;;  %v493_v12 = vld [vmem:[%s2749_s27 + $0x7f8] sm:$0xff] }
 0x163   : > { %v1769_v3 = vmul.f32 %v2775_v16, %v1512_v56  ;;  %v1770_v9 = vmul.f32 %v2775_v16, %v1513_v62  ;;  %v1261_v11 = vsub.f32 %v2416_v7, %v1005_v8  ;;  %v2417_v13 = vld [vmem:[%s2757_s18 + $0xff8] sm:$0xff] }
 0x164   : > { %v1515_v10 = vmul.f32 %v1259_v63, %v490_v58  ;;  %v1006_v14 = vld [vmem:[%s2757_s18 + $0x7f8] sm:$0xff]  ;;  %v1771_v15 = vmul.f32 %v2775_v16, %v1514_v4  ;;  %v1516_v17 = vmul.f32 %v1260_v5, %v491_v0 }
 0x165   : > { %2025 = vst [vmem:[%s2790_s8 + $0x7c8] sm:$0xff] %v1769_v3  ;;  %v1262_v18 = vsub.f32 %v2417_v13, %v1006_v14  ;;  %2026 = vst [vmem:[%s2790_s8 + $0x7d0] sm:$0xff] %v1770_v9  ;;  %v1517_v20 = vmul.f32 %v1261_v11, %v492_v6 }
 0x166   : > { %v1772_v19 = vmul.f32 %v2775_v16, %v1515_v10  ;;  %2027 = vst [vmem:[%s2790_s8 + $0x7d8] sm:$0xff] %v1771_v15  ;;  %v1773_v21 = vmul.f32 %v2775_v16, %v1516_v17 }
 0x167   : > { %v1518_v22 = vmul.f32 %v1262_v18, %v493_v12  ;;  %v1774_v23 = vmul.f32 %v2775_v16, %v1517_v20 }
 0x168   : > { %2028 = vst [vmem:[%s2790_s8 + $0x7e0] sm:$0xff] %v1772_v19  ;;  %2029 = vst [vmem:[%s2790_s8 + $0x7e8] sm:$0xff] %v1773_v21 }
 0x169   : > { %v1775_v24 = vmul.f32 %v2775_v16, %v1518_v22  ;;  %2030 = vst [vmem:[%s2790_s8 + $0x7f0] sm:$0xff] %v1774_v23 }
 0x16b   : > { %2031 = vst [vmem:[%s2790_s8 + $0x7f8] sm:$0xff] %v1775_v24 }
 0x16c   : > { %2529 = shalt.err (!%p2526_p7)
}
 0x16d   : > { %s2530_s27 = scalar_lea.hbm %s4050_s4, 32768  ;;  %s2534_s18 = scalar_lea.hbm %s4102_s3, 65536 }
 0x16e   : > { %p2531_p8 = scmp.ne.s32.totalorder %s4050_s4, %s2530_s27  ;;  %p2535_p9 = scmp.lt.s32.totalorder %s4050_s4, %s4102_s3 }
 0x16f   : > { %p2536_p10 = scmp.lt.s32.totalorder %s2534_s18, %s2530_s27 }
 0x170   : > { %p2532_p12 = pnand %p2531_p8, %p4109_p6 }
 0x171   : > { %p2537_p11 = por %p2536_p10, %p2535_p9 }
 0x172   : > { %p2533_p13 = pneg %p2532_p12 }
 0x174   : > { %p2538_p5 = pnand %p2537_p11, %p2533_p13 }
 0x176   : > { %2541 = shalt.err (!%p2538_p5)
}
 0x177   : > { %s2596_s7 = smov 1024   ;;  %s2597_s24 = smov 64  }
 0x178   : > { %2441 = dma.vmem_to_hbm [thread:$0]  (%p4109_p6), %s4052_s29, 32768, %s4050_s4, %s2033_s0, %s2596_s7, %s2596_s7, %s2597_s24  }
 0x179 PF: > { %s2062_s8 = sand.u32 1, %s2572_s14   ;;  %p4110_p0 = scmp.ne.s32.totalorder %s4108_s26, 0 }
 0x17a   : > { %p4111_p1 = scmp.ge.s32.totalorder %s2584_s17, 2  ;;  %s2063_s21 = scalar_lea.sflag [#allocation6], %s2062_s8 }
 0x17c   : > { %p2444_p2 = pnand %p4111_p1, %p4110_p0 }
 0x17e   : > { %p2445_p3 = pneg %p2444_p2 }
 0x180   : > { %2567 = dma.done.wait (%p2445_p3), %s2063_s21, 32768  }
 0x181   : > { %2569 = vsyncadd (%p2445_p3), %s2063_s21, 4294934528  ;;  %p20_p4 = scmp.ge.s32.totalorder %s2646_s19, 4   ;;  %s4112_s14 = smov %s2576_s15 }
 0x182   : > { %s4113_s15 = smov %s2580_s16  ;;  %s4114_s16 = smov %s2658_s22 }
 0x183   : > { %s4115_s17 = smov %s2646_s19  ;;  %22 = sbr.rel (!%p20_p4) target bundleno = 9 (0x9), region = 92 }
 0x188   :  { %2068 = vsyncpa [#allocation5], 1 }
 0x189   :  { %2070 = vsyncpa [#allocation5 + $0x1], 1 }
 0x18a   :  { %2071 = vsyncpa [#allocation8], 1 }
 0x18b   :  { %2073 = vsyncpa [#allocation8 + $0x1], 1 }
 0x18c   :  { %2074 = vsyncpa [#allocation6], 1 }
 0x18d   :  { %2076 = vsyncpa [#allocation6 + $0x1], 1 }

</bundles_post_ra>
